<compile_context>
chip_gen: v7x
topology: tpu7x:2x2x1
jax: 0.10.0
libtpu: 0.0.40
codegen_flags: <defaults>
</compile_context>

<pallas_src>
import jax
import jax.numpy as jnp
from jax import lax
from jax.experimental import pallas as pl
from jax.experimental.pallas import tpu as pltpu


def _round_up(n, m):
    return (n + m - 1) // m * m


def _double_conv_kernel(x_ref, w1_ref, b1_ref, w2_ref, b2_ref, ws_ref, bs_ref,
                        o_ref):
    _, H, W, Ci = x_ref.shape          # Ci/Co already lane-padded (mult. of 128)
    Co = o_ref.shape[3]
    HW = H * W
    PAD = _round_up(W + 1, 8)          # flat halo pad rows, sublane-aligned

    x_bf = x_ref[0].reshape(HW, Ci)                 # (HW, Ci) bf16, lane-dense
    x_f32 = x_bf.astype(jnp.float32)

    # Column-edge masks for the 3x3 taps, hoisted and shared by both convs.
    # Row (dy) out-of-range taps land in the zero-padded region of the flat
    # buffer below, so only the column condition needs explicit masking.
    ww = lax.broadcasted_iota(jnp.int32, (HW, 1), 0) % W
    col_mask = {-1: ww > 0, 0: None, 1: ww < W - 1}

    def im2col(a):
        # a: (HW, C) f32 -> (HW, 9*C) bf16 slab of 3x3 neighborhoods
        # (zero outside the image).  Shifts are done on the flattened row
        # axis of a single zero-padded buffer (built once per conv).
        C = a.shape[1]
        zpad = jnp.zeros((PAD, C), a.dtype)
        apad = jnp.concatenate([zpad, a, zpad], axis=0)     # (HW + 2*PAD, C)
        cols = []
        for oy in (-1, 0, 1):
            for ox in (-1, 0, 1):
                s = oy * W + ox
                sh = apad[PAD + s:PAD + s + HW, :]          # sh[p] = a[p + s]
                m = col_mask[ox]
                if m is not None:
                    sh = jnp.where(m, sh, 0.0)
                cols.append(sh.astype(jnp.bfloat16))
        return jnp.concatenate(cols, axis=-1)               # (HW, 9*C) bf16

    # conv1 (3x3, BN scale folded into weights) + bias + ReLU: one matmul.
    y1 = jnp.dot(im2col(x_f32), w1_ref[...],
                 preferred_element_type=jnp.float32)
    y1 = jnp.maximum(y1 + b1_ref[...], 0.0)                 # (HW, Co) f32

    # conv2 (3x3, BN scale folded) + bias: one matmul.
    y2 = jnp.dot(im2col(y1), w2_ref[...],
                 preferred_element_type=jnp.float32)
    y2 = y2 + b2_ref[...]

    # shortcut: 1x1 conv (identity weights when Cin == Cout) + folded BN.
    idp = jnp.dot(x_bf, ws_ref[...], preferred_element_type=jnp.float32)
    idp = idp + bs_ref[...]

    out = jnp.maximum(y2 + idp, 0.0)                        # (HW, Co) f32
    o_ref[...] = out.reshape(1, H, W, Co).astype(o_ref.dtype)


def double_conv_pallas(x_nhwc, w1_hwio, s1, b1, w2_hwio, s2, b2, ws_io, ss, bs):
    """x_nhwc: (N,H,W,Cin) f32; w1:(3,3,Cin,Cout), w2:(3,3,Cout,Cout) HWIO;
    ws_io:(Cin,Cout); s*/b*: folded BatchNorm scale/bias, shape (Cout,)."""
    N, H, W, Cin = x_nhwc.shape
    Cout = w1_hwio.shape[-1]
    LANE = 128
    Ci = _round_up(Cin, LANE)
    Co = _round_up(Cout, LANE)

    # Fold BN scale into conv weights, pad channels to lane width, cast bf16,
    # and pre-reshape 3x3 weights to the (9*Cin_pad, Cout_pad) im2col layout.
    def prep3x3(w, scale, cin, cin_p):
        w = w * scale[None, None, None, :]
        w = jnp.pad(w, ((0, 0), (0, 0), (0, cin_p - cin), (0, Co - Cout)))
        return w.reshape(9 * cin_p, Co).astype(jnp.bfloat16)

    w1m = prep3x3(w1_hwio, s1, Cin, Ci)
    w2m = prep3x3(w2_hwio, s2, Cout, Co)
    wsm = jnp.pad(ws_io * ss[None, :],
                  ((0, Ci - Cin), (0, Co - Cout))).astype(jnp.bfloat16)

    pad_bias = lambda b: jnp.pad(b, (0, Co - Cout)).reshape(1, Co).astype(jnp.float32)
    b1p, b2p, bsp = pad_bias(b1), pad_bias(b2), pad_bias(bs)

    # Lane-dense bf16 activations; no spatial padding materialized in HBM.
    xp = jnp.pad(x_nhwc, ((0, 0), (0, 0), (0, 0), (0, Ci - Cin))).astype(jnp.bfloat16)

    rep = lambda b: (0, 0)
    out = pl.pallas_call(
        _double_conv_kernel,
        out_shape=jax.ShapeDtypeStruct((N, H, W, Co), jnp.float32),
        grid_spec=pltpu.PrefetchScalarGridSpec(
            num_scalar_prefetch=0,
            grid=(N,),
            in_specs=[
                pl.BlockSpec((1, H, W, Ci), lambda b: (b, 0, 0, 0)),
                pl.BlockSpec((9 * Ci, Co), rep),
                pl.BlockSpec((1, Co), rep),
                pl.BlockSpec((9 * Co, Co), rep),
                pl.BlockSpec((1, Co), rep),
                pl.BlockSpec((Ci, Co), rep),
                pl.BlockSpec((1, Co), rep),
            ],
            out_specs=pl.BlockSpec((1, H, W, Co), lambda b: (b, 0, 0, 0)),
        ),
        compiler_params=pltpu.CompilerParams(
            dimension_semantics=("parallel",),
            vmem_limit_bytes=32 * 1024 * 1024),
    )(xp, w1m, b1p, w2m, b2p, wsm, bsp)
    return out[..., :Cout]


# ---------------- parameter setup (deterministic, synthetic) ----------------
def _fold_bn(kg, kb, km, kv, c, eps=1e-5):
    gamma = 1.0 + 0.1 * jax.random.normal(kg, (c,), jnp.float32)
    beta = 0.1 * jax.random.normal(kb, (c,), jnp.float32)
    mean = 0.1 * jax.random.normal(km, (c,), jnp.float32)
    var = jnp.abs(jax.random.normal(kv, (c,), jnp.float32)) + 0.5
    scale = gamma / jnp.sqrt(var + eps)
    bias = beta - mean * scale
    return scale, bias


def init_params(key, cin, cout):
    ks = jax.random.split(key, 16)
    w1_oihw = 0.1 * jax.random.normal(ks[0], (cout, cin, 3, 3), jnp.float32)
    w2_oihw = 0.1 * jax.random.normal(ks[1], (cout, cout, 3, 3), jnp.float32)
    s1, b1 = _fold_bn(ks[2], ks[3], ks[4], ks[5], cout)
    s2, b2 = _fold_bn(ks[6], ks[7], ks[8], ks[9], cout)
    has_sample = cin != cout
    if has_sample:
        ws_oihw = 0.1 * jax.random.normal(ks[10], (cout, cin, 1, 1), jnp.float32)
        ss, bs = _fold_bn(ks[11], ks[12], ks[13], ks[14], cout)
    else:
        ws_oihw = jnp.eye(cin, dtype=jnp.float32)[:, :, None, None]
        ss = jnp.ones((cout,), jnp.float32)
        bs = jnp.zeros((cout,), jnp.float32)
    return dict(w1=w1_oihw, s1=s1, b1=b1, w2=w2_oihw, s2=s2, b2=b2,
                ws=ws_oihw, ss=ss, bs=bs, has_sample=has_sample)


# ---------------- pure-JAX reference (NCHW, matches PyTorch semantics) ----------------
def ref_double_conv(x, p):
    def conv(inp, w, pad):
        dn = lax.conv_dimension_numbers(inp.shape, w.shape, ('NCHW', 'OIHW', 'NCHW'))
        return lax.conv_general_dilated(inp, w, (1, 1), pad, dimension_numbers=dn)

    def bn(y, s, b):
        return y * s[None, :, None, None] + b[None, :, None, None]

    y = jnp.maximum(bn(conv(x, p['w1'], ((1, 1), (1, 1))), p['s1'], p['b1']), 0.0)
    y = bn(conv(y, p['w2'], ((1, 1), (1, 1))), p['s2'], p['b2'])
    if p['has_sample']:
        idp = bn(conv(x, p['ws'], ((0, 0), (0, 0))), p['ss'], p['bs'])
    else:
        idp = x
    return jnp.maximum(y + idp, 0.0)


if __name__ == "__main__":
    key = jax.random.PRNGKey(0)
    kx, kp = jax.random.split(key)

    N, Cin, H, W = 2, 4, 16, 16
    Cout = 8

    x_nchw = jax.random.normal(kx, (N, Cin, H, W), jnp.float32)
    p = init_params(kp, Cin, Cout)

    # convert to kernel layouts: NHWC activations, HWIO conv weights
    x_nhwc = jnp.transpose(x_nchw, (0, 2, 3, 1))
    w1_hwio = jnp.transpose(p['w1'], (2, 3, 1, 0))        # (3,3,Cin,Cout)
    w2_hwio = jnp.transpose(p['w2'], (2, 3, 1, 0))        # (3,3,Cout,Cout)
    ws_io = jnp.transpose(p['ws'][:, :, 0, 0], (1, 0))    # (Cin,Cout)

    out_nhwc = double_conv_pallas(
        x_nhwc, w1_hwio, p['s1'], p['b1'],
        w2_hwio, p['s2'], p['b2'],
        ws_io, p['ss'], p['bs'])
    out_nchw = jnp.transpose(out_nhwc, (0, 3, 1, 2))
    jax.block_until_ready(out_nchw)

    ref = ref_double_conv(x_nchw, p)
    assert out_nchw.shape == ref.shape == (N, Cout, H, W)
    err = jnp.max(jnp.abs(out_nchw - ref))
    # bf16 matmul operands with f32 accumulation -> slightly looser tolerance.
    assert jnp.allclose(out_nchw, ref, rtol=2e-2, atol=2e-2), f"max abs err {err}"

    print("KERNEL_OK")
</pallas_src>

<mosaic_0001>
module attributes {stable_mosaic.version = 11 : i64} {
  func.func @_double_conv_kernel(%arg0: i32, %arg1: memref<1x16x16x128xbf16, #tpu.memory_space<vmem>>, %arg2: memref<1152x128xbf16, #tpu.memory_space<vmem>>, %arg3: memref<1x128xf32, #tpu.memory_space<vmem>>, %arg4: memref<1152x128xbf16, #tpu.memory_space<vmem>>, %arg5: memref<1x128xf32, #tpu.memory_space<vmem>>, %arg6: memref<128x128xbf16, #tpu.memory_space<vmem>>, %arg7: memref<1x128xf32, #tpu.memory_space<vmem>>, %arg8: memref<1x16x16x128xf32, #tpu.memory_space<vmem>>) attributes {dimension_semantics = [#tpu.dimension_semantics<parallel>], iteration_bounds = array<i64: 2>, scalar_prefetch = 0 : i64, scratch_operands = 0 : i64, tpu.core_type = #tpu.core_type<tc>, window_params = [{transform_indices = @transform_0, window_bounds = array<i64: 1, 16, 16, 128>}, {pipeline_mode = #tpu.pipeline_mode<synchronous>, transform_indices = @transform_1, window_bounds = array<i64: 1152, 128>}, {pipeline_mode = #tpu.pipeline_mode<synchronous>, transform_indices = @transform_2, window_bounds = array<i64: 1, 128>}, {pipeline_mode = #tpu.pipeline_mode<synchronous>, transform_indices = @transform_3, window_bounds = array<i64: 1152, 128>}, {pipeline_mode = #tpu.pipeline_mode<synchronous>, transform_indices = @transform_4, window_bounds = array<i64: 1, 128>}, {pipeline_mode = #tpu.pipeline_mode<synchronous>, transform_indices = @transform_5, window_bounds = array<i64: 128, 128>}, {pipeline_mode = #tpu.pipeline_mode<synchronous>, transform_indices = @transform_6, window_bounds = array<i64: 1, 128>}, {transform_indices = @transform_7, window_bounds = array<i64: 1, 16, 16, 128>}]} {
    %c0 = arith.constant 0 : index
    %c0_0 = arith.constant 0 : index
    %c0_1 = arith.constant 0 : index
    %c0_2 = arith.constant 0 : index
    %0 = vector.load %arg1[%c0, %c0_0, %c0_1, %c0_2] : memref<1x16x16x128xbf16, #tpu.memory_space<vmem>>, vector<1x16x16x128xbf16>
    %1 = vector.shape_cast %0 : vector<1x16x16x128xbf16> to vector<16x16x128xbf16>
    %2 = vector.shape_cast %1 : vector<16x16x128xbf16> to vector<256x128xbf16>
    %3 = arith.extf %2 : vector<256x128xbf16> to vector<256x128xf32>
    %4 = tpu.iota {dimensions = array<i32: 0>} : vector<256x1xi32>
    %c16_i32 = arith.constant 16 : i32
    %c0_i32 = arith.constant 0 : i32
    %5 = arith.cmpi eq, %c16_i32, %c0_i32 : i32
    %c1_i32 = arith.constant 1 : i32
    %6 = arith.select %5, %c1_i32, %c16_i32 : i32
    %7 = vector.broadcast %6 : i32 to vector<256x1xi32>
    %8 = arith.remsi %4, %7 : vector<256x1xi32>
    %c0_i32_3 = arith.constant 0 : i32
    %9 = vector.broadcast %c0_i32_3 : i32 to vector<256x1xi32>
    %10 = arith.cmpi ne, %8, %9 : vector<256x1xi32>
    %c0_i32_4 = arith.constant 0 : i32
    %11 = vector.broadcast %c0_i32_4 : i32 to vector<256x1xi32>
    %12 = arith.cmpi slt, %8, %11 : vector<256x1xi32>
    %c0_i32_5 = arith.constant 0 : i32
    %13 = arith.cmpi slt, %6, %c0_i32_5 : i32
    %14 = vector.broadcast %13 : i1 to vector<256x1xi1>
    %15 = vector.broadcast %14 : vector<256x1xi1> to vector<256x1xi1>
    %16 = arith.xori %12, %15 : vector<256x1xi1>
    %17 = arith.andi %16, %10 : vector<256x1xi1>
    %18 = vector.broadcast %6 : i32 to vector<256x1xi32>
    %19 = arith.addi %8, %18 : vector<256x1xi32>
    %20 = arith.select %17, %19, %8 : vector<256x1xi1>, vector<256x1xi32>
    %c0_i32_6 = arith.constant 0 : i32
    %21 = vector.broadcast %c0_i32_6 : i32 to vector<256x1xi32>
    %22 = arith.cmpi sgt, %20, %21 : vector<256x1xi32>
    %c15_i32 = arith.constant 15 : i32
    %23 = vector.broadcast %c15_i32 : i32 to vector<256x1xi32>
    %24 = arith.cmpi slt, %20, %23 : vector<256x1xi32>
    %cst = arith.constant 0.000000e+00 : f32
    %25 = vector.broadcast %cst : f32 to vector<24x128xf32>
    %26 = tpu.concatenate %25, %3, %25 in 0 : vector<24x128xf32>, vector<256x128xf32>, vector<24x128xf32> -> vector<304x128xf32>
    %27 = vector.extract_strided_slice %26 {offsets = [7, 0], sizes = [256, 128], strides = [1, 1]} : vector<304x128xf32> to vector<256x128xf32>
    %cst_7 = arith.constant 0.000000e+00 : f32
    %28 = vector.shape_cast %22 : vector<256x1xi1> to vector<256x1xi1>
    %29 = vector.broadcast %28 : vector<256x1xi1> to vector<256x128xi1>
    %30 = vector.broadcast %cst_7 : f32 to vector<256x128xf32>
    %31 = arith.select %29, %27, %30 : vector<256x128xi1>, vector<256x128xf32>
    %32 = arith.truncf %31 : vector<256x128xf32> to vector<256x128xbf16>
    %33 = vector.extract_strided_slice %26 {offsets = [8, 0], sizes = [256, 128], strides = [1, 1]} : vector<304x128xf32> to vector<256x128xf32>
    %34 = arith.truncf %33 : vector<256x128xf32> to vector<256x128xbf16>
    %35 = vector.extract_strided_slice %26 {offsets = [9, 0], sizes = [256, 128], strides = [1, 1]} : vector<304x128xf32> to vector<256x128xf32>
    %cst_8 = arith.constant 0.000000e+00 : f32
    %36 = vector.shape_cast %24 : vector<256x1xi1> to vector<256x1xi1>
    %37 = vector.broadcast %36 : vector<256x1xi1> to vector<256x128xi1>
    %38 = vector.broadcast %cst_8 : f32 to vector<256x128xf32>
    %39 = arith.select %37, %35, %38 : vector<256x128xi1>, vector<256x128xf32>
    %40 = arith.truncf %39 : vector<256x128xf32> to vector<256x128xbf16>
    %41 = vector.extract_strided_slice %26 {offsets = [23, 0], sizes = [256, 128], strides = [1, 1]} : vector<304x128xf32> to vector<256x128xf32>
    %cst_9 = arith.constant 0.000000e+00 : f32
    %42 = vector.shape_cast %22 : vector<256x1xi1> to vector<256x1xi1>
    %43 = vector.broadcast %42 : vector<256x1xi1> to vector<256x128xi1>
    %44 = vector.broadcast %cst_9 : f32 to vector<256x128xf32>
    %45 = arith.select %43, %41, %44 : vector<256x128xi1>, vector<256x128xf32>
    %46 = arith.truncf %45 : vector<256x128xf32> to vector<256x128xbf16>
    %47 = vector.extract_strided_slice %26 {offsets = [24, 0], sizes = [256, 128], strides = [1, 1]} : vector<304x128xf32> to vector<256x128xf32>
    %48 = arith.truncf %47 : vector<256x128xf32> to vector<256x128xbf16>
    %49 = vector.extract_strided_slice %26 {offsets = [25, 0], sizes = [256, 128], strides = [1, 1]} : vector<304x128xf32> to vector<256x128xf32>
    %cst_10 = arith.constant 0.000000e+00 : f32
    %50 = vector.shape_cast %24 : vector<256x1xi1> to vector<256x1xi1>
    %51 = vector.broadcast %50 : vector<256x1xi1> to vector<256x128xi1>
    %52 = vector.broadcast %cst_10 : f32 to vector<256x128xf32>
    %53 = arith.select %51, %49, %52 : vector<256x128xi1>, vector<256x128xf32>
    %54 = arith.truncf %53 : vector<256x128xf32> to vector<256x128xbf16>
    %55 = vector.extract_strided_slice %26 {offsets = [39, 0], sizes = [256, 128], strides = [1, 1]} : vector<304x128xf32> to vector<256x128xf32>
    %cst_11 = arith.constant 0.000000e+00 : f32
    %56 = vector.shape_cast %22 : vector<256x1xi1> to vector<256x1xi1>
    %57 = vector.broadcast %56 : vector<256x1xi1> to vector<256x128xi1>
    %58 = vector.broadcast %cst_11 : f32 to vector<256x128xf32>
    %59 = arith.select %57, %55, %58 : vector<256x128xi1>, vector<256x128xf32>
    %60 = arith.truncf %59 : vector<256x128xf32> to vector<256x128xbf16>
    %61 = vector.extract_strided_slice %26 {offsets = [40, 0], sizes = [256, 128], strides = [1, 1]} : vector<304x128xf32> to vector<256x128xf32>
    %62 = arith.truncf %61 : vector<256x128xf32> to vector<256x128xbf16>
    %63 = vector.extract_strided_slice %26 {offsets = [41, 0], sizes = [256, 128], strides = [1, 1]} : vector<304x128xf32> to vector<256x128xf32>
    %cst_12 = arith.constant 0.000000e+00 : f32
    %64 = vector.shape_cast %24 : vector<256x1xi1> to vector<256x1xi1>
    %65 = vector.broadcast %64 : vector<256x1xi1> to vector<256x128xi1>
    %66 = vector.broadcast %cst_12 : f32 to vector<256x128xf32>
    %67 = arith.select %65, %63, %66 : vector<256x128xi1>, vector<256x128xf32>
    %68 = arith.truncf %67 : vector<256x128xf32> to vector<256x128xbf16>
    %69 = tpu.concatenate %32, %34, %40, %46, %48, %54, %60, %62, %68 in 1 : vector<256x128xbf16>, vector<256x128xbf16>, vector<256x128xbf16>, vector<256x128xbf16>, vector<256x128xbf16>, vector<256x128xbf16>, vector<256x128xbf16>, vector<256x128xbf16>, vector<256x128xbf16> -> vector<256x1152xbf16>
    %c0_13 = arith.constant 0 : index
    %c0_14 = arith.constant 0 : index
    %70 = vector.load %arg2[%c0_13, %c0_14] : memref<1152x128xbf16, #tpu.memory_space<vmem>>, vector<1152x128xbf16>
    %cst_15 = arith.constant dense<0.000000e+00> : vector<256x128xf32>
    %71 = tpu.matmul %69, %70, %cst_15 {dimension_numbers = #tpu.dot_dimension_numbers<[1], [0], [0], [1], [0, 0, 1, 1], [], []>} : vector<256x1152xbf16>, vector<1152x128xbf16>, vector<256x128xf32> -> vector<256x128xf32>
    %c0_16 = arith.constant 0 : index
    %c0_17 = arith.constant 0 : index
    %72 = vector.load %arg3[%c0_16, %c0_17] : memref<1x128xf32, #tpu.memory_space<vmem>>, vector<1x128xf32>
    %73 = vector.broadcast %72 : vector<1x128xf32> to vector<256x128xf32>
    %74 = arith.addf %71, %73 : vector<256x128xf32>
    %cst_18 = arith.constant 0.000000e+00 : f32
    %75 = vector.broadcast %cst_18 : f32 to vector<256x128xf32>
    %76 = arith.maximumf %74, %75 : vector<256x128xf32>
    %cst_19 = arith.constant 0.000000e+00 : f32
    %77 = vector.broadcast %cst_19 : f32 to vector<24x128xf32>
    %78 = tpu.concatenate %77, %76, %77 in 0 : vector<24x128xf32>, vector<256x128xf32>, vector<24x128xf32> -> vector<304x128xf32>
    %79 = vector.extract_strided_slice %78 {offsets = [7, 0], sizes = [256, 128], strides = [1, 1]} : vector<304x128xf32> to vector<256x128xf32>
    %cst_20 = arith.constant 0.000000e+00 : f32
    %80 = vector.shape_cast %22 : vector<256x1xi1> to vector<256x1xi1>
    %81 = vector.broadcast %80 : vector<256x1xi1> to vector<256x128xi1>
    %82 = vector.broadcast %cst_20 : f32 to vector<256x128xf32>
    %83 = arith.select %81, %79, %82 : vector<256x128xi1>, vector<256x128xf32>
    %84 = arith.truncf %83 : vector<256x128xf32> to vector<256x128xbf16>
    %85 = vector.extract_strided_slice %78 {offsets = [8, 0], sizes = [256, 128], strides = [1, 1]} : vector<304x128xf32> to vector<256x128xf32>
    %86 = arith.truncf %85 : vector<256x128xf32> to vector<256x128xbf16>
    %87 = vector.extract_strided_slice %78 {offsets = [9, 0], sizes = [256, 128], strides = [1, 1]} : vector<304x128xf32> to vector<256x128xf32>
    %cst_21 = arith.constant 0.000000e+00 : f32
    %88 = vector.shape_cast %24 : vector<256x1xi1> to vector<256x1xi1>
    %89 = vector.broadcast %88 : vector<256x1xi1> to vector<256x128xi1>
    %90 = vector.broadcast %cst_21 : f32 to vector<256x128xf32>
    %91 = arith.select %89, %87, %90 : vector<256x128xi1>, vector<256x128xf32>
    %92 = arith.truncf %91 : vector<256x128xf32> to vector<256x128xbf16>
    %93 = vector.extract_strided_slice %78 {offsets = [23, 0], sizes = [256, 128], strides = [1, 1]} : vector<304x128xf32> to vector<256x128xf32>
    %cst_22 = arith.constant 0.000000e+00 : f32
    %94 = vector.shape_cast %22 : vector<256x1xi1> to vector<256x1xi1>
    %95 = vector.broadcast %94 : vector<256x1xi1> to vector<256x128xi1>
    %96 = vector.broadcast %cst_22 : f32 to vector<256x128xf32>
    %97 = arith.select %95, %93, %96 : vector<256x128xi1>, vector<256x128xf32>
    %98 = arith.truncf %97 : vector<256x128xf32> to vector<256x128xbf16>
    %99 = vector.extract_strided_slice %78 {offsets = [24, 0], sizes = [256, 128], strides = [1, 1]} : vector<304x128xf32> to vector<256x128xf32>
    %100 = arith.truncf %99 : vector<256x128xf32> to vector<256x128xbf16>
    %101 = vector.extract_strided_slice %78 {offsets = [25, 0], sizes = [256, 128], strides = [1, 1]} : vector<304x128xf32> to vector<256x128xf32>
    %cst_23 = arith.constant 0.000000e+00 : f32
    %102 = vector.shape_cast %24 : vector<256x1xi1> to vector<256x1xi1>
    %103 = vector.broadcast %102 : vector<256x1xi1> to vector<256x128xi1>
    %104 = vector.broadcast %cst_23 : f32 to vector<256x128xf32>
    %105 = arith.select %103, %101, %104 : vector<256x128xi1>, vector<256x128xf32>
    %106 = arith.truncf %105 : vector<256x128xf32> to vector<256x128xbf16>
    %107 = vector.extract_strided_slice %78 {offsets = [39, 0], sizes = [256, 128], strides = [1, 1]} : vector<304x128xf32> to vector<256x128xf32>
    %cst_24 = arith.constant 0.000000e+00 : f32
    %108 = vector.shape_cast %22 : vector<256x1xi1> to vector<256x1xi1>
    %109 = vector.broadcast %108 : vector<256x1xi1> to vector<256x128xi1>
    %110 = vector.broadcast %cst_24 : f32 to vector<256x128xf32>
    %111 = arith.select %109, %107, %110 : vector<256x128xi1>, vector<256x128xf32>
    %112 = arith.truncf %111 : vector<256x128xf32> to vector<256x128xbf16>
    %113 = vector.extract_strided_slice %78 {offsets = [40, 0], sizes = [256, 128], strides = [1, 1]} : vector<304x128xf32> to vector<256x128xf32>
    %114 = arith.truncf %113 : vector<256x128xf32> to vector<256x128xbf16>
    %115 = vector.extract_strided_slice %78 {offsets = [41, 0], sizes = [256, 128], strides = [1, 1]} : vector<304x128xf32> to vector<256x128xf32>
    %cst_25 = arith.constant 0.000000e+00 : f32
    %116 = vector.shape_cast %24 : vector<256x1xi1> to vector<256x1xi1>
    %117 = vector.broadcast %116 : vector<256x1xi1> to vector<256x128xi1>
    %118 = vector.broadcast %cst_25 : f32 to vector<256x128xf32>
    %119 = arith.select %117, %115, %118 : vector<256x128xi1>, vector<256x128xf32>
    %120 = arith.truncf %119 : vector<256x128xf32> to vector<256x128xbf16>
    %121 = tpu.concatenate %84, %86, %92, %98, %100, %106, %112, %114, %120 in 1 : vector<256x128xbf16>, vector<256x128xbf16>, vector<256x128xbf16>, vector<256x128xbf16>, vector<256x128xbf16>, vector<256x128xbf16>, vector<256x128xbf16>, vector<256x128xbf16>, vector<256x128xbf16> -> vector<256x1152xbf16>
    %c0_26 = arith.constant 0 : index
    %c0_27 = arith.constant 0 : index
    %122 = vector.load %arg4[%c0_26, %c0_27] : memref<1152x128xbf16, #tpu.memory_space<vmem>>, vector<1152x128xbf16>
    %cst_28 = arith.constant dense<0.000000e+00> : vector<256x128xf32>
    %123 = tpu.matmul %121, %122, %cst_28 {dimension_numbers = #tpu.dot_dimension_numbers<[1], [0], [0], [1], [0, 0, 1, 1], [], []>} : vector<256x1152xbf16>, vector<1152x128xbf16>, vector<256x128xf32> -> vector<256x128xf32>
    %c0_29 = arith.constant 0 : index
    %c0_30 = arith.constant 0 : index
    %124 = vector.load %arg5[%c0_29, %c0_30] : memref<1x128xf32, #tpu.memory_space<vmem>>, vector<1x128xf32>
    %125 = vector.broadcast %124 : vector<1x128xf32> to vector<256x128xf32>
    %126 = arith.addf %123, %125 : vector<256x128xf32>
    %c0_31 = arith.constant 0 : index
    %c0_32 = arith.constant 0 : index
    %127 = vector.load %arg6[%c0_31, %c0_32] : memref<128x128xbf16, #tpu.memory_space<vmem>>, vector<128x128xbf16>
    %cst_33 = arith.constant dense<0.000000e+00> : vector<256x128xf32>
    %128 = tpu.matmul %2, %127, %cst_33 {dimension_numbers = #tpu.dot_dimension_numbers<[1], [0], [0], [1], [0, 0, 1, 1], [], []>} : vector<256x128xbf16>, vector<128x128xbf16>, vector<256x128xf32> -> vector<256x128xf32>
    %c0_34 = arith.constant 0 : index
    %c0_35 = arith.constant 0 : index
    %129 = vector.load %arg7[%c0_34, %c0_35] : memref<1x128xf32, #tpu.memory_space<vmem>>, vector<1x128xf32>
    %130 = vector.broadcast %129 : vector<1x128xf32> to vector<256x128xf32>
    %131 = arith.addf %128, %130 : vector<256x128xf32>
    %132 = arith.addf %126, %131 : vector<256x128xf32>
    %cst_36 = arith.constant 0.000000e+00 : f32
    %133 = vector.broadcast %cst_36 : f32 to vector<256x128xf32>
    %134 = arith.maximumf %132, %133 : vector<256x128xf32>
    %135 = vector.shape_cast %134 : vector<256x128xf32> to vector<1x16x16x128xf32>
    %c0_37 = arith.constant 0 : index
    %c0_38 = arith.constant 0 : index
    %c0_39 = arith.constant 0 : index
    %c0_40 = arith.constant 0 : index
    %136 = vector.load %arg8[%c0_37, %c0_38, %c0_39, %c0_40] : memref<1x16x16x128xf32, #tpu.memory_space<vmem>>, vector<1x16x16x128xf32>
    tpu.vector_store %arg8[%c0_37, %c0_38, %c0_39, %c0_40], %135 {strides = array<i32>} : memref<1x16x16x128xf32, #tpu.memory_space<vmem>>, vector<1x16x16x128xf32>,
    return
  }
  func.func @transform_0(%arg0: i32) -> (i32, i32, i32, i32) {
    %c0_i32 = arith.constant 0 : i32
    %c0_i32_0 = arith.constant 0 : i32
    %c0_i32_1 = arith.constant 0 : i32
    %c0_i32_2 = arith.constant 0 : i32
    return %arg0, %c0_i32, %c0_i32_0, %c0_i32_1 : i32, i32, i32, i32
  }
  func.func @transform_1(%arg0: i32) -> (i32, i32) {
    %c0_i32 = arith.constant 0 : i32
    %c0_i32_0 = arith.constant 0 : i32
    %c0_i32_1 = arith.constant 0 : i32
    return %c0_i32, %c0_i32_0 : i32, i32
  }
  func.func @transform_2(%arg0: i32) -> (i32, i32) {
    %c0_i32 = arith.constant 0 : i32
    %c0_i32_0 = arith.constant 0 : i32
    %c0_i32_1 = arith.constant 0 : i32
    return %c0_i32, %c0_i32_0 : i32, i32
  }
  func.func @transform_3(%arg0: i32) -> (i32, i32) {
    %c0_i32 = arith.constant 0 : i32
    %c0_i32_0 = arith.constant 0 : i32
    %c0_i32_1 = arith.constant 0 : i32
    return %c0_i32, %c0_i32_0 : i32, i32
  }
  func.func @transform_4(%arg0: i32) -> (i32, i32) {
    %c0_i32 = arith.constant 0 : i32
    %c0_i32_0 = arith.constant 0 : i32
    %c0_i32_1 = arith.constant 0 : i32
    return %c0_i32, %c0_i32_0 : i32, i32
  }
  func.func @transform_5(%arg0: i32) -> (i32, i32) {
    %c0_i32 = arith.constant 0 : i32
    %c0_i32_0 = arith.constant 0 : i32
    %c0_i32_1 = arith.constant 0 : i32
    return %c0_i32, %c0_i32_0 : i32, i32
  }
  func.func @transform_6(%arg0: i32) -> (i32, i32) {
    %c0_i32 = arith.constant 0 : i32
    %c0_i32_0 = arith.constant 0 : i32
    %c0_i32_1 = arith.constant 0 : i32
    return %c0_i32, %c0_i32_0 : i32, i32
  }
  func.func @transform_7(%arg0: i32) -> (i32, i32, i32, i32) {
    %c0_i32 = arith.constant 0 : i32
    %c0_i32_0 = arith.constant 0 : i32
    %c0_i32_1 = arith.constant 0 : i32
    %c0_i32_2 = arith.constant 0 : i32
    return %arg0, %c0_i32, %c0_i32_0, %c0_i32_1 : i32, i32, i32, i32
  }
}

</mosaic_0001>

<bundles_post_ra>
// kernel: tpu_custom_call.1
= control target key start
LH: loop header
LB: loop body
LE: loop exit
PB: predicated region body
PF: predicated region fallthrough
CT: control target
= control target key end

     0   :  { %12 = vsyncpa [#allocation3], 0  ;;  %s10634_s0 = inlined_call_operand.hbm [shape: bf16[2,16,16,128], index: 0, kind: input, shape index: {}]   ;;  %s10635_s1 = inlined_call_operand.hbm [shape: bf16[1152,128], index: 1, kind: input, shape index: {}]   ;;  %s10636_s2 = inlined_call_operand.vmem [shape: f32[1,128], index: 2, kind: input, shape index: {}]   ;;  %s10637_s3 = inlined_call_operand.hbm [shape: bf16[1152,128], index: 3, kind: input, shape index: {}]   ;;  %s10638_s4 = inlined_call_operand.vmem [shape: f32[1,128], index: 4, kind: input, shape index: {}]   ;;  %s10639_s5 = inlined_call_operand.hbm [shape: bf16[128,128], index: 5, kind: input, shape index: {}]   ;;  %s10640_s6 = inlined_call_operand.vmem [shape: f32[1,128], index: 6, kind: input, shape index: {}]   ;;  %s10641_s7 = inlined_call_operand.hbm [shape: f32[2,16,16,128], index: 7, kind: output, shape index: {}]  }
   0x1   :  { %14 = vsyncpa [#allocation3 + $0x1], 0 }
   0x2   :  { %15 = vsyncpa [#allocation6], 0 }
   0x3   :  { %16 = vsyncpa [#allocation9], 0 }
   0x4   :  { %17 = vsyncpa [#allocation4], 0 }
   0x5   :  { %19 = vsyncpa [#allocation4 + $0x1], 0  ;;  %s7948_s24 = smov 0   ;;  %s7950_s25 = smov 0  }
   0x6   :  { %s7952_s26 = smov 0   ;;  %s7954_s27 = smov 0  }
   0x7 LB: > { %s7969_s28 = sadd.s32 4294967295, %s7894_s27   ;;  %s5429_s29 = sadd.s32 4294967294, %s7894_s27   ;;  %s7894_s27 = sphi %s7954_s27, %s11388_s27   ;;  %s7890_s26 = sphi %s7952_s26, %s11387_s26   ;;  %s7886_s25 = sphi %s7950_s25, %s11386_s25   ;;  %s7882_s24 = sphi %s7948_s24, %s11385_s24  }
   0x8   : > { %p45_p0 = scmp.ne.s32.totalorder %s7886_s25, %s7882_s24  ;;  %p10642_p1 = scmp.eq.s32.totalorder %s7969_s28, 0 }
   0x9   : > { %p201_p3 = scmp.eq.s32.totalorder %s5429_s29, 1  ;;  %p5430_p5 = scmp.ge.s32.totalorder %s7894_s27, 1 }
   0xa   : > { %p7978_p4 = por %p10642_p1, %p45_p0  ;;  %p208_p7 = scmp.lt.s32.totalorder %s7894_s27, 3 }
   0xb   : > { %p7983_p6 = por %p201_p3, %p45_p0  ;;  %s7896_s10 = smov [#allocation5]  }
   0xc   : > { %s10893_s30 = scalar_select %p7978_p4, 1, 0 }
   0xd   : > { %s10894_s8 = scalar_select %p7983_p6, 1, 0 }
   0xe   : > { %p7988_p8 = pnand %p5430_p5, %p208_p7  ;;  %s220_s11 = sshll.u32 %s7896_s10, 4  ;;  %s7992_s11 = int_to_ptr.vmem [resolvable:$true] %s220_s11 }
   0xf   : > { %10895 = sst [smem:[#allocation15_spill]] %s10894_s8  ;;  %s7897_s13 = smov [#allocation7]  }
  0x10   : > { %s10896_s9 = scalar_select %p7988_p8, 1, 0 }
  0x11   : > { %p7454_p9 = pneg %p7988_p8  ;;  %s236_s14 = sshll.u32 %s7897_s13, 4  ;;  %s8003_s14 = int_to_ptr.vmem [resolvable:$true] %s236_s14 }
  0x12   : > { %s7898_s15 = smov [#allocation8]   ;;  %s7706_s19 = scalar_lea.hbm %s10635_s1, 9216 }
  0x13   : > { %p7999_p11 = pnand %p7454_p9, %p10642_p1  ;;  %s8005_s16 = sshll.u32 %s7898_s15, 4  ;;  %s253_s16 = int_to_ptr.vmem [resolvable:$true] %s8005_s16 }
  0x14   : > { %p7707_p12 = scmp.ne.s32.totalorder %s10635_s1, %s7706_s19  ;;  %p7713_p5 = scmp.lt.u32.totalorder %s7706_s19, %s10635_s1 }
  0x15   : > { %p8015_p13 = pneg %p7999_p11 }
  0x17   : > { %p7709_p0 = pnand %p8015_p13, %p7707_p12 }
  0x19   : > { %p7710_p3 = pneg %p7709_p0 }
  0x1b   : > { %p7715_p7 = pnand %p7713_p5, %p7710_p3 }
  0x1d   : > { %7718 = shalt.err (!%p7715_p7)
}
  0x1e   : > { %s7719_s10 = scalar_lea.vmem %s7992_s11, 9216  ;;  %p7727_p2 = scmp.lt.s32.totalorder %s7992_s11, %s7992_s11 }
  0x1f   : > { %p7720_p9 = scmp.ne.s32.totalorder %s7992_s11, %s7719_s10  ;;  %p7728_p6 = scmp.lt.s32.totalorder %s7719_s10, %s7719_s10 }
  0x21   : > { %p7722_p10 = pnand %p7720_p9, %p8015_p13  ;;  %p7729_p12 = por %p7728_p6, %p7727_p2 }
  0x23   : > { %p7723_p1 = pneg %p7722_p10 }
  0x25   : > { %p7730_p0 = pnand %p7729_p12, %p7723_p1 }
  0x27   : > { %7733 = shalt.err (!%p7730_p0)
}
  0x28   : > { %s7899_s13 = smov 64   ;;  %s7900_s15 = smov 4  }
  0x29   : > { %7457 = dma.hbm_to_vmem [thread:$0]  (!%p7999_p11), %s10635_s1, 9216, %s7992_s11, [#allocation6], %s7899_s13, %s7899_s13, %s7900_s15  }
  0x2a   : > { %s7734_s21 = scalar_lea.hbm %s10637_s3, 9216 }
  0x2b   : > { %p7735_p1 = scmp.ne.s32.totalorder %s10637_s3, %s7734_s21  ;;  %p7741_p10 = scmp.lt.u32.totalorder %s7734_s21, %s10637_s3 }
  0x2d   : > { %p7737_p2 = pnand %p7735_p1, %p8015_p13 }
  0x2f   : > { %p7738_p6 = pneg %p7737_p2 }
  0x31   : > { %p7743_p3 = pnand %p7741_p10, %p7738_p6 }
  0x33   : > { %7746 = shalt.err (!%p7743_p3)
}
  0x34   : > { %s7747_s11 = scalar_lea.vmem %s8003_s14, 9216  ;;  %p7755_p12 = scmp.lt.s32.totalorder %s8003_s14, %s8003_s14 }
  0x35   : > { %p7748_p5 = scmp.ne.s32.totalorder %s8003_s14, %s7747_s11  ;;  %p7756_p0 = scmp.lt.s32.totalorder %s7747_s11, %s7747_s11 }
  0x37   : > { %p7750_p7 = pnand %p7748_p5, %p8015_p13  ;;  %p7757_p1 = por %p7756_p0, %p7755_p12 }
  0x39   : > { %p7751_p9 = pneg %p7750_p7 }
  0x3b   : > { %p7758_p2 = pnand %p7757_p1, %p7751_p9 }
  0x3d   : > { %7761 = shalt.err (!%p7758_p2)
}
  0x3e   : > { %7460 = dma.hbm_to_vmem [thread:$0]  (!%p7999_p11), %s10637_s3, 9216, %s8003_s14, [#allocation6], %s7899_s13, %s7899_s13, %s7900_s15  }
  0x3f   : > { %s7762_s20 = scalar_lea.hbm %s10639_s5, 1024 }
  0x40   : > { %p7763_p6 = scmp.ne.s32.totalorder %s10639_s5, %s7762_s20  ;;  %p7769_p5 = scmp.lt.u32.totalorder %s7762_s20, %s10639_s5 }
  0x42   : > { %p7765_p10 = pnand %p7763_p6, %p8015_p13 }
  0x44   : > { %p7766_p3 = pneg %p7765_p10 }
  0x46   : > { %p7771_p7 = pnand %p7769_p5, %p7766_p3 }
  0x48   : > { %7774 = shalt.err (!%p7771_p7)
}
  0x49   : > { %s7775_s11 = scalar_lea.vmem %s253_s16, 1024  ;;  %p7783_p1 = scmp.lt.s32.totalorder %s253_s16, %s253_s16 }
  0x4a   : > { %p7776_p9 = scmp.ne.s32.totalorder %s253_s16, %s7775_s11  ;;  %p7784_p2 = scmp.lt.s32.totalorder %s7775_s11, %s7775_s11 }
  0x4c   : > { %p7778_p12 = pnand %p7776_p9, %p8015_p13  ;;  %p7785_p4 = por %p7784_p2, %p7783_p1 }
  0x4e   : > { %p7779_p0 = pneg %p7778_p12 }
  0x50   : > { %p7786_p8 = pnand %p7785_p4, %p7779_p0 }
  0x52   : > { %7789 = shalt.err (!%p7786_p8)
}
  0x53   : > { %7463 = dma.hbm_to_vmem [thread:$0]  (!%p7999_p11), %s10639_s5, 1024, %s253_s16, [#allocation9], %s7899_s13, %s7899_s13, %s7900_s15  }
  0x54   : > { %s8088_s22 = sadd.s32 1, %s7894_s27   ;;  %s32_s17 = sadd.s32 1, %s7890_s26 }
  0x55   : > { %s29_s12 = ssub.s32 %s7894_s27, %s8088_s22  ;;  %p39_p8 = scmp.ne.s32.totalorder %s7890_s26, %s7886_s25 }
  0x56   : > { %p30_p4 = scmp.eq.s32.totalorder %s29_s12, 0  ;;  %p40_p13 = scmp.eq.s32.totalorder %s7894_s27, 0 }
  0x57   : > { %p7475_p6 = scmp.lt.s32.totalorder %s7894_s27, 2  ;;  %p10899_p3 = scmp.eq.s32.totalorder %s7969_s28, 1 }
  0x58   : > { %s8098_s18 = scalar_select %p30_p4, %s7890_s26, %s32_s17  }
  0x59   : > { %p41_p10 = por %p40_p13, %p39_p8  ;;  %p8102_p5 = por %p10899_p3, %p39_p8 }
  0x5a   : > { %s269_s20 = sand.u32 1, %s7890_s26   ;;  %s6212_s21 = sshll.u32 %s7894_s27, 11 }
  0x5b   : > { %s5435_s16 = sshll.u32 %s269_s20, 7  ;;  %s8111_s10 = scalar_lea.hbm %s10634_s0, %s6212_s21 }
  0x5c   : > { %s273_s11 = scalar_lea.vmem [#allocation2], %s5435_s16  ;;  %p8113_p11 = pnand %p7475_p6, %p41_p10 }
  0x5d   : > { %s280_s14 = sshll.u32 %s273_s11, 4  ;;  %s8119_s12 = scalar_lea.sflag [#allocation3], %s269_s20  ;;  %s8117_s14 = int_to_ptr.vmem [resolvable:$true] %s280_s14 }
  0x5e   : > { %s7790_s17 = scalar_lea.hbm %s8111_s10, 2048  ;;  %p7792_p9 = pneg %p8113_p11 }
  0x5f   : > { %p7791_p7 = scmp.ne.s32.totalorder %s8111_s10, %s7790_s17  ;;  %s7795_s23 = scalar_lea.hbm %s10634_s0, 4096 }
  0x60   : > { %p7796_p1 = scmp.lt.u32.totalorder %s8111_s10, %s10634_s0  ;;  %p7797_p2 = scmp.lt.u32.totalorder %s7795_s23, %s7790_s17 }
  0x61   : > { %p7793_p12 = pnand %p7792_p9, %p7791_p7  ;;  %p7799_p8 = scmp.lt.u32.totalorder %s7790_s17, %s8111_s10 }
  0x62   : > { %p7798_p4 = por %p7797_p2, %p7796_p1 }
  0x63   : > { %p7794_p0 = pneg %p7793_p12 }
  0x64   : > { %p7800_p13 = por %p7799_p8, %p7798_p4 }
  0x66   : > { %p7801_p6 = pnand %p7800_p13, %p7794_p0 }
  0x68   : > { %7804 = shalt.err (!%p7801_p6)
}
  0x69   : > { %s7805_s20 = scalar_lea.vmem %s8117_s14, 2048  ;;  %s7901_s21 = smov [#allocation2]  }
  0x6a   : > { %p7806_p10 = scmp.ne.s32.totalorder %s8117_s14, %s7805_s20  ;;  %s7810_s16 = sshll.u32 %s7901_s21, 4  ;;  %s7811_s16 = int_to_ptr.vmem [resolvable:$false] %s7810_s16 }
  0x6b   : > { %s7812_s29 = scalar_lea.vmem %s7811_s16, 4096  ;;  %p7813_p12 = scmp.lt.s32.totalorder %s8117_s14, %s7811_s16 }
  0x6c   : > { %p7808_p3 = pnand %p7806_p10, %p7792_p9  ;;  %p7814_p1 = scmp.lt.s32.totalorder %s7812_s29, %s7805_s20 }
  0x6e   : > { %p7809_p7 = pneg %p7808_p3  ;;  %p7815_p2 = por %p7814_p1, %p7813_p12 }
  0x70   : > { %p7816_p4 = pnand %p7815_p2, %p7809_p7 }
  0x72   : > { %7819 = shalt.err (!%p7816_p4)
}
  0x73   : > { %7467 = dma.hbm_to_vmem [thread:$0]  (!%p8113_p11), %s8111_s10, 2048, %s8117_s14, %s8119_s12, %s7899_s13, %s7899_s13, %s7900_s15  }
  0x74   : > { %p10902_p9 = scmp.ne.s32.totalorder %s10896_s9, 0 }
  0x76   : > { %292 = sbr.rel (%p10902_p9) target bundleno = 1284 (0x504), region = 48 }
  0x7d   : > { %s8153_s17 = sand.u32 1, %s7886_s25   ;;  %p10903_p0 = scmp.ne.s32.totalorder %s10893_s30, 0 }
  0x7e   : > { %s5439_s23 = sshll.u32 %s8153_s17, 7  ;;  %s295_s11 = scalar_lea.sflag [#allocation3], %s8153_s17 }
  0x7f   : > { %s8157_s20 = scalar_lea.vmem [#allocation2], %s5439_s23 }
  0x80   : > { %7865 = dma.done.wait (%p10903_p0), %s295_s11, 2048  }
  0x81   : > { %7867 = vsyncadd (%p10903_p0), %s295_s11, 4294965248  ;;  %p10904_p11 = scmp.eq.s32.totalorder %s7969_s28, 0 }
  0x83   : > { %7869 = dma.done.wait (%p10904_p11), [#allocation6], 18432   ;;  %p10905_p8 = pmov %p10904_p11 }
  0x85   : > { %7871 = vsyncadd (%p10905_p8), [#allocation6], 4294948864  ;;  %p10906_p13 = pmov %p10905_p8 }
  0x86   : > { %p10907_p6 = pmov %p10905_p8 }
  0x87   : > { %7873 = dma.done.wait (%p10906_p13), [#allocation9], 1024  }
  0x88   : > { %7875 = vsyncadd (%p10907_p6), [#allocation9], 4294966272  ;;  %v10646_v0 = vmov 0.0|0.0   ;;  %v7522_v1 = vld [vmem:[#allocation5 + $0x40] sm:$0xff]   ;;  %v7524_v3 = vld [vmem:[#allocation5 + $0x48] sm:$0xff]   ;;  %v406_v12 = vlaneseq  ;;  %v10648_v28 = vmov 0.0  }
  0x89   : > { %2172 = vmatprep.mubr.bf16.mxu0 %v10646_v0  ;;  %v7523_v2 = vld [vmem:[#allocation5] sm:$0xff]   ;;  %6214 = vmatprep.subr.bf16.mxu0 %v7522_v1  ;;  %v7525_v4 = vld [vmem:[#allocation5 + $0x8] sm:$0xff]   ;;  %v7526_v5 = vld [vmem:[#allocation5 + $0x50] sm:$0xff]   ;;  %v8193_v29 = vrot.slane %v10648_v28, 7  ;;  %vm10654_vm1 = vmmov 1   ;;  %v10912_v41 = vmov 0 }
  0x8a   : > { %6215 = vmatpush3.bf16.msra.mxu0 %v7523_v2  ;;  %v7527_v6 = vld [vmem:[#allocation5 + $0x10] sm:$0xff]   ;;  %v7528_v7 = vld [vmem:[#allocation5 + $0x58] sm:$0xff]   ;;  %v7530_v9 = vld [vmem:[#allocation5 + $0x60] sm:$0xff]   ;;  %v8174_v18 = vshrl.u32 %v406_v12, 7  ;;  %vm10651_vm3 = vcmask 1040384   ;;  %vm10670_vm4 = vcmask 1046528  }
  0x8b   : > { %6216 = vmatprep.subr.bf16.mxu0 %v7524_v3  ;;  %v7529_v8 = vld [vmem:[#allocation5 + $0x18] sm:$0xff]   ;;  %v7531_v10 = vld [vmem:[#allocation5 + $0x20] sm:$0xff]   ;;  %v7532_v11 = vld [vmem:[#allocation5 + $0x68] sm:$0xff]   ;;  %10909 = vst [vmem:[#allocation17_spill] sm:$0xff] %v8193_v29  ;;  %v8209_v38 = vpack.c.bf16 %v8193_v29, %v8193_v29  ;;  %v10943_v59 = vmov 0  ;;  %v10984_v28 = vmov 0 }
  0x8c   : > { %v7538_v13 = vld [vmem:[#allocation5 + $0xc0] sm:$0xff]   ;;  %v7533_v15 = vld [vmem:[#allocation5 + $0x28] sm:$0xff]   ;;  %v7534_v17 = vld [vmem:[#allocation5 + $0x70] sm:$0xff]   ;;  %v443_v24 = vand.u32 15, %v8174_v18  ;;  %v409_v32 = vadd.s32 16, %v8174_v18  ;;  %v411_v33 = vadd.s32 32, %v8174_v18 }
  0x8d   : > { %v7539_v14 = vld [vmem:[#allocation5 + $0x80] sm:$0xff]   ;;  %7326 = vmatprep.subr.bf16.mxu1 %v7538_v13  ;;  %v8172_v16 = vld [vmem:[#allocation5 + $0xc8] sm:$0xff]   ;;  %v8179_v20 = vld [vmem:[#allocation5 + $0xd0] sm:$0xff]   ;;  %v415_v34 = vadd.s32 64, %v8174_v18  ;;  %10910 = vst [vmem:[#allocation18_spill] sm:$0xff] %v8209_v38  ;;  %v8224_v42 = vadd.s32 48, %v8174_v18 }
  0x8e   : > { %6217 = vmatpush3.bf16.msra.mxu0 %v7525_v4  ;;  %7334 = vmatpush3.bf16.msra.mxu1 %v7539_v14  ;;  %v8176_v19 = vld [vmem:[#allocation5 + $0x88] sm:$0xff]   ;;  %v8182_v21 = vld [vmem:[%s8157_s20] sm:$0xff]   ;;  %v7535_v22 = vld [vmem:[#allocation5 + $0x30] sm:$0xff]   ;;  %vm823_vm0 = vcmp.gt.s32.totalorder %v443_v24, 0  ;;  %v457_v43 = vand.u32 15, %v409_v32  ;;  %v471_v44 = vand.u32 15, %v411_v33 }
  0x8f   : > { %6218 = vmatprep.subr.bf16.mxu0 %v7526_v5  ;;  %7327 = vmatprep.subr.bf16.mxu1 %v8172_v16  ;;  %10908 = vst [vmem:[#allocation16_spill] sm:$0xff] %v8182_v21  ;;  %v7536_v23 = vld [vmem:[#allocation5 + $0x78] sm:$0xff]   ;;  %v8186_v25 = vld [vmem:[#allocation5 + $0x90] sm:$0xff]   ;;  %v374_v26 = vunpack.c.l.bf16 %v8182_v21  ;;  %v375_v30 = vunpack.c.h.bf16 %v8182_v21  ;;  %v8205_v37 = vld [vmem:[#allocation5 + $0xe0] sm:$0xff]   ;;  %v499_v46 = vand.u32 15, %v415_v34  ;;  %v8234_v49 = vadd.s32 72, %v8174_v18 }
  0x90   : > { %v8190_v27 = vld [vmem:[#allocation5 + $0xd8] sm:$0xff]   ;;  %v8216_v40 = vld [vmem:[%s8157_s20 + $0x8] sm:$0xff]   ;;  %vm8219_vm2 = vmpackc.low %vm10654_vm1, %vm823_vm0  ;;  %v8247_v53 = vadd.s32 80, %v8174_v18  ;;  %v485_v55 = vand.u32 15, %v8224_v42  ;;  %v8254_v57 = vadd.s32 88, %v8174_v18  ;;  %vm8256_vm5 = vcmp.gt.s32.totalorder %v457_v43, 0 }
  0x91   : > { %v7537_v31 = vld [vmem:[#allocation5 + $0x38] sm:$0xff]   ;;  %v985_v36 = vrot.slane %v374_v26, 7  ;;  %v8213_v39 = vrot.slane %v375_v30, 7  ;;  %10911 = vst [vmem:[#allocation19_spill] sm:$0xff] %v8216_v40  ;;  %v10913_v41 = vsel %vm8219_vm2, 4294967295, %v10912_v41  ;;  %v8227_v45 = vld [vmem:[#allocation5 + $0xa0] sm:$0xff]   ;;  %v376_v47 = vunpack.c.l.bf16 %v8216_v40  ;;  %vm8295_vm8 = vmpackc.low %vm10654_vm1, %vm8256_vm5 }
  0x92   : > { %6219 = vmatpush3.bf16.msra.mxu0 %v7527_v6  ;;  %7335 = vmatpush3.bf16.msra.mxu1 %v8176_v19  ;;  %v8200_v35 = vld [vmem:[#allocation5 + $0x98] sm:$0xff]   ;;  %10914 = vst [vmem:[#allocation20_spill] sm:$0xff] %v10913_v41  ;;  %v8231_v48 = vld [vmem:[#allocation5 + $0xe8] sm:$0xff]   ;;  %v377_v54 = vunpack.c.h.bf16 %v8216_v40  ;;  %vm8260_vm6 = vcmp.gt.s32.totalorder %v471_v44, 0  ;;  %vm8268_vm7 = vcmp.gt.s32.totalorder %v499_v46, 0  ;;  %v8273_v62 = vld [vmem:[%s8157_s20 + $0x20] sm:$0xff]  }
  0x93   : > { %6220 = vmatprep.subr.bf16.mxu0 %v7528_v7  ;;  %7328 = vmatprep.subr.bf16.mxu1 %v8179_v20  ;;  %v986_v50 = vsel %vm10651_vm3, %v8193_v29, %v985_v36  ;;  %v988_v51 = vsel %vm10651_vm3, %v985_v36, %v8213_v39  ;;  %v8244_v52 = vld [vmem:[%s8157_s20 + $0x18] sm:$0xff]   ;;  %v8266_v60 = vld [vmem:[#allocation5 + $0xa8] sm:$0xff]   ;;  %10922 = vst [vmem:[#allocation22_spill] sm:$0xff] %v8273_v62  ;;  %v989_v2 = vrot.slane %v376_v47, 7  ;;  %v8283_v3 = vld [vmem:[#allocation5 + $0xf0] sm:$0xff]   ;;  %v506_v5 = vand.u32 15, %v8234_v49 }
  0x94   : > { %10915 = vst [vmem:[#allocation21_spill] sm:$0xff] %v8244_v52  ;;  %v381_v56 = vunpack.c.h.bf16 %v8244_v52  ;;  %v8276_v63 = vld [vmem:[%s8157_s20 + $0x28] sm:$0xff]   ;;  %v8278_v1 = vpack.c.bf16 %v988_v51, %v986_v50  ;;  %v380_v4 = vunpack.c.l.bf16 %v8244_v52  ;;  %v382_v7 = vunpack.c.l.bf16 %v8273_v62  ;;  %v8328_v34 = vld [vmem:[%s8157_s20 + $0x30] sm:$0xff]   ;;  %vm8338_vm9 = vmpackc.low %vm10654_vm1, %vm8268_vm7  ;;  %s5443_s8 = sshll.u32 %s8153_s17, 8  ;;  %s6213_s21 = sshll.u32 %s7969_s28, 12 }
  0x95   : > { %10923 = vst [vmem:[#allocation23_spill] sm:$0xff] %v8276_v63  ;;  %v513_v24 = vand.u32 15, %v8247_v53  ;;  %v419_v33 = vadd.s32 96, %v8174_v18  ;;  %10929 = vst [vmem:[#allocation27_spill] sm:$0xff] %v8328_v34  ;;  %v10930_v36 = vmov 0  ;;  %v420_v44 = vadd.s32 104, %v8174_v18  ;;  %s10585_s11 = scalar_lea.hbm %s10641_s7, %s6213_s21 }
  0x96   : > { %6221 = vmatpush3.bf16.msra.mxu0 %v7529_v8  ;;  %7336 = vmatpush3.bf16.msra.mxu1 %v8186_v25  ;;  %10924 = vst [vmem:[#allocation24_spill] sm:$0xff] %v8278_v1  ;;  %v8287_v6 = vrot.slane %v381_v56, 7  ;;  %v383_v8 = vunpack.c.h.bf16 %v8273_v62  ;;  %v8306_v12 = vrot.slane %v380_v4, 1  ;;  %v10931_v36 = vsel %vm8338_vm9, 4294967295, %v10930_v36  ;;  %v8359_v53 = vld [vmem:[#allocation5 + $0xb8] sm:$0xff]   ;;  %vm8386_vm13 = vmpackc.low %vm10654_vm1, %vm8260_vm6  ;;  %s10493_s12 = scalar_lea.vmem [#allocation10], %s5443_s8 }
  0x97   : > { %6222 = vmatprep.subr.bf16.mxu0 %v7530_v9  ;;  %7329 = vmatprep.subr.bf16.mxu1 %v8190_v27  ;;  %v384_v9 = vunpack.c.l.bf16 %v8276_v63  ;;  %10932 = vst [vmem:[#allocation28_spill] sm:$0xff] %v10931_v36  ;;  %vm8354_vm10 = vcmp.gt.s32.totalorder %v485_v55, 0  ;;  %vm8361_vm11 = vcmp.lt.s32.totalorder %v506_v5, 15  ;;  %v386_v55 = vunpack.c.l.bf16 %v8328_v34  ;;  %v8422_v0 = vld [vmem:[%s8157_s20 + $0x38] sm:$0xff]   ;;  %v7596_v36 = vld [vmem:[#allocation5 + $0x1b0] sm:$0xff]   ;;  %s5327_s16 = sshll.u32 %s10493_s12, 4  ;;  %s10587_s16 = int_to_ptr.vmem [resolvable:$true] %s5327_s16 }
  0x98   : > { %vm8375_vm12 = vcmp.gt.s32.totalorder %v513_v24, 0  ;;  %v527_v24 = vand.u32 15, %v419_v33  ;;  %vm8402_vm14 = vmpackc.low %vm8361_vm11, %vm10654_vm1  ;;  %10951 = vst [vmem:[#allocation35_spill] sm:$0xff] %v8422_v0  ;;  %v421_v61 = vadd.s32 112, %v8174_v18  ;;  %v10993_v29 = vunpack.c.h.bf16 %v8422_v0  ;;  %s5314_s28 = scalar_lea.sflag [#allocation4], %s8153_s17  ;;  %s7905_s30 = smov [#allocation10]  }
  0x99   : > { %v10944_v59 = vsel %vm8402_vm14, 4294967295, %v10943_v59  ;;  %vm8413_vm15 = vmpackc.low %vm10654_vm1, %vm8375_vm12  ;;  %v435_v41 = vadd.s32 224, %v8174_v18  ;;  %s7824_s9 = sshll.u32 %s7905_s30, 4  ;;  %s7825_s9 = int_to_ptr.vmem [resolvable:$false] %s7824_s9 }
  0x9a   : > { %6223 = vmatpush3.bf16.msra.mxu0 %v7531_v10  ;;  %7337 = vmatpush3.bf16.msra.mxu1 %v8200_v35  ;;  %v10925_v10 = vmov 0  ;;  %10945 = vst [vmem:[#allocation31_spill] sm:$0xff] %v10944_v59  ;;  %vm8452_vm5 = vcmp.gt.s32.totalorder %v527_v24, 0  ;;  %v10652_v24 = vunpack.c.h.bf16 %v8422_v0  ;;  %vm8475_vm7 = vmpackc.low %vm10654_vm1, %vm8354_vm10  ;;  %s7826_s13 = scalar_lea.vmem %s7825_s9, 8192  ;;  %p7827_p12 = scmp.lt.s32.totalorder %s10587_s16, %s7825_s9 }
  0x9b   : > { %6224 = vmatprep.subr.bf16.mxu0 %v7532_v11  ;;  %7330 = vmatprep.subr.bf16.mxu1 %v8205_v37  ;;  %v10926_v10 = vsel %vm8295_vm8, 4294967295, %v10925_v10  ;;  %v8301_v11 = vrot.slane %v377_v54, 7  ;;  %vm8500_vm10 = vmpackc.low %vm10654_vm1, %vm8452_vm5 }
  0x9c   : > { %10927 = vst [vmem:[#allocation25_spill] sm:$0xff] %v10926_v10 }
  0x9d   : > { %v992_v46 = vsel %vm10651_vm3, %v989_v2, %v8301_v11 }
  0x9e   : > { %6225 = vmatpush3.bf16.msra.mxu0 %v7533_v15  ;;  %7338 = vmatpush3.bf16.msra.mxu1 %v8227_v45  ;;  %v8313_v15 = vld [vmem:[#allocation5 + $0xb0] sm:$0xff]  }
  0x9f   : > { %6226 = vmatprep.subr.bf16.mxu0 %v7534_v17  ;;  %7331 = vmatprep.subr.bf16.mxu1 %v8231_v48  ;;  %v1001_v17 = vrot.slane %v382_v7, 7 }
  0xa1   : > { %v1002_v42 = vsel %vm10651_vm3, %v8287_v6, %v1001_v17 }
  0xa2   : > { %6227 = vmatpush3.bf16.msra.mxu0 %v7535_v22  ;;  %7339 = vmatpush3.bf16.msra.mxu1 %v8266_v60  ;;  %v1003_v22 = vrot.slane %v383_v8, 7 }
  0xa3   : > { %6228 = vmatprep.subr.bf16.mxu0 %v7536_v23  ;;  %v8316_v23 = vrot.slane %v382_v7, 1  ;;  %7332 = vmatprep.subr.bf16.mxu1 %v8283_v3  ;;  %v387_v7 = vunpack.c.h.bf16 %v8328_v34 }
  0xa4   : > { %v1004_v43 = vsel %vm10651_vm3, %v1001_v17, %v1003_v22  ;;  %v520_v17 = vand.u32 15, %v8254_v57  ;;  %v10947_v57 = vmov 0 }
  0xa5   : > { %v8352_v50 = vpack.c.bf16 %v1004_v43, %v1002_v42  ;;  %v534_v42 = vand.u32 15, %v420_v44  ;;  %v10948_v57 = vsel %vm8413_vm15, 4294967295, %v10947_v57  ;;  %v1226_v44 = vrot.slane %v383_v8, 1 }
  0xa6   : > { %6229 = vmatpush3.bf16.msra.mxu0 %v7537_v31  ;;  %v1005_v31 = vrot.slane %v384_v9, 7  ;;  %7340 = vmatpush3.bf16.msra.mxu1 %v8313_v15  ;;  %10949 = vst [vmem:[#allocation33_spill] sm:$0xff] %v10948_v57  ;;  %vm8440_vm0 = vcmp.lt.s32.totalorder %v520_v17, 15  ;;  %v422_v17 = vadd.s32 120, %v8174_v18  ;;  %v7595_v57 = vld [vmem:[#allocation5 + $0x1f0] sm:$0xff]  }
  0xa7   : > { %6326 = vmatprep.subr.bf16.mxu0 %v7538_v13  ;;  %v385_v13 = vunpack.c.h.bf16 %v8276_v63  ;;  %10933 = vst [vmem:[#allocation29_spill] sm:$0xff] %v8352_v50  ;;  %5607 = vmatprep.mubr.msk.bf16.mxu1 %vm8338_vm9, %v8352_v50  ;;  %vm8462_vm6 = vcmp.lt.s32.totalorder %v534_v42, 15  ;;  %v10959_v42 = vmov 0  ;;  %vm8486_vm11 = vmpackc.low %vm8440_vm0, %vm10654_vm1 }
  0xa8   : > { %v10960_v42 = vsel %vm8475_vm7, 4294967295, %v10959_v42 }
  0xa9   : > { %5535 = vmatmul.mubr.msk.bf16.vlgmr.msra.gmra.mrb[0].mxu0 %vm8219_vm2, %v8209_v38  ;;  %v8324_v32 = vrot.slane %v385_v13, 7  ;;  %10961 = vst [vmem:[#allocation37_spill] sm:$0xff] %v10960_v42  ;;  %v8627_v38 = vld [vmem:[%s8157_s20 + $0x50] sm:$0xff]   ;;  %v8699_v42 = vld [vmem:[%s8157_s20 + $0x68] sm:$0xff]  }
  0xaa   : > { %6327 = vmatpush3.bf16.msra.mxu0 %v7539_v14  ;;  %2180 = vmatprep.mubr.bf16.mxu0 %v8182_v21  ;;  %v8310_v14 = vld [vmem:[%s8157_s20 + $0x10] sm:$0xff]   ;;  %10990 = vst [vmem:[#allocation48_spill] sm:$0xff] %v8627_v38  ;;  %11012 = vst [vmem:[#allocation54_spill] sm:$0xff] %v8699_v42 }
  0xab   : > { %6328 = vmatprep.subr.bf16.mxu0 %v8172_v16  ;;  %10928 = vst [vmem:[#allocation26_spill] sm:$0xff] %v8310_v14  ;;  %v1222_v16 = vrot.slane %v381_v56, 1  ;;  %v10649_v49 = vunpack.c.h.bf16 %v8310_v14  ;;  %v1008_v5 = vsel %vm10651_vm3, %v1005_v31, %v8324_v32  ;;  %v1009_v56 = vrot.slane %v386_v55, 7 }
  0xad   : > { %v1223_v58 = vsel %vm10670_vm4, %v8306_v12, %v1222_v16  ;;  %v8397_v43 = vrot.slane %v10649_v49, 7 }
  0xae   : > { %6329 = vmatpush3.bf16.msra.mxu0 %v8176_v19  ;;  %v8319_v19 = vld [vmem:[#allocation5 + $0xf8] sm:$0xff]  }
  0xaf   : > { %6330 = vmatprep.subr.bf16.mxu0 %v8179_v20  ;;  %v990_v20 = vsel %vm10651_vm3, %v8213_v39, %v989_v2  ;;  %v10650_v39 = vunpack.c.l.bf16 %v8310_v14  ;;  %7333 = vmatprep.subr.bf16.mxu1 %v8319_v19  ;;  %v1006_v2 = vsel %vm10651_vm3, %v1003_v22, %v1005_v31  ;;  %v7571_v22 = vld [vmem:[#allocation5 + $0x1c0] sm:$0xff]  }
  0xb0   : > { %7341 = vmatpush3.bf16.msra.mxu1 %v8359_v53  ;;  %v8417_v33 = vpack.c.bf16 %v1008_v5, %v1006_v2  ;;  %v8518_v5 = vrot.slane %v374_v26, 1  ;;  %v8534_v26 = vrot.slane %v375_v30, 1 }
  0xb1   : > { %5538 = vmatmul.mubr.msk.bf16.gmra.mrb[4].mxu0 %vm8295_vm8, %v8278_v1  ;;  %v993_v31 = vrot.slane %v10650_v39, 7  ;;  %6550 = vmatprep.subr.bf16.mxu1 %v7571_v22  ;;  %v1010_v22 = vsel %vm10651_vm3, %v8324_v32, %v1009_v56  ;;  %v7579_v32 = vld [vmem:[#allocation5 + $0x1d0] sm:$0xff]  }
  0xb2   : > { %2188 = vmatprep.mubr.bf16.mxu0 %v8216_v40  ;;  %6331 = vmatpush3.bf16.msra.mxu0 %v8186_v25  ;;  %v1225_v25 = vsel %vm10670_vm4, %v1222_v16, %v8316_v23  ;;  %v8390_v16 = vpack.c.bf16 %v992_v46, %v990_v20  ;;  %10950 = vst [vmem:[#allocation34_spill] sm:$0xff] %v8417_v33  ;;  %v8419_v46 = vrot.slane %v384_v9, 1  ;;  %10970 = vst [vmem:[#allocation42_spill] sm:$0xff] %v8518_v5 }
  0xb3   : > { %6332 = vmatprep.subr.bf16.mxu0 %v8190_v27  ;;  %v10940_v27 = vmov 0  ;;  %v8406_v20 = vpack.c.bf16 %v1225_v25, %v1223_v58  ;;  %v8427_v58 = vrot.slane %v387_v7, 7  ;;  %v7575_v25 = vld [vmem:[#allocation5 + $0x1c8] sm:$0xff]   ;;  %v994_v8 = vsel %vm10651_vm3, %v8301_v11, %v993_v31 }
  0xb4   : > { %v10941_v27 = vsel %vm8386_vm13, 4294967295, %v10940_v27  ;;  %v996_v9 = vsel %vm10651_vm3, %v993_v31, %v8397_v43  ;;  %v1227_v11 = vsel %vm10670_vm4, %v8316_v23, %v1226_v44  ;;  %v1229_v2 = vsel %vm10670_vm4, %v1226_v44, %v8419_v46  ;;  %v7576_v44 = vld [vmem:[#allocation5 + $0x188] sm:$0xff]  }
  0xb5   : > { %10942 = vst [vmem:[#allocation30_spill] sm:$0xff] %v10941_v27  ;;  %10946 = vst [vmem:[#allocation32_spill] sm:$0xff] %v8406_v20  ;;  %5610 = vmatmul.mubr.msk.bf16.vlgmr.msra.gmra.mrb[0].mxu1 %vm8402_vm14, %v8406_v20  ;;  %v1012_v31 = vsel %vm10651_vm3, %v1009_v56, %v8427_v58  ;;  %v388_v23 = vunpack.c.l.bf16 %v8422_v0  ;;  %v8469_v49 = vpack.c.bf16 %v996_v9, %v994_v8  ;;  %v997_v56 = vrot.slane %v380_v4, 7 }
  0xb6   : > { %6333 = vmatpush3.bf16.msra.mxu0 %v8200_v35  ;;  %v7572_v35 = vld [vmem:[#allocation5 + $0x180] sm:$0xff]   ;;  %5613 = vmatprep.mubr.msk.bf16.mxu1 %vm8413_vm15, %v8417_v33  ;;  %v8481_v39 = vpack.c.bf16 %v1229_v2, %v1227_v11  ;;  %v8490_v51 = vpack.c.bf16 %v1012_v31, %v1010_v22  ;;  %v8494_v8 = vrot.slane %v386_v55, 1  ;;  %v10966_v4 = vmov 0  ;;  %v7583_v2 = vld [vmem:[#allocation5 + $0x1d8] sm:$0xff]  }
  0xb7   : > { %6334 = vmatprep.subr.bf16.mxu0 %v8205_v37  ;;  %6551 = vmatpush3.bf16.msra.mxu1 %v7572_v35  ;;  %10958 = vst [vmem:[#allocation36_spill] sm:$0xff] %v8469_v49  ;;  %v10963_v35 = vmov 0  ;;  %v10967_v4 = vsel %vm8500_vm10, 4294967295, %v10966_v4  ;;  %v1013_v9 = vrot.slane %v388_v23, 7  ;;  %v8506_v37 = vrot.slane %v10652_v24, 7  ;;  %v8513_v55 = vld [vmem:[%s8157_s20 + $0x40] sm:$0xff]  }
  0xb8   : > { %6552 = vmatprep.subr.bf16.mxu1 %v7575_v25  ;;  %10962 = vst [vmem:[#allocation38_spill] sm:$0xff] %v8481_v39  ;;  %v10964_v35 = vsel %vm8486_vm11, 4294967295, %v10963_v35  ;;  %v1230_v25 = vrot.slane %v385_v13, 1  ;;  %10968 = vst [vmem:[#allocation40_spill] sm:$0xff] %v10967_v4  ;;  %v7580_v13 = vld [vmem:[#allocation5 + $0x190] sm:$0xff]   ;;  %v424_v11 = vadd.s32 136, %v8174_v18 }
  0xb9   : > { %5541 = vmatmul.mubr.msk.bf16.gmra.mrb[8].mxu0 %vm8386_vm13, %v8390_v16  ;;  %10965 = vst [vmem:[#allocation39_spill] sm:$0xff] %v10964_v35  ;;  %10969 = vst [vmem:[#allocation41_spill] sm:$0xff] %v8513_v55  ;;  %v7569_v31 = vld [vmem:[#allocation5 + $0x140] sm:$0xff]   ;;  %v1016_v30 = vsel %vm10651_vm3, %v1013_v9, %v8506_v37  ;;  %v8635_v35 = vadd.s32 168, %v8174_v18  ;;  %vm11008_vm14 = vcmask 1040384   ;;  %v8729_v27 = vadd.s32 200, %v8174_v18 }
  0xba   : > { %2196 = vmatprep.mubr.bf16.mxu0 %v8310_v14  ;;  %6335 = vmatpush3.bf16.msra.mxu0 %v8227_v45  ;;  %v423_v45 = vadd.s32 128, %v8174_v18  ;;  %v7588_v22 = vld [vmem:[#allocation5 + $0x1a0] sm:$0xff]   ;;  %v8772_v4 = vadd.s32 216, %v8174_v18 }
  0xbb   : > { %6336 = vmatprep.subr.bf16.mxu0 %v8231_v48  ;;  %v541_v48 = vand.u32 15, %v421_v61  ;;  %v548_v61 = vand.u32 15, %v422_v17  ;;  %6553 = vmatpush3.bf16.msra.mxu1 %v7576_v44  ;;  %v1000_v17 = vsel %vm10651_vm3, %v997_v56, %v8287_v6  ;;  %v1233_v6 = vsel %vm10670_vm4, %v1230_v25, %v8494_v8 }
  0xbc   : > { %6554 = vmatprep.subr.bf16.mxu1 %v7579_v32  ;;  %v1014_v44 = vsel %vm10651_vm3, %v8427_v58, %v1013_v9  ;;  %v390_v32 = vunpack.c.l.bf16 %v8513_v55 }
  0xbd   : > { %5616 = vmatmul.mubr.msk.bf16.gmra.mrb[4].mxu1 %vm8486_vm11, %v8481_v39  ;;  %vm8528_vm12 = vcmp.gt.s32.totalorder %v541_v48, 0  ;;  %vm8548_vm0 = vcmp.lt.s32.totalorder %v548_v61, 15  ;;  %v425_v61 = vadd.s32 144, %v8174_v18  ;;  %v590_v48 = vand.u32 15, %v8635_v35 }
  0xbe   : > { %6337 = vmatpush3.bf16.msra.mxu0 %v8266_v60  ;;  %v555_v60 = vand.u32 15, %v423_v45  ;;  %5619 = vmatprep.mubr.msk.bf16.mxu1 %vm8500_vm10, %v8490_v51  ;;  %v1240_v59 = vrot.slane %v390_v32, 1 }
  0xbf   : > { %6338 = vmatprep.subr.bf16.mxu0 %v8283_v3  ;;  %v998_v3 = vsel %vm10651_vm3, %v8397_v43, %v997_v56  ;;  %v1231_v43 = vsel %vm10670_vm4, %v8419_v46, %v1230_v25  ;;  %v391_v46 = vunpack.c.h.bf16 %v8513_v55  ;;  %6555 = vmatpush3.bf16.msra.mxu1 %v7580_v13  ;;  %v8557_v56 = vrot.slane %v376_v47, 1  ;;  %vm8578_vm3 = vmpackc.low %vm8462_vm6, %vm10654_vm1 }
  0xc0   : > { %v8559_v58 = vpack.c.bf16 %v1000_v17, %v998_v3  ;;  %vm8561_vm5 = vcmp.gt.s32.totalorder %v555_v60, 0  ;;  %v562_v25 = vand.u32 15, %v424_v11  ;;  %6556 = vmatprep.subr.bf16.mxu1 %v7583_v2  ;;  %v8565_v9 = vpack.c.bf16 %v1233_v6, %v1231_v43  ;;  %v8587_v3 = vld [vmem:[%s8157_s20 + $0x48] sm:$0xff]   ;;  %vm8597_vm6 = vmpackc.low %vm10654_vm1, %vm8528_vm12 }
  0xc1   : > { %5544 = vmatmul.mubr.msk.bf16.gmra.mrb[12].mxu0 %vm8475_vm7, %v8469_v49  ;;  %v8573_v13 = vrot.slane %v377_v54, 1  ;;  %v10979_v47 = vmov 0  ;;  %v8582_v60 = vpack.c.bf16 %v1016_v30, %v1014_v44  ;;  %v1234_v11 = vrot.slane %v387_v7, 1  ;;  %10982 = vst [vmem:[#allocation46_spill] sm:$0xff] %v8587_v3  ;;  %v7587_v7 = vld [vmem:[#allocation5 + $0x1e0] sm:$0xff]  }
  0xc2   : > { %2204 = vmatprep.mubr.bf16.mxu0 %v8244_v52  ;;  %6339 = vmatpush3.bf16.msra.mxu0 %v8313_v15  ;;  %v7584_v15 = vld [vmem:[#allocation5 + $0x198] sm:$0xff]   ;;  %10975 = vst [vmem:[#allocation43_spill] sm:$0xff] %v8559_v58  ;;  %10978 = vst [vmem:[#allocation44_spill] sm:$0xff] %v8565_v9  ;;  %v10980_v47 = vsel %vm8578_vm3, 4294967295, %v10979_v47  ;;  %v1236_v2 = vrot.slane %v388_v23, 1  ;;  %v10983_v54 = vunpack.c.l.bf16 %v8310_v14  ;;  %v10985_v28 = vsel %vm8597_vm6, 4294967295, %v10984_v28 }
  0xc3   : > { %6340 = vmatprep.subr.bf16.mxu0 %v8319_v19  ;;  %v8569_v19 = vadd.s32 152, %v8174_v18  ;;  %10981 = vst [vmem:[#allocation45_spill] sm:$0xff] %v10980_v47  ;;  %10986 = vst [vmem:[#allocation47_spill] sm:$0xff] %v10985_v28  ;;  %v1017_v43 = vrot.slane %v390_v32, 7  ;;  %v1019_v6 = vrot.slane %v391_v46, 7  ;;  %6557 = vmatpush3.bf16.msra.mxu1 %v7584_v15  ;;  %v10987_v23 = vunpack.c.h.bf16 %v8310_v14 }
  0xc4   : > { %v8592_v17 = vrot.slane %v10983_v54, 1  ;;  %vm8612_vm12 = vcmp.lt.s32.totalorder %v562_v25, 15  ;;  %v569_v44 = vand.u32 15, %v425_v61  ;;  %v392_v30 = vunpack.c.l.bf16 %v8587_v3  ;;  %6558 = vmatprep.subr.bf16.mxu1 %v7587_v7 }
  0xc5   : > { %5622 = vmatmul.mubr.msk.bf16.gmra.mrb[8].mxu1 %vm8578_vm3, %v8565_v9  ;;  %v576_v15 = vand.u32 15, %v8569_v19  ;;  %v1235_v54 = vsel %vm10670_vm4, %v8494_v8, %v1234_v11  ;;  %v393_v24 = vunpack.c.h.bf16 %v8587_v3  ;;  %v427_v25 = vadd.s32 160, %v8174_v18  ;;  %v8638_v8 = vld [vmem:[%s8157_s20 + $0x58] sm:$0xff]  }
  0xc6   : > { %6341 = vmatpush3.bf16.msra.mxu0 %v8359_v53  ;;  %v8603_v53 = vrot.slane %v10987_v23, 1  ;;  %5625 = vmatprep.mubr.msk.bf16.mxu1 %vm8597_vm6, %v8582_v60  ;;  %v1237_v23 = vsel %vm10670_vm4, %v1234_v11, %v1236_v2  ;;  %vm10991_vm1 = vcmask 1040384   ;;  %v1238_v47 = vrot.slane %v10993_v29, 1  ;;  %10994 = vst [vmem:[#allocation49_spill] sm:$0xff] %v8638_v8  ;;  %v7591_v11 = vld [vmem:[#allocation5 + $0x1e8] sm:$0xff]  }
  0xc7   : > { %6438 = vmatprep.subr.bf16.mxu0 %v7569_v31  ;;  %v1018_v61 = vsel %vm10991_vm1, %v8506_v37, %v1017_v43  ;;  %vm10992_vm3 = vmmov %vm10991_vm1  ;;  %6559 = vmatpush3.bf16.msra.mxu1 %v7588_v22  ;;  %v8640_v9 = vpack.c.bf16 %v1237_v23, %v1235_v54  ;;  %v1021_v39 = vrot.slane %v392_v30, 7  ;;  %vm10996_vm4 = vmmov 1   ;;  %v7592_v54 = vld [vmem:[#allocation5 + $0x1a8] sm:$0xff]  }
  0xc8   : > { %v1020_v19 = vsel %vm10992_vm3, %v1017_v43, %v1019_v6  ;;  %6560 = vmatprep.subr.bf16.mxu1 %v7591_v11  ;;  %vm8645_vm1 = vmpackc.low %vm8548_vm0, %vm10996_vm4  ;;  %v10997_v37 = vmov 0  ;;  %v1023_v43 = vrot.slane %v393_v24, 7  ;;  %v394_v7 = vunpack.c.l.bf16 %v8627_v38 }
  0xc9   : > { %5547 = vmatmul.mubr.msk.bf16.gmra.mrb[16].mxu0 %vm8338_vm9, %v8559_v58  ;;  %10995 = vst [vmem:[#allocation50_spill] sm:$0xff] %v8640_v9  ;;  %v10998_v37 = vsel %vm8645_vm1, 4294967295, %v10997_v37  ;;  %v8649_v29 = vpack.c.bf16 %v1020_v19, %v1018_v61  ;;  %v395_v22 = vunpack.c.h.bf16 %v8627_v38  ;;  %vm8656_vm3 = vmpackc.low %vm10996_vm4, %vm8561_vm5  ;;  %v11000_v32 = vmov 0 }
  0xca   : > { %2212 = vmatprep.mubr.bf16.mxu0 %v8273_v62  ;;  %10999 = vst [vmem:[#allocation51_spill] sm:$0xff] %v10998_v37  ;;  %v11001_v32 = vsel %vm8656_vm3, 4294967295, %v11000_v32  ;;  %vm8660_vm0 = vcmp.gt.s32.totalorder %v569_v44, 0  ;;  %v1242_v23 = vrot.slane %v391_v46, 1  ;;  %v583_v61 = vand.u32 15, %v427_v25  ;;  %v8675_v44 = vld [vmem:[%s8157_s20 + $0x60] sm:$0xff]  }
  0xcb   : > { %11002 = vst [vmem:[#allocation52_spill] sm:$0xff] %v11001_v32  ;;  %v429_v19 = vadd.s32 176, %v8174_v18  ;;  %v8668_v11 = vrot.slane %v392_v30, 1  ;;  %v8671_v20 = vrot.slane %v393_v24, 1  ;;  %v396_v21 = vunpack.c.l.bf16 %v8638_v8  ;;  %11005 = vst [vmem:[#allocation53_spill] sm:$0xff] %v8675_v44  ;;  %6561 = vmatpush3.bf16.msra.mxu1 %v7592_v54 }
  0xcc   : > { %vm11006_vm5 = vcmask 1046528   ;;  %v1022_v24 = vsel %vm11008_vm14, %v1019_v6, %v1021_v39  ;;  %v1025_v25 = vrot.slane %v394_v7, 7  ;;  %v8688_v54 = vrot.slane %v395_v22, 7  ;;  %6562 = vmatprep.subr.bf16.mxu1 %v7595_v57 }
  0xcd   : > { %5628 = vmatmul.mubr.msk.bf16.gmra.mrb[12].mxu1 %vm8645_vm1, %v8640_v9  ;;  %v1239_v46 = vsel %vm11006_vm5, %v1236_v2, %v1238_v47  ;;  %vm11007_vm11 = vmmov %vm11006_vm5  ;;  %vm8690_vm9 = vcmp.lt.s32.totalorder %v576_v15, 15  ;;  %v8694_v2 = vrot.slane %v394_v7, 1  ;;  %v397_v9 = vunpack.c.h.bf16 %v8638_v8 }
  0xce   : > { %v1241_v30 = vsel %vm11007_vm11, %v1238_v47, %v1240_v59  ;;  %5631 = vmatprep.mubr.msk.bf16.mxu1 %vm8656_vm3, %v8649_v29  ;;  %v597_v47 = vand.u32 15, %v429_v19  ;;  %v8712_v15 = vrot.slane %v396_v21, 7  ;;  %v8714_v7 = vrot.slane %v395_v22, 1  ;;  %vm8723_vm11 = vmpackc.low %vm10996_vm4, %vm8660_vm0 }
  0xcf   : > { %v431_v19 = vadd.s32 192, %v8174_v18  ;;  %v8718_v62 = vpack.c.bf16 %v1241_v30, %v1239_v46  ;;  %v11019_v31 = vmov 0  ;;  %v8732_v22 = vadd.s32 208, %v8174_v18  ;;  %6563 = vmatpush3.bf16.msra.mxu1 %v7596_v36 }
  0xd0   : > { %v11020_v31 = vsel %vm8723_vm11, 4294967295, %v11019_v31  ;;  %v1245_v45 = vsel %vm11006_vm5, %v1242_v23, %v8668_v11  ;;  %v400_v46 = vunpack.c.l.bf16 %v8699_v42  ;;  %vm11023_vm0 = vcmask 1040384  }
  0xd1   : > { %5550 = vmatmul.mubr.msk.bf16.gmra.mrb[20].mxu0 %vm8413_vm15, %v8352_v50  ;;  %vm11009_vm15 = vmmov %vm11008_vm14  ;;  %v398_v50 = vunpack.c.l.bf16 %v8675_v44  ;;  %11018 = vst [vmem:[#allocation56_spill] sm:$0xff] %v8718_v62  ;;  %v1026_v30 = vsel %vm11023_vm0, %v1023_v43, %v1025_v25  ;;  %vm8743_vm7 = vcmp.lt.s32.totalorder %v590_v48, 15  ;;  %v8747_v36 = vrot.slane %v396_v21, 1 }
  0xd2   : > { %2220 = vmatprep.mubr.bf16.mxu0 %v8276_v63  ;;  %v1024_v35 = vsel %vm11009_vm15, %v1021_v39, %v1023_v43  ;;  %v430_v63 = vadd.s32 184, %v8174_v18  ;;  %vm8704_vm14 = vmpackc.low %vm8612_vm12, %vm10996_vm4  ;;  %v11013_v39 = vmov 0  ;;  %vm8708_vm15 = vcmp.gt.s32.totalorder %v583_v61, 0  ;;  %11021 = vst [vmem:[#allocation57_spill] sm:$0xff] %v11020_v31 }
  0xd3   : > { %v11014_v39 = vsel %vm8704_vm14, 4294967295, %v11013_v39  ;;  %v399_v61 = vunpack.c.h.bf16 %v8675_v44  ;;  %v8734_v58 = vpack.c.bf16 %v1024_v35, %v1022_v24  ;;  %vm11022_vm12 = vmmov %vm11006_vm5  ;;  %v7599_v24 = vld [vmem:[#allocation5 + $0x1f8] sm:$0xff]   ;;  %v8756_v43 = vrot.slane %v397_v9, 7 }
  0xd4   : > { %11015 = vst [vmem:[#allocation55_spill] sm:$0xff] %v11014_v39  ;;  %v1243_v57 = vsel %vm11022_vm12, %v1240_v59, %v1242_v23  ;;  %vm11024_vm1 = vmmov %vm11023_vm0  ;;  %v604_v49 = vand.u32 15, %v430_v63  ;;  %v7600_v59 = vld [vmem:[#allocation5 + $0x1b8] sm:$0xff]   ;;  %vm8752_vm12 = vcmp.gt.s32.totalorder %v597_v47, 0  ;;  %v611_v48 = vand.u32 15, %v431_v19  ;;  %v8775_v19 = vld [vmem:[%s8157_s20 + $0x70] sm:$0xff]   ;;  %6564 = vmatprep.subr.bf16.mxu1 %v7599_v24 }
  0xd5   : > { %v1028_v52 = vsel %vm11024_vm1, %v1025_v25, %v8688_v54  ;;  %v8758_v35 = vrot.slane %v398_v50, 7  ;;  %v8760_v25 = vrot.slane %v397_v9, 1  ;;  %5634 = vmatmul.mubr.msk.bf16.gmra.mrb[16].mxu1 %vm8704_vm14, %v8718_v62  ;;  %v8766_v21 = vrot.slane %v399_v61, 7  ;;  %11029 = vst [vmem:[#allocation58_spill] sm:$0xff] %v8775_v19  ;;  %vm11033_vm0 = vmmov %vm11006_vm5 }
  0xd6   : > { %v8768_v63 = vrot.slane %v398_v50, 1  ;;  %v401_v47 = vunpack.c.h.bf16 %v8699_v42  ;;  %5637 = vmatprep.mubr.msk.bf16.mxu1 %vm8723_vm11, %v8734_v58  ;;  %v618_v9 = vand.u32 15, %v8729_v27  ;;  %v625_v39 = vand.u32 15, %v8732_v22  ;;  %6565 = vmatpush3.bf16.msra.mxu1 %v7600_v59  ;;  %vm11041_vm13 = vmmov %vm11033_vm0 }
  0xd7   : > { %v8782_v62 = vrot.slane %v400_v46, 7  ;;  %v8784_v50 = vrot.slane %v399_v61, 1  ;;  %vm8790_vm1 = vcmp.lt.s32.totalorder %v604_v49, 15  ;;  %v8794_v14 = vrot.slane %v400_v46, 1  ;;  %v8800_v61 = vld [vmem:[%s8157_s20 + $0x78] sm:$0xff]   ;;  %s7820_s20 = scalar_lea.vmem %s10587_s16, 4096 }
  0xd8   : > { %v402_v27 = vunpack.c.l.bf16 %v8775_v19  ;;  %v403_v22 = vunpack.c.h.bf16 %v8775_v19  ;;  %11032 = vst [vmem:[#allocation59_spill] sm:$0xff] %v8800_v61  ;;  %v1213_v49 = vsel %vm11033_vm0, %v8534_v26, %v8557_v56  ;;  %vm8808_vm14 = vcmp.gt.s32.totalorder %v611_v48, 0  ;;  %p7821_p10 = scmp.ne.s32.totalorder %s10587_s16, %s7820_s20  ;;  %p7828_p1 = scmp.lt.s32.totalorder %s7826_s13, %s7820_s20 }
  0xd9   : > { %5553 = vmatmul.mubr.msk.bf16.gmra.mrb[24].mxu0 %vm8500_vm10, %v8417_v33  ;;  %v8788_v33 = vpack.c.bf16 %v1028_v52, %v1026_v30  ;;  %v1211_v52 = vsel %vm11006_vm5, %v8518_v5, %v8534_v26  ;;  %v632_v46 = vand.u32 15, %v8772_v4  ;;  %v436_v30 = vadd.s32 232, %v8174_v18  ;;  %vm8821_vm5 = vmpackc.low %vm8690_vm9, %vm10996_vm4 }
  0xda   : > { %2228 = vmatprep.mubr.bf16.mxu0 %v8328_v34  ;;  %v8786_v34 = vpack.c.bf16 %v1245_v45, %v1243_v57  ;;  %v8812_v45 = vrot.slane %v401_v47, 7  ;;  %v8816_v24 = vpack.c.bf16 %v1213_v49, %v1211_v52  ;;  %v11037_v59 = vmov 0  ;;  %vm11040_vm10 = vmmov %vm11033_vm0  ;;  %p7822_p3 = pnand %p7821_p10, %p8102_p5  ;;  %p7829_p2 = por %p7828_p1, %p7827_p12 }
  0xdb   : > { %v11038_v59 = vsel %vm8821_vm5, 4294967295, %v11037_v59  ;;  %v8826_v26 = vadd.s32 240, %v8174_v18  ;;  %v1215_v48 = vsel %vm11033_vm0, %v8557_v56, %v8573_v13  ;;  %v1217_v4 = vsel %vm11040_vm10, %v8573_v13, %v8592_v17  ;;  %vm8840_vm9 = vmpackc.low %vm10996_vm4, %vm8708_vm15 }
  0xdc   : > { %11036 = vst [vmem:[#allocation60_spill] sm:$0xff] %v8816_v24  ;;  %11039 = vst [vmem:[#allocation61_spill] sm:$0xff] %v11038_v59  ;;  %v1219_v52 = vsel %vm11041_vm13, %v8592_v17, %v8603_v53  ;;  %v11042_v37 = vmov 0  ;;  %v639_v49 = vand.u32 15, %v435_v41  ;;  %v404_v24 = vunpack.c.l.bf16 %v8800_v61  ;;  %p7823_p7 = pneg %p7822_p3 }
  0xdd   : > { %v11043_v37 = vsel %vm8840_vm9, 4294967295, %v11042_v37  ;;  %v8845_v5 = vpack.c.bf16 %v1217_v4, %v1215_v48  ;;  %v1221_v56 = vsel %vm11033_vm0, %v8603_v53, %v8306_v12  ;;  %v8853_v13 = vrot.slane %v402_v27, 7  ;;  %5640 = vmatmul.mubr.msk.bf16.gmra.mrb[20].mxu1 %vm8821_vm5, %v8786_v34  ;;  %vm11045_vm13 = vmmov %vm11033_vm0 }
  0xde   : > { %11044 = vst [vmem:[#allocation62_spill] sm:$0xff] %v11043_v37  ;;  %v8855_v17 = vrot.slane %v403_v22, 7  ;;  %v8857_v6 = vpack.c.bf16 %v1221_v56, %v1219_v52  ;;  %v8863_v41 = vrot.slane %v401_v47, 1  ;;  %v8865_v48 = vrot.slane %v402_v27, 1  ;;  %5643 = vmatprep.mubr.msk.bf16.mxu1 %vm8840_vm9, %v8788_v33  ;;  %vm11046_vm10 = vmmov %vm11033_vm0  ;;  %p7830_p4 = pnand %p7829_p2, %p7823_p7 }
  0xdf   : > { %v1247_v12 = vsel %vm11045_vm13, %v8668_v11, %v8671_v20  ;;  %v1249_v53 = vsel %vm11046_vm10, %v8671_v20, %v8694_v2  ;;  %vm8879_vm15 = vmpackc.low %vm8743_vm7, %vm10996_vm4  ;;  %v11047_v47 = vmov 0  ;;  %v646_v27 = vand.u32 15, %v436_v30  ;;  %v11110_v11 = vld [vmem:[#allocation26_spill] sm:$0xff] }
  0xe0   : > { %v11048_v47 = vsel %vm8879_vm15, 4294967295, %v11047_v47  ;;  %v653_v4 = vand.u32 15, %v8826_v26  ;;  %vm8887_vm0 = vmpackc.low %vm10996_vm4, %vm8752_vm12  ;;  %v11050_v52 = vmov 0  ;;  %vm11053_vm13 = vcmask 1040384  }
  0xe1   : > { %5556 = vmatmul.mubr.msk.bf16.gmra.mrb[28].mxu0 %vm8597_vm6, %v8490_v51  ;;  %11049 = vst [vmem:[#allocation63_spill] sm:$0xff] %v11048_v47  ;;  %v11051_v52 = vsel %vm8887_vm0, 4294967295, %v11050_v52  ;;  %v1030_v20 = vsel %vm11053_vm13, %v8688_v54, %v8712_v15  ;;  %vm11054_vm7 = vmmov %vm11053_vm13  ;;  %vm8897_vm10 = vcmp.lt.s32.totalorder %v618_v9, 15  ;;  %v1351_v30 = vrot.slane %v404_v24, 7 }
  0xe2   : > { %2236 = vmatprep.mubr.bf16.mxu0 %v8422_v0  ;;  %11052 = vst [vmem:[#allocation64_spill] sm:$0xff] %v11051_v52  ;;  %v1032_v10 = vsel %vm11054_vm7, %v8712_v15, %v8756_v43  ;;  %v438_v23 = vadd.s32 248, %v8174_v18  ;;  %vm8902_vm5 = vcmp.gt.s32.totalorder %v625_v39, 0  ;;  %v8906_v56 = vpack.c.bf16 %v1249_v53, %v1247_v12  ;;  %vm8913_vm12 = vmpackc.low %vm8790_vm1, %vm10996_vm4 }
  0xe3   : > { %v8908_v59 = vpack.c.bf16 %v1032_v10, %v1030_v20  ;;  %v11059_v54 = vmov 0  ;;  %vm8923_vm13 = vmpackc.low %vm10996_vm4, %vm8808_vm14  ;;  %v11062_v39 = vmov 0  ;;  %v1266_v15 = vrot.slane %v403_v22, 1 }
  0xe4   : > { %v11060_v54 = vsel %vm8913_vm12, 4294967295, %v11059_v54  ;;  %v11063_v39 = vsel %vm8923_vm13, 4294967295, %v11062_v39  ;;  %v8927_v9 = vrot.slane %v404_v24, 1  ;;  %vm11066_vm1 = vcmask 1046528  }
  0xe5   : > { %11061 = vst [vmem:[#allocation65_spill] sm:$0xff] %v11060_v54  ;;  %11064 = vst [vmem:[#allocation66_spill] sm:$0xff] %v11063_v39  ;;  %5646 = vmatmul.mubr.msk.bf16.gmra.mrb[24].mxu1 %vm8879_vm15, %v8906_v56  ;;  %v1251_v1 = vsel %vm11066_vm1, %v8694_v2, %v8714_v7  ;;  %v1034_v57 = vsel %vm11054_vm7, %v8756_v43, %v8758_v35  ;;  %vm8948_vm15 = vcmp.lt.s32.totalorder %v632_v46, 15  ;;  %vm8954_vm6 = vcmp.gt.s32.totalorder %v639_v49, 0 }
  0xe6   : > { %11065 = vst [vmem:[#allocation67_spill] sm:$0xff] %v8927_v9  ;;  %5649 = vmatprep.mubr.msk.bf16.mxu1 %vm8887_vm0, %v8908_v59  ;;  %vm11067_vm14 = vmmov %vm11066_vm1  ;;  %v11076_v43 = vmov 0  ;;  %v1040_v10 = vsel %vm11054_vm7, %v8782_v62, %v8812_v45 }
  0xe7   : > { %v1253_v22 = vsel %vm11067_vm14, %v8714_v7, %v8747_v36  ;;  %vm8963_vm1 = vmpackc.low %vm8897_vm10, %vm10996_vm4  ;;  %v11073_v7 = vmov 0 }
  0xe8   : > { %v8952_v53 = vpack.c.bf16 %v1253_v22, %v1251_v1  ;;  %v11074_v7 = vsel %vm8963_vm1, 4294967295, %v11073_v7  ;;  %v1042_v22 = vsel %vm11054_vm7, %v8812_v45, %v8853_v13  ;;  %v11098_v45 = vmov 0 }
  0xe9   : > { %5559 = vmatmul.mubr.msk.bf16.gmra.mrb[32].mxu0 %vm8656_vm3, %v8582_v60  ;;  %vm11068_vm3 = vmmov %vm11054_vm7  ;;  %11075 = vst [vmem:[#allocation68_spill] sm:$0xff] %v11074_v7 }
  0xea   : > { %2244 = vmatprep.mubr.bf16.mxu0 %v8513_v55  ;;  %v1036_v24 = vsel %vm11068_vm3, %v8758_v35, %v8766_v21  ;;  %vm8970_vm3 = vmpackc.low %vm10996_vm4, %vm8902_vm5 }
  0xeb   : > { %v8958_v20 = vpack.c.bf16 %v1036_v24, %v1034_v57  ;;  %v11077_v43 = vsel %vm8970_vm3, 4294967295, %v11076_v43  ;;  %vm11079_vm5 = vmmov %vm11067_vm14 }
  0xec   : > { %11078 = vst [vmem:[#allocation69_spill] sm:$0xff] %v11077_v43  ;;  %v1255_v35 = vsel %vm11079_vm5, %v8747_v36, %v8760_v25  ;;  %vm11080_vm10 = vmmov %vm11079_vm5  ;;  %v11084_v36 = vmov 0 }
  0xed   : > { %5652 = vmatmul.mubr.msk.bf16.gmra.mrb[28].mxu1 %vm8913_vm12, %v8952_v53  ;;  %v1257_v46 = vsel %vm11080_vm10, %v8760_v25, %v8768_v63  ;;  %vm11081_vm14 = vmmov %vm11054_vm7  ;;  %vm8996_vm12 = vcmp.lt.s32.totalorder %v646_v27, 15  ;;  %v11111_v25 = vmov 0.0  }
  0xee   : > { %5655 = vmatprep.mubr.msk.bf16.mxu1 %vm8923_vm13, %v8958_v20  ;;  %v1038_v49 = vsel %vm11081_vm14, %v8766_v21, %v8782_v62  ;;  %v9000_v26 = vpack.c.bf16 %v1257_v46, %v1255_v35  ;;  %vm9007_vm5 = vmpackc.low %vm8948_vm15, %vm10996_vm4  ;;  %v11087_v62 = vmov 0  ;;  %vm9021_vm14 = vcmp.gt.s32.totalorder %v653_v4, 0 }
  0xef   : > { %v9002_v1 = vpack.c.bf16 %v1040_v10, %v1038_v49  ;;  %v11085_v36 = vsel %vm9007_vm5, 4294967295, %v11084_v36  ;;  %vm9017_vm10 = vmpackc.low %vm10996_vm4, %vm8954_vm6  ;;  %v660_v21 = vand.u32 15, %v438_v23  ;;  %vm11092_vm6 = vcmask 1046528  }
  0xf0   : > { %11086 = vst [vmem:[#allocation70_spill] sm:$0xff] %v11085_v36  ;;  %v11088_v62 = vsel %vm9017_vm10, 4294967295, %v11087_v62  ;;  %v1259_v27 = vsel %vm11092_vm6, %v8768_v63, %v8784_v50  ;;  %vm11093_vm15 = vmmov %vm11092_vm6  ;;  %v10750_v23 = vunpack.c.h.bf16 %v8800_v61  ;;  %v11095_v63 = vmov 0 }
  0xf1   : > { %5562 = vmatmul.mubr.msk.bf16.gmra.mrb[36].mxu0 %vm8723_vm11, %v8649_v29  ;;  %11089 = vst [vmem:[#allocation71_spill] sm:$0xff] %v11088_v62  ;;  %v1261_v4 = vsel %vm11093_vm15, %v8784_v50, %v8794_v14  ;;  %vm9052_vm6 = vmpackc.low %vm8996_vm12, %vm10996_vm4  ;;  %vm886_vm15 = vcmp.lt.s32.totalorder %v660_v21, 15  ;;  %vm11101_vm12 = vcmask 1046528   ;;  %v1352_v35 = vsel %vm11054_vm7, %v8855_v17, %v1351_v30 }
  0xf2   : > { %2252 = vmatprep.mubr.bf16.mxu0 %v8587_v3  ;;  %v9045_v24 = vpack.c.bf16 %v1261_v4, %v1259_v27  ;;  %v11096_v63 = vsel %vm9052_vm6, 4294967295, %v11095_v63  ;;  %v9058_v50 = vrot.slane %v10750_v23, 7  ;;  %v9130_v21 = vrot.slane %v11111_v25, 1  ;;  %v11113_v4 = vld [vmem:[#allocation42_spill] sm:$0xff]  ;;  %v7573_v25 = vld [vmem:[#allocation5 + $0x148] sm:$0xff]   ;;  %v11121_v23 = vld [vmem:[#allocation43_spill] sm:$0xff] }
  0xf3   : > { %11097 = vst [vmem:[#allocation72_spill] sm:$0xff] %v11096_v63 }
  0xf4   : > { %11112 = vst [vmem:[#allocation75_spill] sm:$0xff] %v9130_v21 }
  0xf5   : > { %5658 = vmatmul.mubr.msk.bf16.gmra.mrb[32].mxu1 %vm8963_vm1, %v9000_v26  ;;  %vm11094_vm1 = vmmov %vm11054_vm7 }
  0xf6   : > { %5661 = vmatprep.mubr.msk.bf16.mxu1 %vm8970_vm3, %v9002_v1  ;;  %v1044_v57 = vsel %vm11094_vm1, %v8853_v13, %v8855_v17  ;;  %vm9063_vm1 = vmpackc.low %vm10996_vm4, %vm9021_vm14  ;;  %v1263_v13 = vsel %vm11101_vm12, %v8794_v14, %v8863_v41  ;;  %v11104_v14 = vmov 0 }
  0xf7   : > { %v9047_v12 = vpack.c.bf16 %v1044_v57, %v1042_v22  ;;  %v11099_v45 = vsel %vm9063_vm1, 4294967295, %v11098_v45  ;;  %vm11102_vm14 = vmmov %vm11101_vm12  ;;  %v11115_v57 = vld [vmem:[#allocation24_spill] sm:$0xff] }
  0xf8   : > { %11100 = vst [vmem:[#allocation73_spill] sm:$0xff] %v11099_v45  ;;  %v1265_v2 = vsel %vm11102_vm14, %v8863_v41, %v8865_v48  ;;  %vm9095_vm12 = vmpackc.low %vm886_vm15, %vm10996_vm4 }
  0xf9   : > { %5565 = vmatmul.mubr.msk.bf16.gmra.mrb[40].mxu0 %vm8840_vm9, %v8734_v58  ;;  %v9087_v49 = vpack.c.bf16 %v1265_v2, %v1263_v13  ;;  %v11105_v14 = vsel %vm9095_vm12, 4294967295, %v11104_v14  ;;  %v11116_v13 = vld [vmem:[#allocation36_spill] sm:$0xff]  ;;  %v414_v2 = vadd.s32 56, %v8174_v18 }
  0xfa   : > { %2260 = vmatprep.mubr.bf16.mxu0 %v8627_v38  ;;  %11106 = vst [vmem:[#allocation74_spill] sm:$0xff] %v11105_v14  ;;  %v11124_v14 = vld [vmem:[#allocation22_spill] sm:$0xff] }
  0xfd   : > { %5664 = vmatmul.mubr.msk.bf16.gmra.mrb[36].mxu1 %vm9007_vm5, %v9045_v24 }
  0xfe   : > { %5667 = vmatprep.mubr.msk.bf16.mxu1 %vm9017_vm10, %v9047_v12 }
 0x101   : > { %5568 = vmatmul.mubr.msk.bf16.gmra.mrb[44].mxu0 %vm8887_vm0, %v8788_v33  ;;  %vm11103_vm0 = vmmov %vm11054_vm7 }
 0x102   : > { %2268 = vmatprep.mubr.bf16.mxu0 %v8638_v8  ;;  %v1354_v46 = vsel %vm11103_vm0, %v1351_v30, %v9058_v50  ;;  %vm11107_vm0 = vmmov %vm11102_vm14 }
 0x103   : > { %v9089_v10 = vpack.c.bf16 %v1354_v46, %v1352_v35  ;;  %v1267_v17 = vsel %vm11107_vm0, %v8865_v48, %v1266_v15  ;;  %vm11108_vm14 = vmmov %vm11107_vm0  ;;  %v410_v35 = vadd.s32 24, %v8174_v18  ;;  %v11118_v46 = vld [vmem:[#allocation21_spill] sm:$0xff]  ;;  %v11122_v48 = vld [vmem:[#allocation30_spill] sm:$0xff] }
 0x104   : > { %v1269_v41 = vsel %vm11108_vm14, %v1266_v15, %v8927_v9  ;;  %v408_v15 = vadd.s32 8, %v8174_v18  ;;  %vm11114_vm15 = vmmov %vm11107_vm0  ;;  %v11130_v9 = vld [vmem:[#allocation37_spill] sm:$0xff] }
 0x105   : > { %5670 = vmatmul.mubr.msk.bf16.gmra.mrb[40].mxu1 %vm9052_vm6, %v9087_v49  ;;  %v9110_v30 = vpack.c.bf16 %v1269_v41, %v1267_v17  ;;  %v1209_v22 = vsel %vm11114_vm15, %v9130_v21, %v11113_v4  ;;  %v464_v4 = vand.u32 15, %v410_v35  ;;  %vm11123_vm15 = vnez %v11122_v48  ;;  %v7597_v48 = vld [vmem:[#allocation5 + $0x178] sm:$0xff]  }
 0x106   : > { %5673 = vmatprep.mubr.msk.bf16.mxu1 %vm9063_vm1, %v9089_v10  ;;  %v450_v27 = vand.u32 15, %v408_v15  ;;  %v5585_v17 = vpack.c.bf16 %v1209_v22, %v9130_v21  ;;  %v7570_v15 = vld [vmem:[#allocation5 + $0x100] sm:$0xff]   ;;  %v412_v22 = vadd.s32 40, %v8174_v18  ;;  %v11125_v35 = vmov 0  ;;  %v11129_v21 = vld [vmem:[#allocation29_spill] sm:$0xff] }
 0x107   : > { %vm858_vm14 = vcmp.lt.s32.totalorder %v464_v4, 15  ;;  %v7582_v4 = vld [vmem:[#allocation5 + $0x118] sm:$0xff]   ;;  %v7590_v18 = vld [vmem:[#allocation5 + $0x128] sm:$0xff]  }
 0x108   : > { %vm856_vm7 = vcmp.lt.s32.totalorder %v450_v27, 15  ;;  %v7577_v27 = vld [vmem:[#allocation5 + $0x150] sm:$0xff]  }
 0x109   : > { %5571 = vmatmul.mubr.msk.bf16.gmra.mrb[48].mxu0 %vm8923_vm13, %v8908_v59  ;;  %vm9148_vm0 = vmpackc.low %vm856_vm7, %vm10996_vm4 }
 0x10a   : > { %2276 = vmatprep.mubr.bf16.mxu0 %v8675_v44  ;;  %vm9163_vm7 = vmpackc.low %vm858_vm14, %vm10996_vm4  ;;  %vm11131_vm14 = vnez %v11130_v9 }
 0x10b   : > { %v11126_v35 = vsel %vm9163_vm7, 4294967295, %v11125_v35 }
 0x10c   : > { %11127 = vst [vmem:[#allocation42_spill] sm:$0xff] %v11126_v35 }
 0x10d   : > { %5676 = vmatmul.mubr.msk.bf16.gmra.mrb[44].mxu1 %vm9095_vm12, %v9110_v30 }
 0x10e   : > { %2655 = vmatprep.mubr.bf16.mxu1 %v8216_v40 }
 0x111   : > { %5574 = vmatmul.mubr.msk.bf16.gmra.mrb[52].mxu0 %vm8970_vm3, %v8958_v20 }
 0x112   : > { %2284 = vmatprep.mubr.bf16.mxu0 %v8699_v42 }
 0x115   : > { %5727 = vmatmul.mubr.msk.bf16.vlgmr.msra.gmra.mrb[48].mxu1 %vm8219_vm2, %v8390_v16 }
 0x116   : > { %2663 = vmatprep.mubr.bf16.mxu1 %v11110_v11 }
 0x119   : > { %5577 = vmatmul.mubr.msk.bf16.gmra.mrb[56].mxu0 %vm9017_vm10, %v9002_v1 }
 0x11a   : > { %2292 = vmatprep.mubr.bf16.mxu0 %v8775_v19 }
 0x11d   : > { %5730 = vmatmul.mubr.msk.bf16.gmra.mrb[52].mxu1 %vm8295_vm8, %v11116_v13 }
 0x11e   : > { %2671 = vmatprep.mubr.bf16.mxu1 %v11118_v46 }
 0x121   : > { %5580 = vmatmul.mubr.msk.bf16.gmra.mrb[60].mxu0 %vm9063_vm1, %v9047_v12 }
 0x122   : > { %5583 = vmatprep.mubr.msk.bf16.mxu0 %vm8219_vm2, %v11115_v57  ;;  %v7574_v57 = vld [vmem:[#allocation5 + $0x108] sm:$0xff]  }
 0x125   : > { %5733 = vmatmul.mubr.msk.bf16.gmra.mrb[56].mxu1 %vm11123_vm15, %v11121_v23 }
 0x126   : > { %2679 = vmatprep.mubr.bf16.mxu1 %v11124_v14 }
 0x129   : > { %5586 = vmatmul.mubr.msk.bf16.vlgmr.msra.gmra.mrb[64].mxu0 %vm9148_vm0, %v5585_v17  ;;  %v7578_v17 = vld [vmem:[#allocation5 + $0x110] sm:$0xff]  }
 0x12a   : > { %6439 = vmatpush3.bf16.msra.mxu0 %v7570_v15  ;;  %5589 = vmatprep.mubr.msk.bf16.mxu0 %vm8295_vm8, %v8390_v16  ;;  %v7581_v16 = vld [vmem:[#allocation5 + $0x158] sm:$0xff]   ;;  %v478_v15 = vand.u32 15, %v412_v22  ;;  %v11133_v22 = vmov 0 }
 0x12b   : > { %6440 = vmatprep.subr.bf16.mxu0 %v7573_v25  ;;  %v11128_v25 = vld [vmem:[#allocation60_spill] sm:$0xff] }
 0x12c   : > { %vm860_vm8 = vcmp.lt.s32.totalorder %v478_v15, 15  ;;  %v11136_v15 = vld [vmem:[#allocation34_spill] sm:$0xff] }
 0x12d   : > { %5736 = vmatmul.mubr.msk.bf16.gmra.mrb[60].mxu1 %vm11131_vm14, %v11129_v21  ;;  %vm9179_vm2 = vmpackc.low %vm860_vm8, %vm10996_vm4  ;;  %v7593_v21 = vld [vmem:[#allocation5 + $0x170] sm:$0xff]  }
 0x12e   : > { %6441 = vmatpush3.bf16.msra.mxu0 %v7574_v57  ;;  %v7585_v57 = vld [vmem:[#allocation5 + $0x160] sm:$0xff]   ;;  %v11134_v22 = vsel %vm9179_vm2, 4294967295, %v11133_v22 }
 0x12f   : > { %6442 = vmatprep.subr.bf16.mxu0 %v7577_v27  ;;  %v11132_v27 = vld [vmem:[#allocation23_spill] sm:$0xff]  ;;  %11135 = vst [vmem:[#allocation24_spill] sm:$0xff] %v11134_v22 }
 0x130   : > { %2687 = vmatprep.mubr.bf16.mxu1 %v11132_v27 }
 0x131   : > { %5592 = vmatmul.mubr.msk.bf16.gmra.mrb[68].mxu0 %vm9163_vm7, %v11128_v25 }
 0x132   : > { %6443 = vmatpush3.bf16.msra.mxu0 %v7578_v17  ;;  %5595 = vmatprep.mubr.msk.bf16.mxu0 %vm11123_vm15, %v11116_v13  ;;  %v7586_v17 = vld [vmem:[#allocation5 + $0x120] sm:$0xff]   ;;  %v7589_v13 = vld [vmem:[#allocation5 + $0x168] sm:$0xff]  }
 0x133   : > { %6444 = vmatprep.subr.bf16.mxu0 %v7581_v16  ;;  %v492_v16 = vand.u32 15, %v414_v2  ;;  %v11140_v2 = vmov 0 }
 0x135   : > { %vm862_vm15 = vcmp.lt.s32.totalorder %v492_v16, 15  ;;  %v11143_v16 = vld [vmem:[#allocation33_spill] sm:$0xff] }
 0x136   : > { %6445 = vmatpush3.bf16.msra.mxu0 %v7582_v4  ;;  %v11137_v4 = vld [vmem:[#allocation28_spill] sm:$0xff]  ;;  %vm9194_vm12 = vmpackc.low %vm862_vm15, %vm10996_vm4  ;;  %vm11144_vm4 = vnez %v11143_v16 }
 0x137   : > { %6446 = vmatprep.subr.bf16.mxu0 %v7585_v57  ;;  %vm11138_vm8 = vnez %v11137_v4  ;;  %v11139_v57 = vld [vmem:[#allocation27_spill] sm:$0xff]  ;;  %v11141_v2 = vsel %vm9194_vm12, 4294967295, %v11140_v2 }
 0x138   : > { %5739 = vmatmul.mubr.msk.bf16.gmra.mrb[64].mxu1 %vm11138_vm8, %v11136_v15  ;;  %11142 = vst [vmem:[#allocation36_spill] sm:$0xff] %v11141_v2  ;;  %v7605_v15 = vld [vmem:[#allocation5 + $0x220] sm:$0xff]   ;;  %vm11160_vm8 = vnez %v11051_v52 }
 0x139   : > { %5598 = vmatmul.mubr.msk.bf16.gmra.mrb[72].mxu0 %vm9179_vm2, %v8845_v5  ;;  %2695 = vmatprep.mubr.bf16.mxu1 %v11139_v57 }
 0x13a   : > { %6447 = vmatpush3.bf16.msra.mxu0 %v7586_v17  ;;  %5601 = vmatprep.mubr.msk.bf16.mxu0 %vm11131_vm14, %v11121_v23  ;;  %v7594_v17 = vld [vmem:[#allocation5 + $0x130] sm:$0xff]   ;;  %v7598_v23 = vld [vmem:[#allocation5 + $0x138] sm:$0xff]  }
 0x13b   : > { %6448 = vmatprep.subr.bf16.mxu0 %v7589_v13  ;;  %v7601_v13 = vld [vmem:[#allocation5 + $0x200] sm:$0xff]  }
 0x13e   : > { %6449 = vmatpush3.bf16.msra.mxu0 %v7590_v18  ;;  %v7602_v18 = vld [vmem:[#allocation5 + $0x208] sm:$0xff]  }
 0x13f   : > { %6450 = vmatprep.subr.bf16.mxu0 %v7593_v21  ;;  %v11145_v21 = vld [vmem:[#allocation16_spill] sm:$0xff] }
 0x140   : > { %5742 = vmatmul.mubr.msk.bf16.gmra.mrb[68].mxu1 %vm11144_vm4, %v8490_v51  ;;  %v7604_v51 = vld [vmem:[#allocation5 + $0x218] sm:$0xff]   ;;  %vm11148_vm4 = vnez %v10985_v28 }
 0x141   : > { %5604 = vmatmul.mubr.msk.bf16.gmra.mrb[76].mxu0 %vm9194_vm12, %v8857_v6  ;;  %2703 = vmatprep.mubr.bf16.mxu1 %v8422_v0 }
 0x142   : > { %6451 = vmatpush3.bf16.msra.mxu0 %v7594_v17  ;;  %5679 = vmatprep.mubr.msk.bf16.mxu0 %vm9148_vm0, %v11128_v25  ;;  %v7603_v25 = vld [vmem:[#allocation5 + $0x210] sm:$0xff]   ;;  %v11149_v17 = vld [vmem:[#allocation32_spill] sm:$0xff] }
 0x143   : > { %6452 = vmatprep.subr.bf16.mxu0 %v7597_v48  ;;  %v11146_v48 = vld [vmem:[#allocation40_spill] sm:$0xff] }
 0x144   : > { %vm11147_vm15 = vnez %v11146_v48 }
 0x146   : > { %6453 = vmatpush3.bf16.msra.mxu0 %v7598_v23  ;;  %v7607_v23 = vld [vmem:[#allocation5 + $0x230] sm:$0xff]  }
 0x147   : > { %7182 = vmatprep.subr.bf16.mxu0 %v7601_v13 }
 0x148   : > { %5745 = vmatmul.mubr.msk.bf16.gmra.mrb[72].mxu1 %vm11147_vm15, %v8582_v60  ;;  %v7606_v60 = vld [vmem:[#allocation5 + $0x228] sm:$0xff]   ;;  %vm11150_vm15 = vnez %v11001_v32 }
 0x149   : > { %2495 = vmatmul.mubr.bf16.vlgmr.msra.gmra.mrb[80].mxu0 %v11145_v21  ;;  %2711 = vmatprep.mubr.bf16.mxu1 %v8513_v55 }
 0x14a   : > { %7183 = vmatpush3.bf16.msra.mxu0 %v7601_v13  ;;  %5682 = vmatprep.mubr.msk.bf16.mxu0 %vm9163_vm7, %v8845_v5  ;;  %v11151_v13 = vld [vmem:[#allocation38_spill] sm:$0xff] }
 0x14b   : > { %7184 = vmatprep.subr.bf16.mxu0 %v7602_v18 }
 0x14e   : > { %7185 = vmatpush3.bf16.msra.mxu0 %v7602_v18  ;;  %v11152_v18 = vld [vmem:[#allocation31_spill] sm:$0xff] }
 0x14f   : > { %7186 = vmatprep.subr.bf16.mxu0 %v7603_v25 }
 0x150   : > { %5748 = vmatmul.mubr.msk.bf16.gmra.mrb[76].mxu1 %vm11148_vm4, %v8649_v29  ;;  %v7608_v29 = vld [vmem:[#allocation5 + $0x238] sm:$0xff]   ;;  %vm11153_vm4 = vnez %v11152_v18 }
 0x151   : > { %2503 = vmatmul.mubr.bf16.gmra.mrb[84].mxu0 %v8216_v40  ;;  %2719 = vmatprep.mubr.bf16.mxu1 %v8587_v3  ;;  %v11169_v40 = vld [vmem:[#allocation17_spill] sm:$0xff] }
 0x152   : > { %5685 = vmatprep.mubr.msk.bf16.mxu0 %vm9179_vm2, %v8857_v6  ;;  %7187 = vmatpush3.bf16.msra.mxu0 %v7603_v25  ;;  %v11155_v25 = vld [vmem:[#allocation39_spill] sm:$0xff] }
 0x153   : > { %7188 = vmatprep.subr.bf16.mxu0 %v7604_v51 }
 0x156   : > { %7189 = vmatpush3.bf16.msra.mxu0 %v7604_v51  ;;  %v11157_v51 = vld [vmem:[#allocation50_spill] sm:$0xff] }
 0x157   : > { %7190 = vmatprep.subr.bf16.mxu0 %v7605_v15 }
 0x158   : > { %5751 = vmatmul.mubr.msk.bf16.gmra.mrb[80].mxu1 %vm11150_vm15, %v8734_v58  ;;  %v11154_v58 = vld [vmem:[#allocation44_spill] sm:$0xff]  ;;  %vm11156_vm15 = vnez %v11155_v25 }
 0x159   : > { %2511 = vmatmul.mubr.bf16.gmra.mrb[88].mxu0 %v11110_v11  ;;  %2727 = vmatprep.mubr.bf16.mxu1 %v8627_v38 }
 0x15a   : > { %5688 = vmatprep.mubr.msk.bf16.mxu0 %vm9194_vm12, %v11149_v17  ;;  %7191 = vmatpush3.bf16.msra.mxu0 %v7605_v15  ;;  %v11161_v15 = vld [vmem:[#allocation56_spill] sm:$0xff] }
 0x15b   : > { %7192 = vmatprep.subr.bf16.mxu0 %v7606_v60 }
 0x15e   : > { %7193 = vmatpush3.bf16.msra.mxu0 %v7606_v60  ;;  %v11162_v60 = vld [vmem:[#allocation51_spill] sm:$0xff] }
 0x15f   : > { %7194 = vmatprep.subr.bf16.mxu0 %v7607_v23  ;;  %vm11163_vm14 = vnez %v11162_v60  ;;  %v11193_v60 = vld [vmem:[#allocation20_spill] sm:$0xff] }
 0x160   : > { %5754 = vmatmul.mubr.msk.bf16.gmra.mrb[84].mxu1 %vm8723_vm11, %v8788_v33  ;;  %v11158_v33 = vld [vmem:[#allocation45_spill] sm:$0xff] }
 0x161   : > { %2519 = vmatmul.mubr.bf16.gmra.mrb[92].mxu0 %v11118_v46  ;;  %2735 = vmatprep.mubr.bf16.mxu1 %v8638_v8  ;;  %vm11159_vm11 = vnez %v11158_v33 }
 0x162   : > { %5691 = vmatprep.mubr.msk.bf16.mxu0 %vm11153_vm4, %v11151_v13  ;;  %7195 = vmatpush3.bf16.msra.mxu0 %v7607_v23 }
 0x163   : > { %7196 = vmatprep.subr.bf16.mxu0 %v7608_v29 }
 0x166   : > { %7197 = vmatpush3.bf16.msra.mxu0 %v7608_v29 }
 0x168   : > { %5757 = vmatmul.mubr.msk.bf16.gmra.mrb[88].mxu1 %vm8840_vm9, %v8908_v59  ;;  %vm11183_vm9 = vcmask 1046528  }
 0x169   : > { %2527 = vmatmul.mubr.bf16.gmra.mrb[96].mxu0 %v11124_v14  ;;  %2743 = vmatprep.mubr.bf16.mxu1 %v8675_v44 }
 0x16a   : > { %5694 = vmatprep.mubr.msk.bf16.mxu0 %vm11156_vm15, %v11154_v58 }
 0x170   : > { %5760 = vmatmul.mubr.msk.bf16.gmra.mrb[92].mxu1 %vm11160_vm8, %v8958_v20 }
 0x171   : > { %2535 = vmatmul.mubr.bf16.gmra.mrb[100].mxu0 %v11132_v27  ;;  %2751 = vmatprep.mubr.bf16.mxu1 %v8699_v42 }
 0x172   : > { %5697 = vmatprep.mubr.msk.bf16.mxu0 %vm11159_vm11, %v11157_v51 }
 0x178   : > { %5763 = vmatmul.mubr.msk.bf16.gmra.mrb[96].mxu1 %vm8923_vm13, %v9002_v1 }
 0x179   : > { %2543 = vmatmul.mubr.bf16.gmra.mrb[104].mxu0 %v11139_v57  ;;  %2759 = vmatprep.mubr.bf16.mxu1 %v8775_v19  ;;  %v11164_v57 = vld [vmem:[#allocation55_spill] sm:$0xff] }
 0x17a   : > { %5700 = vmatprep.mubr.msk.bf16.mxu0 %vm11163_vm14, %v11161_v15  ;;  %vm11165_vm8 = vnez %v11164_v57  ;;  %v11192_v57 = vld [vmem:[#allocation18_spill] sm:$0xff] }
 0x17c   : > { %v6230_v59 = vpop.f32.mrb[0].mxu0 }
 0x17d   : > { %v6231_v23 = vpop.f32.mrb[1].mxu0 }
 0x17e   : > { %v9264_v29 = vadd.f32 %v6231_v23, %v6230_v59  ;;  %v6233_v27 = vpop.f32.mrb[2].mxu0 }
 0x17f   : > { %v6234_v20 = vpop.f32.mrb[3].mxu0 }
 0x180   : > { %v9266_v14 = vadd.f32 %v6234_v20, %v6233_v27  ;;  %5766 = vmatmul.mubr.msk.bf16.gmra.mrb[100].mxu1 %vm8970_vm3, %v9047_v12  ;;  %v11166_v20 = vld [vmem:[#allocation61_spill] sm:$0xff]  ;;  %vm11170_vm3 = vcmask 1040384  }
 0x181   : > { %2551 = vmatmul.mubr.bf16.gmra.mrb[108].mxu0 %v8422_v0  ;;  %2767 = vmatprep.mubr.bf16.mxu1 %v8800_v61  ;;  %vm11167_vm13 = vnez %v11166_v20  ;;  %v11168_v0 = vmov 0.0|0.0   ;;  %v7634_v20 = vld [vmem:[#allocation7 + $0xe0] sm:$0xff]  }
 0x182   : > { %5703 = vmatprep.mubr.msk.bf16.mxu0 %vm11165_vm8, %v8786_v34 }
 0x184   : > { %v6236_v1 = vpop.f32.mrb[4].mxu0 }
 0x185   : > { %v6237_v46 = vpop.f32.mrb[5].mxu0 }
 0x186   : > { %v9276_v59 = vadd.f32 %v6237_v46, %v6236_v1  ;;  %v6239_v23 = vpop.f32.mrb[6].mxu0  ;;  %v1459_v46 = vsel %vm11170_vm3, %v9058_v50, %v11169_v40  ;;  %vm11171_vm3 = vnez %v11048_v47 }
 0x187   : > { %v6240_v11 = vpop.f32.mrb[7].mxu0  ;;  %v5771_v37 = vpack.c.bf16 %v11169_v40, %v1459_v46 }
 0x188   : > { %v9278_v27 = vadd.f32 %v6240_v11, %v6239_v23  ;;  %5769 = vmatmul.mubr.msk.bf16.gmra.mrb[104].mxu1 %vm9017_vm10, %v9089_v10  ;;  %v6366_v11 = vpop.f32.mrb[0].mxu1  ;;  %vm11175_vm10 = vnez %v11074_v7 }
 0x189   : > { %2559 = vmatmul.mubr.bf16.gmra.mrb[112].mxu0 %v8513_v55  ;;  %2775 = vmatprep.mubr.bf16.mxu1 %v11168_v0  ;;  %v6367_v21 = vpop.f32.mrb[1].mxu1 }
 0x18a   : > { %5706 = vmatprep.mubr.msk.bf16.mxu0 %vm11167_vm13, %v8906_v56  ;;  %v6368_v39 = vadd.f32 %v6367_v21, %v6366_v11  ;;  %v6369_v52 = vpop.f32.mrb[2].mxu1 }
 0x18b   : > { %v6370_v10 = vpop.f32.mrb[3].mxu1 }
 0x18c   : > { %v6242_v12 = vpop.f32.mrb[8].mxu0  ;;  %v6371_v31 = vadd.f32 %v6370_v10, %v6369_v52 }
 0x18d   : > { %v6243_v1 = vpop.f32.mrb[9].mxu0 }
 0x18e   : > { %v9291_v23 = vadd.f32 %v6243_v1, %v6242_v12  ;;  %v6245_v55 = vpop.f32.mrb[10].mxu0 }
 0x18f   : > { %v6246_v43 = vpop.f32.mrb[11].mxu0 }
 0x190   : > { %v9294_v62 = vadd.f32 %v6246_v43, %v6245_v55  ;;  %5772 = vmatmul.mubr.msk.bf16.gmra.mrb[108].mxu1 %vm9063_vm1, %v5771_v37  ;;  %v6372_v12 = vpop.f32.mrb[4].mxu1  ;;  %vm11174_vm1 = vnez %v11060_v54  ;;  %v7631_v54 = vld [vmem:[#allocation7 + $0x90] sm:$0xff]  }
 0x191   : > { %2567 = vmatmul.mubr.bf16.gmra.mrb[116].mxu0 %v8587_v3  ;;  %4116 = vmatprep.mubr.bf16.mxu1 %v11168_v0  ;;  %v6373_v43 = vpop.f32.mrb[5].mxu1 }
 0x192   : > { %5709 = vmatprep.mubr.msk.bf16.mxu0 %vm11171_vm3, %v8952_v53  ;;  %v6374_v11 = vadd.f32 %v6373_v43, %v6372_v12  ;;  %v6375_v3 = vpop.f32.mrb[6].mxu1  ;;  %v9314_v12 = vld [vmem:[%s10636_s2] ss:$0 sm:$0xff] }
 0x193   : > { %v6376_v10 = vpop.f32.mrb[7].mxu1 }
 0x194   : > { %v6248_v50 = vpop.f32.mrb[12].mxu0  ;;  %v6377_v32 = vadd.f32 %v6376_v10, %v6375_v3 }
 0x195   : > { %v6249_v21 = vpop.f32.mrb[13].mxu0 }
 0x196   : > { %v9303_v1 = vadd.f32 %v6249_v21, %v6248_v50  ;;  %v6251_v55 = vpop.f32.mrb[14].mxu0 }
 0x197   : > { %v6252_v46 = vpop.f32.mrb[15].mxu0 }
 0x198   : > { %11172 = vst [vmem:[#allocation43_spill] sm:$0xff] %v9303_v1  ;;  %v9305_v52 = vadd.f32 %v6252_v46, %v6251_v55  ;;  %v6378_v45 = vpop.f32.mrb[8].mxu1 }
 0x199   : > { %2575 = vmatmul.mubr.bf16.gmra.mrb[120].mxu0 %v8627_v38  ;;  %v6379_v28 = vpop.f32.mrb[9].mxu1 }
 0x19a   : > { %11173 = vst [vmem:[#allocation60_spill] sm:$0xff] %v9305_v52  ;;  %5712 = vmatprep.mubr.msk.bf16.mxu0 %vm11174_vm1, %v9000_v26  ;;  %v6380_v43 = vadd.f32 %v6379_v28, %v6378_v45  ;;  %v6381_v46 = vpop.f32.mrb[10].mxu1 }
 0x19b   : > { %v6382_v38 = vpop.f32.mrb[11].mxu1 }
 0x19c   : > { %v6254_v37 = vpop.f32.mrb[16].mxu0  ;;  %v6383_v48 = vadd.f32 %v6382_v38, %v6381_v46 }
 0x19d   : > { %v6255_v0 = vpop.f32.mrb[17].mxu0 }
 0x19e   : > { %v6256_v50 = vadd.f32 %v6255_v0, %v6254_v37  ;;  %v6257_v21 = vpop.f32.mrb[18].mxu0  ;;  %v7610_v0 = vld [vmem:[#allocation7 + $0x40] sm:$0xff]  }
 0x19f   : > { %v6258_v55 = vpop.f32.mrb[19].mxu0  ;;  %v7611_v37 = vld [vmem:[#allocation7] sm:$0xff]   ;;  %6686 = vmatprep.subr.bf16.mxu1 %v7610_v0 }
 0x1a0   : > { %v2207_v3 = vadd.f32 %v6256_v50, %v9314_v12  ;;  %v6259_v10 = vadd.f32 %v6258_v55, %v6257_v21  ;;  %v6384_v50 = vpop.f32.mrb[12].mxu1  ;;  %6687 = vmatpush3.bf16.msra.mxu1 %v7611_v37 }
 0x1a1   : > { %2583 = vmatmul.mubr.bf16.gmra.mrb[124].mxu0 %v8638_v8  ;;  %v6385_v38 = vpop.f32.mrb[13].mxu1 }
 0x1a2   : > { %v2210_v16 = vadd.f32 %v6259_v10, %v9314_v12  ;;  %5715 = vmatprep.mubr.msk.bf16.mxu0 %vm11175_vm10, %v9045_v24  ;;  %v9322_v4 = vadd.f32 %v6368_v39, %v2207_v3  ;;  %v6386_v10 = vadd.f32 %v6385_v38, %v6384_v50  ;;  %v6387_v8 = vpop.f32.mrb[14].mxu1 }
 0x1a3   : > { %v6388_v1 = vpop.f32.mrb[15].mxu1 }
 0x1a4   : > { %11176 = vst [vmem:[#allocation29_spill] sm:$0xff] %v9322_v4  ;;  %v6260_v9 = vpop.f32.mrb[20].mxu0  ;;  %v9324_v28 = vadd.f32 %v6371_v31, %v2210_v16  ;;  %v6389_v39 = vadd.f32 %v6388_v1, %v6387_v8  ;;  %v11180_v8 = vunpack.c.h.bf16 %v8800_v61 }
 0x1a5   : > { %v6261_v45 = vpop.f32.mrb[21].mxu0 }
 0x1a6   : > { %11177 = vst [vmem:[#allocation34_spill] sm:$0xff] %v9324_v28  ;;  %v6262_v21 = vadd.f32 %v6261_v45, %v6260_v9  ;;  %v6263_v55 = vpop.f32.mrb[22].mxu0  ;;  %v1406_v1 = vrot.slane %v11180_v8, 1 }
 0x1a7   : > { %v6264_v46 = vpop.f32.mrb[23].mxu0 }
 0x1a8   : > { %v2215_v40 = vadd.f32 %v6262_v21, %v9314_v12  ;;  %v6265_v52 = vadd.f32 %v6264_v46, %v6263_v55  ;;  %v6390_v37 = vpop.f32.mrb[16].mxu1 }
 0x1a9   : > { %2591 = vmatmul.mubr.bf16.gmra.mrb[128].mxu0 %v8675_v44  ;;  %v6391_v21 = vpop.f32.mrb[17].mxu1 }
 0x1aa   : > { %v2218_v3 = vadd.f32 %v6265_v52, %v9314_v12  ;;  %5718 = vmatprep.mubr.msk.bf16.mxu0 %vm9007_vm5, %v9087_v49  ;;  %v9332_v31 = vadd.f32 %v6374_v11, %v2215_v40  ;;  %v6392_v38 = vadd.f32 %v6391_v21, %v6390_v37  ;;  %v6393_v46 = vpop.f32.mrb[18].mxu1  ;;  %v7612_v11 = vld [vmem:[#allocation7 + $0x48] sm:$0xff]   ;;  %v11184_v21 = vld [vmem:[#allocation75_spill] sm:$0xff]  ;;  %vm11185_vm5 = vmmov %vm11183_vm9 }
 0x1ab   : > { %v6394_v28 = vpop.f32.mrb[19].mxu1  ;;  %6688 = vmatprep.subr.bf16.mxu1 %v7612_v11 }
 0x1ac   : > { %11178 = vst [vmem:[#allocation32_spill] sm:$0xff] %v9332_v31  ;;  %v6266_v9 = vpop.f32.mrb[24].mxu0  ;;  %v9334_v16 = vadd.f32 %v6377_v32, %v2218_v3  ;;  %v6395_v40 = vadd.f32 %v6394_v28, %v6393_v46  ;;  %v7613_v3 = vld [vmem:[#allocation7 + $0x8] sm:$0xff]  }
 0x1ad   : > { %v6267_v0 = vpop.f32.mrb[25].mxu0  ;;  %6689 = vmatpush3.bf16.msra.mxu1 %v7613_v3 }
 0x1ae   : > { %11179 = vst [vmem:[#allocation38_spill] sm:$0xff] %v9334_v16  ;;  %v6268_v45 = vadd.f32 %v6267_v0, %v6266_v9  ;;  %v6269_v50 = vpop.f32.mrb[26].mxu0  ;;  %v11182_v0 = vld [vmem:[#allocation67_spill] sm:$0xff] }
 0x1af   : > { %v6270_v55 = vpop.f32.mrb[27].mxu0  ;;  %v1407_v37 = vsel %vm11183_vm9, %v11182_v0, %v1406_v1 }
 0x1b0   : > { %v2223_v52 = vadd.f32 %v6268_v45, %v9314_v12  ;;  %v6271_v44 = vadd.f32 %v6270_v55, %v6269_v50  ;;  %v1408_v45 = vsel %vm11185_vm5, %v1406_v1, %v11184_v21  ;;  %vm11188_vm5 = vnez %v11085_v36 }
 0x1b1   : > { %2599 = vmatmul.mubr.bf16.gmra.mrb[132].mxu0 %v8699_v42  ;;  %v9352_v42 = vpack.c.bf16 %v1408_v45, %v1407_v37 }
 0x1b2   : > { %v2226_v32 = vadd.f32 %v6271_v44, %v9314_v12  ;;  %5721 = vmatprep.mubr.msk.bf16.mxu0 %vm9052_vm6, %v9110_v30  ;;  %v9344_v9 = vadd.f32 %v6380_v43, %v2223_v52  ;;  %v6396_v44 = vpop.f32.mrb[20].mxu1 }
 0x1b3   : > { %v6397_v16 = vpop.f32.mrb[21].mxu1 }
 0x1b4   : > { %11181 = vst [vmem:[#allocation44_spill] sm:$0xff] %v9344_v9  ;;  %v6272_v50 = vpop.f32.mrb[28].mxu0  ;;  %v9350_v55 = vadd.f32 %v6383_v48, %v2226_v32  ;;  %v6398_v52 = vadd.f32 %v6397_v16, %v6396_v44  ;;  %v6399_v9 = vpop.f32.mrb[22].mxu1  ;;  %v11186_v32 = vld [vmem:[#allocation74_spill] sm:$0xff] }
 0x1b5   : > { %v6273_v28 = vpop.f32.mrb[29].mxu0  ;;  %v6400_v4 = vpop.f32.mrb[23].mxu1  ;;  %vm11187_vm9 = vnez %v11186_v32 }
 0x1b6   : > { %v6274_v46 = vadd.f32 %v6273_v28, %v6272_v50  ;;  %v6275_v8 = vpop.f32.mrb[30].mxu0  ;;  %v6401_v1 = vadd.f32 %v6400_v4, %v6399_v9 }
 0x1b7   : > { %v6276_v43 = vpop.f32.mrb[31].mxu0 }
 0x1b8   : > { %v2231_v0 = vadd.f32 %v6274_v46, %v9314_v12  ;;  %v6277_v31 = vadd.f32 %v6276_v43, %v6275_v8  ;;  %v6402_v45 = vpop.f32.mrb[24].mxu1 }
 0x1b9   : > { %2607 = vmatmul.mubr.bf16.gmra.mrb[136].mxu0 %v8775_v19  ;;  %v6403_v44 = vpop.f32.mrb[25].mxu1 }
 0x1ba   : > { %v2234_v48 = vadd.f32 %v6277_v31, %v9314_v12  ;;  %5724 = vmatprep.mubr.msk.bf16.mxu0 %vm11187_vm9, %v9352_v42  ;;  %v9360_v11 = vadd.f32 %v6386_v10, %v2231_v0  ;;  %v6404_v8 = vadd.f32 %v6403_v44, %v6402_v45  ;;  %v6405_v43 = vpop.f32.mrb[26].mxu1  ;;  %v7614_v0 = vld [vmem:[#allocation7 + $0x50] sm:$0xff]  }
 0x1bb   : > { %v6406_v9 = vpop.f32.mrb[27].mxu1  ;;  %6690 = vmatprep.subr.bf16.mxu1 %v7614_v0 }
 0x1bc   : > { %v6278_v3 = vpop.f32.mrb[32].mxu0  ;;  %v9362_v37 = vadd.f32 %v6389_v39, %v2234_v48  ;;  %v6407_v19 = vadd.f32 %v6406_v9, %v6405_v43  ;;  %v7615_v48 = vld [vmem:[#allocation7 + $0x10] sm:$0xff]  }
 0x1bd   : > { %v6279_v16 = vpop.f32.mrb[33].mxu0  ;;  %6691 = vmatpush3.bf16.msra.mxu1 %v7615_v48 }
 0x1be   : > { %v6280_v50 = vadd.f32 %v6279_v16, %v6278_v3  ;;  %v6281_v28 = vpop.f32.mrb[34].mxu0 }
 0x1bf   : > { %v6282_v46 = vpop.f32.mrb[35].mxu0 }
 0x1c0   : > { %v6283_v4 = vadd.f32 %v6282_v46, %v6281_v28  ;;  %v2239_v31 = vadd.f32 %v6280_v50, %v9314_v12  ;;  %v6408_v50 = vpop.f32.mrb[28].mxu1 }
 0x1c1   : > { %2615 = vmatmul.mubr.bf16.gmra.mrb[140].mxu0 %v8800_v61  ;;  %v6409_v46 = vpop.f32.mrb[29].mxu1 }
 0x1c2   : > { %v9366_v10 = vadd.f32 %v6392_v38, %v2239_v31  ;;  %v2242_v39 = vadd.f32 %v6283_v4, %v9314_v12  ;;  %7198 = vmatprep.mubr.msk.bf16.mxu0 %vm9148_vm0, %v8845_v5  ;;  %v6410_v43 = vadd.f32 %v6409_v46, %v6408_v50  ;;  %v6411_v31 = vpop.f32.mrb[30].mxu1 }
 0x1c3   : > { %v6412_v61 = vpop.f32.mrb[31].mxu1 }
 0x1c4   : > { %v9372_v3 = vadd.f32 %v6395_v40, %v2242_v39  ;;  %v6284_v16 = vpop.f32.mrb[36].mxu0  ;;  %v6413_v5 = vadd.f32 %v6412_v61, %v6411_v31 }
 0x1c5   : > { %v6285_v45 = vpop.f32.mrb[37].mxu0 }
 0x1c6   : > { %v6286_v28 = vadd.f32 %v6285_v45, %v6284_v16  ;;  %v6287_v44 = vpop.f32.mrb[38].mxu0 }
 0x1c7   : > { %v6288_v38 = vpop.f32.mrb[39].mxu0 }
 0x1c8   : > { %v6289_v4 = vadd.f32 %v6288_v38, %v6287_v44  ;;  %v2247_v9 = vadd.f32 %v6286_v28, %v9314_v12  ;;  %v6414_v45 = vpop.f32.mrb[32].mxu1 }
 0x1c9   : > { %7199 = vmatmul.mubr.msk.bf16.vlgmr.msra.gmra.mrb[144].mxu0 %vm9163_vm7, %v8857_v6  ;;  %v6415_v44 = vpop.f32.mrb[33].mxu1 }
 0x1ca   : > { %v9378_v40 = vadd.f32 %v6398_v52, %v2247_v9  ;;  %v2250_v39 = vadd.f32 %v6289_v4, %v9314_v12  ;;  %7202 = vmatprep.mubr.msk.bf16.mxu0 %vm9179_vm2, %v11149_v17  ;;  %v6416_v38 = vadd.f32 %v6415_v44, %v6414_v45  ;;  %v6417_v6 = vpop.f32.mrb[34].mxu1  ;;  %v7616_v9 = vld [vmem:[#allocation7 + $0x58] sm:$0xff]  }
 0x1cb   : > { %v6418_v31 = vpop.f32.mrb[35].mxu1  ;;  %6692 = vmatprep.subr.bf16.mxu1 %v7616_v9 }
 0x1cc   : > { %v9384_v0 = vadd.f32 %v6401_v1, %v2250_v39  ;;  %v6290_v48 = vpop.f32.mrb[40].mxu0  ;;  %v6419_v17 = vadd.f32 %v6418_v31, %v6417_v6  ;;  %v7617_v39 = vld [vmem:[#allocation7 + $0x18] sm:$0xff]  }
 0x1cd   : > { %v6291_v16 = vpop.f32.mrb[41].mxu0  ;;  %6693 = vmatpush3.bf16.msra.mxu1 %v7617_v39 }
 0x1ce   : > { %v6292_v50 = vadd.f32 %v6291_v16, %v6290_v48  ;;  %v6293_v28 = vpop.f32.mrb[42].mxu0 }
 0x1cf   : > { %v6294_v46 = vpop.f32.mrb[43].mxu0 }
 0x1d0   : > { %v6295_v61 = vadd.f32 %v6294_v46, %v6293_v28  ;;  %v2255_v52 = vadd.f32 %v6292_v50, %v9314_v12  ;;  %v6420_v50 = vpop.f32.mrb[36].mxu1 }
 0x1d1   : > { %7203 = vmatmul.mubr.msk.bf16.gmra.mrb[148].mxu0 %vm9194_vm12, %v11151_v13  ;;  %v6421_v44 = vpop.f32.mrb[37].mxu1 }
 0x1d2   : > { %v9390_v1 = vadd.f32 %v6404_v8, %v2255_v52  ;;  %v2258_v4 = vadd.f32 %v6295_v61, %v9314_v12  ;;  %7206 = vmatprep.mubr.msk.bf16.mxu0 %vm11153_vm4, %v11154_v58  ;;  %v6422_v46 = vadd.f32 %v6421_v44, %v6420_v50  ;;  %v6423_v6 = vpop.f32.mrb[38].mxu1 }
 0x1d3   : > { %v6424_v31 = vpop.f32.mrb[39].mxu1 }
 0x1d4   : > { %v9396_v48 = vadd.f32 %v6407_v19, %v2258_v4  ;;  %v6296_v16 = vpop.f32.mrb[44].mxu0  ;;  %v6425_v19 = vadd.f32 %v6424_v31, %v6423_v6  ;;  %v7618_v31 = vld [vmem:[#allocation7 + $0x60] sm:$0xff]  }
 0x1d5   : > { %v6297_v45 = vpop.f32.mrb[45].mxu0  ;;  %6694 = vmatprep.subr.bf16.mxu1 %v7618_v31 }
 0x1d6   : > { %v6298_v28 = vadd.f32 %v6297_v45, %v6296_v16  ;;  %v6299_v13 = vpop.f32.mrb[46].mxu0 }
 0x1d7   : > { %v6300_v8 = vpop.f32.mrb[47].mxu0 }
 0x1d8   : > { %v6301_v61 = vadd.f32 %v6300_v8, %v6299_v13  ;;  %v2263_v52 = vadd.f32 %v6298_v28, %v9314_v12  ;;  %v6426_v45 = vpop.f32.mrb[40].mxu1 }
 0x1d9   : > { %7207 = vmatmul.mubr.msk.bf16.gmra.mrb[152].mxu0 %vm11156_vm15, %v11157_v51  ;;  %v6427_v13 = vpop.f32.mrb[41].mxu1 }
 0x1da   : > { %v9402_v58 = vadd.f32 %v6410_v43, %v2263_v52  ;;  %v2266_v4 = vadd.f32 %v6301_v61, %v9314_v12  ;;  %7210 = vmatprep.mubr.msk.bf16.mxu0 %vm11159_vm11, %v11161_v15  ;;  %v6428_v8 = vadd.f32 %v6427_v13, %v6426_v45  ;;  %v6429_v51 = vpop.f32.mrb[42].mxu1 }
 0x1db   : > { %v6430_v52 = vpop.f32.mrb[43].mxu1 }
 0x1dc   : > { %v9408_v9 = vadd.f32 %v6413_v5, %v2266_v4  ;;  %v6302_v39 = vpop.f32.mrb[48].mxu0  ;;  %v6431_v15 = vadd.f32 %v6430_v52, %v6429_v51  ;;  %v7619_v4 = vld [vmem:[#allocation7 + $0x20] sm:$0xff]  }
 0x1dd   : > { %v6303_v16 = vpop.f32.mrb[49].mxu0  ;;  %6695 = vmatpush3.bf16.msra.mxu1 %v7619_v4 }
 0x1de   : > { %v6304_v50 = vadd.f32 %v6303_v16, %v6302_v39  ;;  %v6305_v28 = vpop.f32.mrb[50].mxu0 }
 0x1df   : > { %v6306_v44 = vpop.f32.mrb[51].mxu0 }
 0x1e0   : > { %v2271_v43 = vadd.f32 %v6304_v50, %v9314_v12  ;;  %v6307_v6 = vadd.f32 %v6306_v44, %v6305_v28  ;;  %v6432_v50 = vpop.f32.mrb[44].mxu1 }
 0x1e1   : > { %7211 = vmatmul.mubr.msk.bf16.gmra.mrb[156].mxu0 %vm11163_vm14, %v8786_v34  ;;  %v6433_v13 = vpop.f32.mrb[45].mxu1 }
 0x1e2   : > { %v2274_v5 = vadd.f32 %v6307_v6, %v9314_v12  ;;  %v9415_v61 = vadd.f32 %v6416_v38, %v2271_v43  ;;  %7214 = vmatprep.mubr.msk.bf16.mxu0 %vm11165_vm8, %v8906_v56  ;;  %v6434_v51 = vadd.f32 %v6433_v13, %v6432_v50  ;;  %v6435_v38 = vpop.f32.mrb[46].mxu1 }
 0x1e3   : > { %v6436_v52 = vpop.f32.mrb[47].mxu1 }
 0x1e4   : > { %v9420_v39 = vadd.f32 %v6419_v17, %v2274_v5  ;;  %v6308_v16 = vpop.f32.mrb[52].mxu0  ;;  %v6437_v56 = vadd.f32 %v6436_v52, %v6435_v38  ;;  %v7620_v52 = vld [vmem:[#allocation7 + $0x68] sm:$0xff]  }
 0x1e5   : > { %v6309_v45 = vpop.f32.mrb[53].mxu0  ;;  %6696 = vmatprep.subr.bf16.mxu1 %v7620_v52 }
 0x1e6   : > { %v6310_v28 = vadd.f32 %v6309_v45, %v6308_v16  ;;  %v6311_v34 = vpop.f32.mrb[54].mxu0 }
 0x1e7   : > { %v6312_v44 = vpop.f32.mrb[55].mxu0 }
 0x1e8   : > { %v2279_v43 = vadd.f32 %v6310_v28, %v9314_v12  ;;  %v6313_v6 = vadd.f32 %v6312_v44, %v6311_v34  ;;  %v6566_v45 = vpop.f32.mrb[48].mxu1 }
 0x1e9   : > { %7215 = vmatmul.mubr.msk.bf16.gmra.mrb[160].mxu0 %vm11167_vm13, %v8952_v53  ;;  %v6567_v34 = vpop.f32.mrb[49].mxu1 }
 0x1ea   : > { %v2282_v17 = vadd.f32 %v6313_v6, %v9314_v12  ;;  %v9427_v5 = vadd.f32 %v6422_v46, %v2279_v43  ;;  %7218 = vmatprep.mubr.msk.bf16.mxu0 %vm11171_vm3, %v9000_v26  ;;  %v9434_v44 = vadd.f32 %v6567_v34, %v6566_v45  ;;  %v6569_v53 = vpop.f32.mrb[50].mxu1  ;;  %vm11207_vm3 = vcmask 1046528  }
 0x1eb   : > { %v6570_v43 = vpop.f32.mrb[51].mxu1 }
 0x1ec   : > { %v9432_v31 = vadd.f32 %v6425_v19, %v2282_v17  ;;  %v6314_v4 = vpop.f32.mrb[56].mxu0  ;;  %v9440_v26 = vadd.f32 %v6570_v43, %v6569_v53  ;;  %v7621_v17 = vld [vmem:[#allocation7 + $0x28] sm:$0xff]  }
 0x1ed   : > { %v6315_v16 = vpop.f32.mrb[57].mxu0  ;;  %6697 = vmatpush3.bf16.msra.mxu1 %v7621_v17 }
 0x1ee   : > { %v6316_v50 = vadd.f32 %v6315_v16, %v6314_v4  ;;  %v6317_v28 = vpop.f32.mrb[58].mxu0 }
 0x1ef   : > { %v6318_v13 = vpop.f32.mrb[59].mxu0 }
 0x1f0   : > { %v2287_v38 = vadd.f32 %v6316_v50, %v9314_v12  ;;  %v6319_v46 = vadd.f32 %v6318_v13, %v6317_v28  ;;  %v6572_v50 = vpop.f32.mrb[52].mxu1 }
 0x1f1   : > { %7219 = vmatmul.mubr.msk.bf16.gmra.mrb[164].mxu0 %vm11174_vm1, %v9045_v24  ;;  %v6573_v34 = vpop.f32.mrb[53].mxu1 }
 0x1f2   : > { %v2290_v19 = vadd.f32 %v6319_v46, %v9314_v12  ;;  %v9443_v6 = vadd.f32 %v6428_v8, %v2287_v38  ;;  %7222 = vmatprep.mubr.msk.bf16.mxu0 %vm11175_vm10, %v9087_v49  ;;  %v9450_v53 = vadd.f32 %v6573_v34, %v6572_v50  ;;  %v6575_v8 = vpop.f32.mrb[54].mxu1 }
 0x1f3   : > { %v6576_v49 = vpop.f32.mrb[55].mxu1 }
 0x1f4   : > { %v9448_v4 = vadd.f32 %v6431_v15, %v2290_v19  ;;  %v6320_v16 = vpop.f32.mrb[60].mxu0  ;;  %v9456_v15 = vadd.f32 %v6576_v49, %v6575_v8 }
 0x1f5   : > { %v6321_v45 = vpop.f32.mrb[61].mxu0 }
 0x1f6   : > { %v6322_v24 = vadd.f32 %v6321_v45, %v6320_v16  ;;  %v6323_v28 = vpop.f32.mrb[62].mxu0  ;;  %v9468_v45 = vpack.c.bf16 %v11184_v21, %v11184_v21 }
 0x1f7   : > { %v6324_v13 = vpop.f32.mrb[63].mxu0 }
 0x1f8   : > { %v2295_v38 = vadd.f32 %v6322_v24, %v9314_v12  ;;  %v6325_v46 = vadd.f32 %v6324_v13, %v6323_v28  ;;  %11189 = vst [vmem:[#allocation50_spill] sm:$0xff] %v9468_v45  ;;  %v6578_v28 = vpop.f32.mrb[56].mxu1 }
 0x1f9   : > { %7223 = vmatmul.mubr.msk.bf16.gmra.mrb[168].mxu0 %vm11188_vm5, %v9110_v30  ;;  %v2175_v30 = vadd.f32 %v9264_v29, %v9314_v12  ;;  %v6579_v34 = vpop.f32.mrb[57].mxu1  ;;  %vm11203_vm5 = vcmask 1040384  }
 0x1fa   : > { %v2298_v43 = vadd.f32 %v6325_v46, %v9314_v12  ;;  %v9459_v19 = vadd.f32 %v6434_v51, %v2295_v38  ;;  %7226 = vmatprep.mubr.msk.bf16.mxu0 %vm9052_vm6, %v9352_v42  ;;  %v2178_v42 = vadd.f32 %v9266_v14, %v9314_v12  ;;  %v9476_v8 = vadd.f32 %v6579_v34, %v6578_v28  ;;  %v6581_v38 = vpop.f32.mrb[58].mxu1  ;;  %vm11204_vm10 = vmmov %vm11203_vm5 }
 0x1fb   : > { %v6582_v46 = vpop.f32.mrb[59].mxu1  ;;  %v2183_v14 = vadd.f32 %v9276_v59, %v9314_v12  ;;  %vm11201_vm6 = vcmask 1046528   ;;  %vm11206_vm1 = vmmov %vm11203_vm5 }
 0x1fc   : > { %v9464_v52 = vadd.f32 %v6437_v56, %v2298_v43  ;;  %v6342_v17 = vpop.f32.mrb[64].mxu0  ;;  %v9483_v49 = vadd.f32 %v6582_v46, %v6581_v38  ;;  %v7622_v43 = vld [vmem:[#allocation7 + $0x70] sm:$0xff]  }
 0x1fd   : > { %v6343_v16 = vpop.f32.mrb[65].mxu0  ;;  %6698 = vmatprep.subr.bf16.mxu1 %v7622_v43  ;;  %v7624_v43 = vld [vmem:[#allocation7 + $0xc0] sm:$0xff]  }
 0x1fe   : > { %v6344_v50 = vadd.f32 %v6343_v16, %v6342_v17  ;;  %v6345_v24 = vpop.f32.mrb[66].mxu0  ;;  %v7623_v17 = vld [vmem:[#allocation7 + $0x30] sm:$0xff]   ;;  %6798 = vmatprep.subr.bf16.mxu0 %v7624_v43 }
 0x1ff   : > { %v6346_v51 = vpop.f32.mrb[67].mxu0  ;;  %6699 = vmatpush3.bf16.msra.mxu1 %v7623_v17  ;;  %v7625_v17 = vld [vmem:[#allocation7 + $0x80] sm:$0xff]  }
 0x200   : > { %v9472_v13 = vadd.f32 %v6344_v50, %v2175_v30  ;;  %v6347_v56 = vadd.f32 %v6346_v51, %v6345_v24  ;;  %v6584_v28 = vpop.f32.mrb[60].mxu1  ;;  %6799 = vmatpush3.bf16.msra.mxu0 %v7625_v17  ;;  %v7630_v17 = vld [vmem:[#allocation7 + $0xd0] sm:$0xff]  }
 0x201   : > { %7227 = vmatmul.mubr.msk.bf16.gmra.mrb[172].mxu0 %vm11187_vm9, %v9468_v45  ;;  %v6585_v34 = vpop.f32.mrb[61].mxu1  ;;  %vm11194_vm9 = vnez %v11193_v60 }
 0x202   : > { %v9481_v29 = vadd.f32 %v6347_v56, %v2178_v42  ;;  %v2186_v42 = vadd.f32 %v9278_v27, %v9314_v12  ;;  %v9491_v38 = vadd.f32 %v6585_v34, %v6584_v28  ;;  %v6587_v46 = vpop.f32.mrb[62].mxu1  ;;  %v2191_v27 = vadd.f32 %v9291_v23, %v9314_v12 }
 0x203   : > { %v6588_v32 = vpop.f32.mrb[63].mxu1 }
 0x204   : > { %v6348_v16 = vpop.f32.mrb[68].mxu0  ;;  %v9495_v59 = vadd.f32 %v6588_v32, %v6587_v46  ;;  %v2194_v32 = vadd.f32 %v9294_v62, %v9314_v12  ;;  %v7633_v62 = vld [vmem:[#allocation7 + $0x98] sm:$0xff]  }
 0x205   : > { %v6349_v30 = vpop.f32.mrb[69].mxu0 }
 0x206   : > { %v6350_v50 = vadd.f32 %v6349_v30, %v6348_v16  ;;  %v6351_v24 = vpop.f32.mrb[70].mxu0  ;;  %v7626_v30 = vld [vmem:[#allocation7 + $0xc8] sm:$0xff]  }
 0x207   : > { %v6352_v51 = vpop.f32.mrb[71].mxu0  ;;  %6800 = vmatprep.subr.bf16.mxu0 %v7626_v30  ;;  %v7628_v30 = vld [vmem:[#allocation7 + $0x78] sm:$0xff]  }
 0x208   : > { %v9487_v45 = vadd.f32 %v6350_v50, %v2183_v14  ;;  %v6353_v56 = vadd.f32 %v6352_v51, %v6351_v24  ;;  %v7627_v50 = vld [vmem:[#allocation7 + $0x88] sm:$0xff]   ;;  %6700 = vmatprep.subr.bf16.mxu1 %v7628_v30 }
 0x209   : > { %6801 = vmatpush3.bf16.msra.mxu0 %v7627_v50 }
 0x20a   : > { %v9493_v63 = vadd.f32 %v6353_v56, %v2186_v42  ;;  %6802 = vmatprep.subr.bf16.mxu0 %v7630_v17 }
 0x20b   : > { %v6590_v51 = vpop.f32.mrb[64].mxu1 }
 0x20c   : > { %v6354_v16 = vpop.f32.mrb[72].mxu0  ;;  %v6591_v36 = vpop.f32.mrb[65].mxu1 }
 0x20d   : > { %v6355_v14 = vpop.f32.mrb[73].mxu0  ;;  %v9503_v46 = vadd.f32 %v6591_v36, %v6590_v51  ;;  %v6593_v43 = vpop.f32.mrb[66].mxu1  ;;  %6803 = vmatpush3.bf16.msra.mxu0 %v7631_v54  ;;  %v11190_v36 = vld [vmem:[#allocation43_spill] sm:$0xff]  ;;  %v11191_v54 = vld [vmem:[#allocation60_spill] sm:$0xff] }
 0x20e   : > { %v6356_v24 = vadd.f32 %v6355_v14, %v6354_v16  ;;  %v6357_v28 = vpop.f32.mrb[74].mxu0  ;;  %v6594_v7 = vpop.f32.mrb[67].mxu1  ;;  %v7629_v14 = vld [vmem:[#allocation7 + $0x38] sm:$0xff]  }
 0x20f   : > { %v6358_v34 = vpop.f32.mrb[75].mxu0  ;;  %v9507_v16 = vadd.f32 %v6594_v7, %v6593_v43  ;;  %6701 = vmatpush3.bf16.msra.mxu1 %v7629_v14  ;;  %v2202_v43 = vadd.f32 %v11191_v54, %v9314_v12 }
 0x210   : > { %v9499_v42 = vadd.f32 %v6356_v24, %v2191_v27  ;;  %v6359_v56 = vadd.f32 %v6358_v34, %v6357_v28  ;;  %v7632_v27 = vld [vmem:[#allocation7 + $0xd8] sm:$0xff]   ;;  %v2199_v28 = vadd.f32 %v11190_v36, %v9314_v12 }
 0x211   : > { %6804 = vmatprep.subr.bf16.mxu0 %v7632_v27 }
 0x212   : > { %v9505_v23 = vadd.f32 %v6359_v56, %v2194_v32  ;;  %6805 = vmatpush3.bf16.msra.mxu0 %v7633_v62  ;;  %5896 = vmatmul.mubr.msk.bf16.vlgmr.msra.gmra.mrb[112].mxu1 %vm11194_vm9, %v11192_v57 }
 0x213   : > { %v6596_v47 = vpop.f32.mrb[68].mxu1  ;;  %6806 = vmatprep.subr.bf16.mxu0 %v7634_v20 }
 0x214   : > { %v6360_v50 = vpop.f32.mrb[76].mxu0  ;;  %v6597_v7 = vpop.f32.mrb[69].mxu1 }
 0x215   : > { %v6361_v24 = vpop.f32.mrb[77].mxu0  ;;  %v9515_v30 = vadd.f32 %v6597_v7, %v6596_v47  ;;  %v6599_v14 = vpop.f32.mrb[70].mxu1 }
 0x216   : > { %v6362_v51 = vadd.f32 %v6361_v24, %v6360_v50  ;;  %v6363_v34 = vpop.f32.mrb[78].mxu0  ;;  %v6600_v50 = vpop.f32.mrb[71].mxu1  ;;  %v7635_v24 = vld [vmem:[#allocation7 + $0xa0] sm:$0xff]  }
 0x217   : > { %v6364_v32 = vpop.f32.mrb[79].mxu0  ;;  %v9522_v36 = vadd.f32 %v6600_v50, %v6599_v14  ;;  %6807 = vmatpush3.bf16.msra.mxu0 %v7635_v24  ;;  %v7639_v14 = vld [vmem:[#allocation7 + $0xf0] sm:$0xff]  }
 0x218   : > { %v9511_v56 = vadd.f32 %v6362_v51, %v2199_v28  ;;  %v6365_v17 = vadd.f32 %v6364_v32, %v6363_v34  ;;  %v7636_v28 = vld [vmem:[#allocation7 + $0xe8] sm:$0xff]   ;;  %v7641_v50 = vld [vmem:[#allocation7 + $0xb0] sm:$0xff]  }
 0x219   : > { %v7637_v51 = vld [vmem:[#allocation7 + $0xa8] sm:$0xff]   ;;  %6808 = vmatprep.subr.bf16.mxu0 %v7636_v28 }
 0x21a   : > { %v9520_v27 = vadd.f32 %v6365_v17, %v2202_v43 }
 0x21b   : > { %v6602_v32 = vpop.f32.mrb[72].mxu1  ;;  %6809 = vmatpush3.bf16.msra.mxu0 %v7637_v51 }
 0x21c   : > { %v6454_v62 = vpop.f32.mrb[80].mxu0  ;;  %v6603_v54 = vpop.f32.mrb[73].mxu1  ;;  %6810 = vmatprep.subr.bf16.mxu0 %v7639_v14 }
 0x21d   : > { %v6455_v12 = vpop.f32.mrb[81].mxu0  ;;  %v9525_v43 = vadd.f32 %v6603_v54, %v6602_v32  ;;  %v6605_v17 = vpop.f32.mrb[74].mxu1  ;;  %v7643_v32 = vld [vmem:[#allocation7 + $0xb8] sm:$0xff]  }
 0x21e   : > { %v6456_v47 = vadd.f32 %v6455_v12, %v6454_v62  ;;  %v6457_v34 = vpop.f32.mrb[82].mxu0  ;;  %v6606_v20 = vpop.f32.mrb[75].mxu1 }
 0x21f   : > { %v6458_v7 = vpop.f32.mrb[83].mxu0  ;;  %v9528_v25 = vadd.f32 %v6606_v20, %v6605_v17  ;;  %6811 = vmatpush3.bf16.msra.mxu0 %v7641_v50 }
 0x220   : > { %v2497_v57 = vadd.f32 %v6456_v47, %v9472_v13  ;;  %v6459_v33 = vadd.f32 %v6458_v7, %v6457_v34  ;;  %v7642_v13 = vld [vmem:[#allocation7 + $0xf8] sm:$0xff]   ;;  %v7638_v47 = vld [vmem:[#allocation7 + $0x140] sm:$0xff]  }
 0x221   : > { %v7640_v34 = vld [vmem:[#allocation7 + $0x100] sm:$0xff]   ;;  %6812 = vmatprep.subr.bf16.mxu0 %v7642_v13  ;;  %6910 = vmatprep.subr.bf16.mxu1 %v7638_v47 }
 0x222   : > { %v2500_v24 = vadd.f32 %v6459_v33, %v9481_v29  ;;  %v9531_v62 = vadd.f32 %v9434_v44, %v2497_v57  ;;  %6911 = vmatpush3.bf16.msra.mxu1 %v7640_v34 }
 0x223   : > { %v6608_v18 = vpop.f32.mrb[76].mxu1  ;;  %6813 = vmatpush3.bf16.msra.mxu0 %v7643_v32 }
 0x224   : > { %v6460_v28 = vpop.f32.mrb[84].mxu0  ;;  %v9534_v12 = vadd.f32 %v9440_v26, %v2500_v24  ;;  %v6609_v29 = vpop.f32.mrb[77].mxu1 }
 0x225   : > { %v6461_v51 = vpop.f32.mrb[85].mxu0  ;;  %v9537_v17 = vadd.f32 %v6609_v29, %v6608_v18  ;;  %v6611_v26 = vpop.f32.mrb[78].mxu1 }
 0x226   : > { %v6462_v7 = vadd.f32 %v6461_v51, %v6460_v28  ;;  %v6463_v54 = vpop.f32.mrb[86].mxu0  ;;  %v6612_v14 = vpop.f32.mrb[79].mxu1 }
 0x227   : > { %v6464_v33 = vpop.f32.mrb[87].mxu0  ;;  %v9540_v50 = vadd.f32 %v6612_v14, %v6611_v26  ;;  %v7644_v14 = vld [vmem:[#allocation7 + $0x148] sm:$0xff]  }
 0x228   : > { %v2505_v44 = vadd.f32 %v6462_v7, %v9487_v45  ;;  %v6465_v57 = vadd.f32 %v6464_v33, %v6463_v54  ;;  %6912 = vmatprep.subr.bf16.mxu1 %v7644_v14 }
 0x22a   : > { %v2508_v20 = vadd.f32 %v6465_v57, %v9493_v63  ;;  %v9543_v24 = vadd.f32 %v9450_v53, %v2505_v44 }
 0x22b   : > { %v6614_v32 = vpop.f32.mrb[80].mxu1 }
 0x22c   : > { %v6466_v28 = vpop.f32.mrb[88].mxu0  ;;  %v9546_v13 = vadd.f32 %v9456_v15, %v2508_v20  ;;  %v6615_v7 = vpop.f32.mrb[81].mxu1  ;;  %v7645_v20 = vld [vmem:[#allocation7 + $0x108] sm:$0xff]  }
 0x22d   : > { %v6467_v51 = vpop.f32.mrb[89].mxu0  ;;  %v9549_v33 = vadd.f32 %v6615_v7, %v6614_v32  ;;  %v6617_v63 = vpop.f32.mrb[82].mxu1  ;;  %6913 = vmatpush3.bf16.msra.mxu1 %v7645_v20 }
 0x22e   : > { %v6468_v47 = vadd.f32 %v6467_v51, %v6466_v28  ;;  %v6469_v45 = vpop.f32.mrb[90].mxu0  ;;  %v6618_v29 = vpop.f32.mrb[83].mxu1 }
 0x22f   : > { %v6470_v18 = vpop.f32.mrb[91].mxu0  ;;  %v9552_v44 = vadd.f32 %v6618_v29, %v6617_v63 }
 0x230   : > { %v2513_v34 = vadd.f32 %v6468_v47, %v9499_v42  ;;  %v6471_v54 = vadd.f32 %v6470_v18, %v6469_v45 }
 0x232   : > { %v2516_v53 = vadd.f32 %v6471_v54, %v9505_v23  ;;  %v9555_v15 = vadd.f32 %v9476_v8, %v2513_v34 }
 0x233   : > { %v6620_v47 = vpop.f32.mrb[84].mxu1 }
 0x234   : > { %v6472_v57 = vpop.f32.mrb[92].mxu0  ;;  %v9558_v26 = vadd.f32 %v9483_v49, %v2516_v53  ;;  %v6621_v32 = vpop.f32.mrb[85].mxu1 }
 0x235   : > { %v6473_v28 = vpop.f32.mrb[93].mxu0  ;;  %v9561_v7 = vadd.f32 %v6621_v32, %v6620_v47  ;;  %v6623_v8 = vpop.f32.mrb[86].mxu1 }
 0x236   : > { %v6474_v42 = vadd.f32 %v6473_v28, %v6472_v57  ;;  %v6475_v51 = vpop.f32.mrb[94].mxu0  ;;  %v6624_v34 = vpop.f32.mrb[87].mxu1 }
 0x237   : > { %v6476_v45 = vpop.f32.mrb[95].mxu0  ;;  %v9564_v54 = vadd.f32 %v6624_v34, %v6623_v8  ;;  %v11196_v8 = vld [vmem:[#allocation34_spill] sm:$0xff] }
 0x238   : > { %v2521_v23 = vadd.f32 %v6474_v42, %v9511_v56  ;;  %v6477_v18 = vadd.f32 %v6476_v45, %v6475_v51  ;;  %v11195_v51 = vld [vmem:[#allocation29_spill] sm:$0xff] }
 0x23a   : > { %v2524_v49 = vadd.f32 %v6477_v18, %v9520_v27  ;;  %v9567_v63 = vadd.f32 %v9491_v38, %v2521_v23 }
 0x23b   : > { %v6626_v56 = vpop.f32.mrb[88].mxu1 }
 0x23c   : > { %v6478_v29 = vpop.f32.mrb[96].mxu0  ;;  %v9570_v53 = vadd.f32 %v9495_v59, %v2524_v49  ;;  %v6627_v42 = vpop.f32.mrb[89].mxu1 }
 0x23d   : > { %v6479_v57 = vpop.f32.mrb[97].mxu0  ;;  %v9573_v32 = vadd.f32 %v6627_v42, %v6626_v56  ;;  %v6629_v27 = vpop.f32.mrb[90].mxu1 }
 0x23e   : > { %v6480_v14 = vadd.f32 %v6479_v57, %v6478_v29  ;;  %v6481_v20 = vpop.f32.mrb[98].mxu0  ;;  %v6630_v18 = vpop.f32.mrb[91].mxu1  ;;  %v7646_v29 = vld [vmem:[#allocation7 + $0x150] sm:$0xff]  }
 0x23f   : > { %v6482_v28 = vpop.f32.mrb[99].mxu0  ;;  %v9576_v23 = vadd.f32 %v6630_v18, %v6629_v27  ;;  %v7647_v57 = vld [vmem:[#allocation7 + $0x110] sm:$0xff]   ;;  %6914 = vmatprep.subr.bf16.mxu1 %v7646_v29 }
 0x240   : > { %v2529_v47 = vadd.f32 %v6480_v14, %v11195_v51  ;;  %v6483_v45 = vadd.f32 %v6482_v28, %v6481_v20  ;;  %6915 = vmatpush3.bf16.msra.mxu1 %v7647_v57  ;;  %v11198_v51 = vld [vmem:[#allocation32_spill] sm:$0xff] }
 0x242   : > { %v2532_v38 = vadd.f32 %v6483_v45, %v11196_v8  ;;  %v9579_v59 = vadd.f32 %v9503_v46, %v2529_v47  ;;  %v11199_v8 = vld [vmem:[#allocation38_spill] sm:$0xff] }
 0x243   : > { %v6632_v56 = vpop.f32.mrb[92].mxu1 }
 0x244   : > { %v6484_v34 = vpop.f32.mrb[100].mxu0  ;;  %v9582_v49 = vadd.f32 %v9507_v16, %v2532_v38  ;;  %v6633_v42 = vpop.f32.mrb[93].mxu1 }
 0x245   : > { %v6485_v2 = vpop.f32.mrb[101].mxu0  ;;  %v9585_v18 = vadd.f32 %v6633_v42, %v6632_v56  ;;  %v6635_v46 = vpop.f32.mrb[94].mxu1 }
 0x246   : > { %11197 = vst [vmem:[#allocation56_spill] sm:$0xff] %v9582_v49  ;;  %v6486_v14 = vadd.f32 %v6485_v2, %v6484_v34  ;;  %v6487_v20 = vpop.f32.mrb[102].mxu0  ;;  %v6636_v47 = vpop.f32.mrb[95].mxu1 }
 0x247   : > { %v6488_v28 = vpop.f32.mrb[103].mxu0  ;;  %v9588_v38 = vadd.f32 %v6636_v47, %v6635_v46 }
 0x248   : > { %v2537_v45 = vadd.f32 %v6486_v14, %v11198_v51  ;;  %v6489_v27 = vadd.f32 %v6488_v28, %v6487_v20  ;;  %v11200_v28 = vld [vmem:[#allocation44_spill] sm:$0xff] }
 0x24a   : > { %v2540_v16 = vadd.f32 %v6489_v27, %v11199_v8  ;;  %v9591_v22 = vadd.f32 %v9515_v30, %v2537_v45 }
 0x24b   : > { %v6638_v14 = vpop.f32.mrb[96].mxu1 }
 0x24c   : > { %v6490_v2 = vpop.f32.mrb[104].mxu0  ;;  %v9594_v34 = vadd.f32 %v9522_v36, %v2540_v16  ;;  %v6639_v56 = vpop.f32.mrb[97].mxu1  ;;  %v7648_v16 = vld [vmem:[#allocation7 + $0x158] sm:$0xff]  }
 0x24d   : > { %v6491_v29 = vpop.f32.mrb[105].mxu0  ;;  %v9597_v49 = vadd.f32 %v6639_v56, %v6638_v14  ;;  %v6641_v27 = vpop.f32.mrb[98].mxu1  ;;  %6916 = vmatprep.subr.bf16.mxu1 %v7648_v16 }
 0x24e   : > { %v6492_v57 = vadd.f32 %v6491_v29, %v6490_v2  ;;  %v6493_v35 = vpop.f32.mrb[106].mxu0  ;;  %v6642_v46 = vpop.f32.mrb[99].mxu1  ;;  %v7649_v2 = vld [vmem:[#allocation7 + $0x118] sm:$0xff]  }
 0x24f   : > { %v6494_v20 = vpop.f32.mrb[107].mxu0  ;;  %v9600_v45 = vadd.f32 %v6642_v46, %v6641_v27  ;;  %6917 = vmatpush3.bf16.msra.mxu1 %v7649_v2 }
 0x250   : > { %v2545_v42 = vadd.f32 %v6492_v57, %v11200_v28  ;;  %v6495_v51 = vadd.f32 %v6494_v20, %v6493_v35 }
 0x252   : > { %v2548_v30 = vadd.f32 %v6495_v51, %v9350_v55  ;;  %v9603_v36 = vadd.f32 %v9525_v43, %v2545_v42 }
 0x253   : > { %v6644_v14 = vpop.f32.mrb[100].mxu1 }
 0x254   : > { %v6496_v47 = vpop.f32.mrb[108].mxu0  ;;  %v9606_v8 = vadd.f32 %v9528_v25, %v2548_v30  ;;  %v6645_v56 = vpop.f32.mrb[101].mxu1 }
 0x255   : > { %v6497_v29 = vpop.f32.mrb[109].mxu0  ;;  %v9609_v51 = vadd.f32 %v6645_v56, %v6644_v14  ;;  %v6647_v43 = vpop.f32.mrb[102].mxu1 }
 0x256   : > { %v6498_v57 = vadd.f32 %v6497_v29, %v6496_v47  ;;  %v6499_v35 = vpop.f32.mrb[110].mxu0  ;;  %v6648_v42 = vpop.f32.mrb[103].mxu1 }
 0x257   : > { %v6500_v20 = vpop.f32.mrb[111].mxu0  ;;  %v9612_v27 = vadd.f32 %v6648_v42, %v6647_v43  ;;  %v7650_v43 = vld [vmem:[#allocation7 + $0x160] sm:$0xff]  }
 0x258   : > { %v2553_v55 = vadd.f32 %v6498_v57, %v9360_v11  ;;  %v6501_v28 = vadd.f32 %v6500_v20, %v6499_v35  ;;  %v7651_v42 = vld [vmem:[#allocation7 + $0x120] sm:$0xff]   ;;  %6918 = vmatprep.subr.bf16.mxu1 %v7650_v43 }
 0x259   : > { %6919 = vmatpush3.bf16.msra.mxu1 %v7651_v42 }
 0x25a   : > { %v2556_v25 = vadd.f32 %v6501_v28, %v9362_v37  ;;  %v9615_v46 = vadd.f32 %v9537_v17, %v2553_v55 }
 0x25b   : > { %v6650_v11 = vpop.f32.mrb[104].mxu1 }
 0x25c   : > { %v6502_v30 = vpop.f32.mrb[112].mxu0  ;;  %v9618_v47 = vadd.f32 %v9540_v50, %v2556_v25  ;;  %v6651_v35 = vpop.f32.mrb[105].mxu1 }
 0x25d   : > { %v6503_v16 = vpop.f32.mrb[113].mxu0  ;;  %v9621_v56 = vadd.f32 %v6651_v35, %v6650_v11  ;;  %v6653_v37 = vpop.f32.mrb[106].mxu1 }
 0x25e   : > { %v6504_v2 = vadd.f32 %v6503_v16, %v6502_v30  ;;  %v6505_v29 = vpop.f32.mrb[114].mxu0  ;;  %v6654_v28 = vpop.f32.mrb[107].mxu1 }
 0x25f   : > { %v6506_v57 = vpop.f32.mrb[115].mxu0  ;;  %v9624_v55 = vadd.f32 %v6654_v28, %v6653_v37 }
 0x260   : > { %v2561_v14 = vadd.f32 %v6504_v2, %v9366_v10  ;;  %v6507_v20 = vadd.f32 %v6506_v57, %v6505_v29 }
 0x262   : > { %v2564_v17 = vadd.f32 %v6507_v20, %v9372_v3  ;;  %v9627_v50 = vadd.f32 %v9549_v33, %v2561_v14 }
 0x263   : > { %v6656_v29 = vpop.f32.mrb[108].mxu1 }
 0x264   : > { %v6508_v25 = vpop.f32.mrb[116].mxu0  ;;  %v9630_v30 = vadd.f32 %v9552_v44, %v2564_v17  ;;  %v6657_v57 = vpop.f32.mrb[109].mxu1 }
 0x265   : > { %v6509_v10 = vpop.f32.mrb[117].mxu0  ;;  %v9633_v20 = vadd.f32 %v6657_v57, %v6656_v29  ;;  %v6659_v33 = vpop.f32.mrb[110].mxu1  ;;  %v7652_v29 = vld [vmem:[#allocation7 + $0x168] sm:$0xff]  }
 0x266   : > { %v6510_v16 = vadd.f32 %v6509_v10, %v6508_v25  ;;  %v6511_v2 = vpop.f32.mrb[118].mxu0  ;;  %v6660_v14 = vpop.f32.mrb[111].mxu1  ;;  %v7653_v57 = vld [vmem:[#allocation7 + $0x128] sm:$0xff]   ;;  %6920 = vmatprep.subr.bf16.mxu1 %v7652_v29  ;;  %v7654_v29 = vld [vmem:[#allocation7 + $0x170] sm:$0xff]  }
 0x267   : > { %v6512_v11 = vpop.f32.mrb[119].mxu0  ;;  %v9636_v28 = vadd.f32 %v6660_v14, %v6659_v33  ;;  %6921 = vmatpush3.bf16.msra.mxu1 %v7653_v57 }
 0x268   : > { %v2569_v3 = vadd.f32 %v6510_v16, %v9378_v40  ;;  %v6513_v35 = vadd.f32 %v6512_v11, %v6511_v2  ;;  %6922 = vmatprep.subr.bf16.mxu1 %v7654_v29 }
 0x26a   : > { %v2572_v37 = vadd.f32 %v6513_v35, %v9384_v0  ;;  %v9639_v44 = vadd.f32 %v9561_v7, %v2569_v3 }
 0x26c   : > { %v6514_v43 = vpop.f32.mrb[120].mxu0  ;;  %v9642_v17 = vadd.f32 %v9564_v54, %v2572_v37 }
 0x26d   : > { %v6515_v42 = vpop.f32.mrb[121].mxu0 }
 0x26e   : > { %v6516_v25 = vadd.f32 %v6515_v42, %v6514_v43  ;;  %v6517_v10 = vpop.f32.mrb[122].mxu0 }
 0x26f   : > { %v6518_v40 = vpop.f32.mrb[123].mxu0 }
 0x270   : > { %v2577_v16 = vadd.f32 %v6516_v25, %v9390_v1  ;;  %v6519_v2 = vadd.f32 %v6518_v40, %v6517_v10 }
 0x272   : > { %v2580_v11 = vadd.f32 %v6519_v2, %v9396_v48  ;;  %v9647_v0 = vadd.f32 %v9573_v32, %v2577_v16 }
 0x274   : > { %v6520_v7 = vpop.f32.mrb[124].mxu0  ;;  %v9650_v3 = vadd.f32 %v9576_v23, %v2580_v11 }
 0x275   : > { %v6521_v54 = vpop.f32.mrb[125].mxu0 }
 0x276   : > { %v6522_v35 = vadd.f32 %v6521_v54, %v6520_v7  ;;  %v6523_v33 = vpop.f32.mrb[126].mxu0 }
 0x277   : > { %v6524_v14 = vpop.f32.mrb[127].mxu0 }
 0x278   : > { %v2585_v1 = vadd.f32 %v6522_v35, %v9402_v58  ;;  %v6525_v37 = vadd.f32 %v6524_v14, %v6523_v33 }
 0x27a   : > { %v2588_v43 = vadd.f32 %v6525_v37, %v9408_v9  ;;  %v9655_v48 = vadd.f32 %v9585_v18, %v2585_v1  ;;  %v7655_v9 = vld [vmem:[#allocation7 + $0x130] sm:$0xff]  }
 0x27b   : > { %6923 = vmatpush3.bf16.msra.mxu1 %v7655_v9 }
 0x27c   : > { %v6526_v32 = vpop.f32.mrb[128].mxu0  ;;  %v9658_v42 = vadd.f32 %v9588_v38, %v2588_v43 }
 0x27d   : > { %v6527_v25 = vpop.f32.mrb[129].mxu0 }
 0x27e   : > { %v6528_v23 = vadd.f32 %v6527_v25, %v6526_v32  ;;  %v6529_v10 = vpop.f32.mrb[130].mxu0 }
 0x27f   : > { %v6530_v40 = vpop.f32.mrb[131].mxu0 }
 0x280   : > { %v2593_v16 = vadd.f32 %v6528_v23, %v9415_v61  ;;  %v6531_v2 = vadd.f32 %v6530_v40, %v6529_v10 }
 0x282   : > { %v2596_v58 = vadd.f32 %v6531_v2, %v9420_v39  ;;  %v9663_v11 = vadd.f32 %v9597_v49, %v2593_v16  ;;  %v7656_v49 = vld [vmem:[#allocation7 + $0x1c0] sm:$0xff]  }
 0x283   : > { %7022 = vmatprep.subr.bf16.mxu0 %v7656_v49 }
 0x284   : > { %v6532_v18 = vpop.f32.mrb[132].mxu0  ;;  %v9666_v57 = vadd.f32 %v9600_v45, %v2596_v58 }
 0x285   : > { %v6533_v38 = vpop.f32.mrb[133].mxu0 }
 0x286   : > { %v6534_v7 = vadd.f32 %v6533_v38, %v6532_v18  ;;  %v6535_v54 = vpop.f32.mrb[134].mxu0 }
 0x287   : > { %v6536_v35 = vpop.f32.mrb[135].mxu0 }
 0x288   : > { %v2601_v61 = vadd.f32 %v6534_v7, %v9427_v5  ;;  %v6537_v33 = vadd.f32 %v6536_v35, %v6535_v54  ;;  %v7660_v5 = vld [vmem:[#allocation7 + $0x178] sm:$0xff]  }
 0x289   : > { %6924 = vmatprep.subr.bf16.mxu1 %v7660_v5 }
 0x28a   : > { %v2604_v14 = vadd.f32 %v6537_v33, %v9432_v31  ;;  %v9671_v39 = vadd.f32 %v9609_v51, %v2601_v61  ;;  %v7661_v51 = vld [vmem:[#allocation7 + $0x138] sm:$0xff]  }
 0x28b   : > { %6925 = vmatpush3.bf16.msra.mxu1 %v7661_v51 }
 0x28c   : > { %v6538_v1 = vpop.f32.mrb[136].mxu0  ;;  %v9674_v37 = vadd.f32 %v9612_v27, %v2604_v14 }
 0x28d   : > { %v6539_v45 = vpop.f32.mrb[137].mxu0 }
 0x28e   : > { %v6540_v43 = vadd.f32 %v6539_v45, %v6538_v1  ;;  %v6541_v32 = vpop.f32.mrb[138].mxu0 }
 0x28f   : > { %v6542_v25 = vpop.f32.mrb[139].mxu0 }
 0x290   : > { %v2609_v23 = vadd.f32 %v6540_v43, %v9443_v6  ;;  %v6543_v10 = vadd.f32 %v6542_v25, %v6541_v32 }
 0x292   : > { %v2612_v40 = vadd.f32 %v6543_v10, %v9448_v4  ;;  %v9679_v31 = vadd.f32 %v9621_v56, %v2609_v23 }
 0x294   : > { %v6544_v16 = vpop.f32.mrb[140].mxu0  ;;  %v9682_v27 = vadd.f32 %v9624_v55, %v2612_v40 }
 0x295   : > { %v6545_v2 = vpop.f32.mrb[141].mxu0 }
 0x296   : > { %v6546_v29 = vadd.f32 %v6545_v2, %v6544_v16  ;;  %v6547_v58 = vpop.f32.mrb[142].mxu0 }
 0x297   : > { %v6548_v9 = vpop.f32.mrb[143].mxu0 }
 0x298   : > { %v2617_v6 = vadd.f32 %v6546_v29, %v9459_v19  ;;  %v6549_v18 = vadd.f32 %v6548_v9, %v6547_v58  ;;  %v11202_v29 = vld [vmem:[#allocation17_spill] sm:$0xff] }
 0x29a   : > { %v2620_v38 = vadd.f32 %v6549_v18, %v9464_v52  ;;  %v9687_v4 = vadd.f32 %v9633_v20, %v2617_v6  ;;  %v9698_v20 = vld [vmem:[#allocation7 + $0x200] sm:$0xff]  }
 0x29b   : > { %7230 = vmatprep.subr.bf16.mxu1 %v9698_v20 }
 0x29c   : > { %v7200_v56 = vpop.f32.mrb[144].mxu0  ;;  %v9690_v7 = vadd.f32 %v9636_v28, %v2620_v38 }
 0x29d   : > { %v2827_v55 = vadd.f32 %v7200_v56, %v9543_v24  ;;  %v2818_v54 = vpop.f32.mrb[145].mxu0 }
 0x29e   : > { %v2819_v35 = vadd.f32 %v2818_v54, %v9531_v62  ;;  %v7201_v61 = vpop.f32.mrb[146].mxu0 }
 0x29f   : > { %v2947_v33 = vmax.f32 %v2827_v55, 0.0  ;;  %v2830_v14 = vadd.f32 %v7201_v61, %v9546_v13  ;;  %v2821_v19 = vpop.f32.mrb[147].mxu0 }
 0x2a0   : > { %v2945_v49 = vmax.f32 %v2819_v35, 0.0  ;;  %v2822_v52 = vadd.f32 %v2821_v19, %v9534_v12 }
 0x2a1   : > { %v9696_v1 = vmax.f32 %v2830_v14, 0.0  ;;  %v3011_v45 = vrot.slane %v2947_v33, 7  ;;  %v3162_v24 = vrot.slane %v2947_v33, 1  ;;  %v7657_v14 = vld [vmem:[#allocation7 + $0x180] sm:$0xff]  }
 0x2a2   : > { %v3007_v28 = vrot.slane %v2945_v49, 7  ;;  %v3158_v43 = vrot.slane %v2945_v49, 1  ;;  %v2946_v32 = vmax.f32 %v2822_v52, 0.0 }
 0x2a3   : > { %v3013_v25 = vrot.slane %v9696_v1, 7  ;;  %v3164_v62 = vrot.slane %v9696_v1, 1  ;;  %v9703_v23 = vpack.c.bf16 %v9696_v1, %v2947_v33  ;;  %v7658_v1 = vld [vmem:[#allocation7 + $0x1c8] sm:$0xff]  }
 0x2a4   : > { %v3159_v12 = vsel %vm11201_vm6, %v11184_v21, %v3158_v43  ;;  %v3009_v13 = vrot.slane %v2946_v32, 7  ;;  %v3160_v10 = vrot.slane %v2946_v32, 1  ;;  %v7204_v5 = vpop.f32.mrb[148].mxu0  ;;  %v9708_v40 = vpack.c.bf16 %v2946_v32, %v2945_v49  ;;  %vm11205_vm6 = vmmov %vm11203_vm5 }
 0x2a5   : > { %v5946_v51 = vpack.c.bf16 %v3159_v12, %v11184_v21  ;;  %v2843_v16 = vadd.f32 %v7204_v5, %v9567_v63  ;;  %v2834_v2 = vpop.f32.mrb[149].mxu0  ;;  %v3008_v58 = vsel %vm11203_vm5, %v11202_v29, %v3007_v28  ;;  %v3014_v9 = vsel %vm11204_vm10, %v3011_v45, %v3013_v25  ;;  %vm11208_vm10 = vmmov %vm11207_vm3 }
 0x2a6   : > { %v2835_v6 = vadd.f32 %v2834_v2, %v9555_v15  ;;  %v7205_v18 = vpop.f32.mrb[150].mxu0  ;;  %4124 = vmatprep.mubr.bf16.mxu1 %v9708_v40  ;;  %v3010_v38 = vsel %vm11205_vm6, %v3007_v28, %v3009_v13  ;;  %v3012_v56 = vsel %vm11206_vm1, %v3009_v13, %v3011_v45  ;;  %v3161_v55 = vsel %vm11207_vm3, %v3158_v43, %v3160_v10  ;;  %vm11209_vm5 = vmmov %vm11207_vm3  ;;  %v11210_v45 = vld [vmem:[#allocation25_spill] sm:$0xff] }
 0x2a7   : > { %v2951_v54 = vmax.f32 %v2843_v16, 0.0  ;;  %v2846_v63 = vadd.f32 %v7205_v18, %v9570_v53  ;;  %v2837_v35 = vpop.f32.mrb[151].mxu0  ;;  %v5898_v61 = vpack.c.bf16 %v3010_v38, %v3008_v58  ;;  %v9721_v33 = vpack.c.bf16 %v3014_v9, %v3012_v56  ;;  %v7659_v16 = vld [vmem:[#allocation7 + $0x188] sm:$0xff]   ;;  %vm11214_vm3 = vmmov %vm11205_vm6  ;;  %v7662_v18 = vld [vmem:[#allocation7 + $0x1d0] sm:$0xff]  }
 0x2a8   : > { %v2949_v19 = vmax.f32 %v2835_v6, 0.0  ;;  %v2838_v15 = vadd.f32 %v2837_v35, %v9558_v26  ;;  %v3163_v49 = vsel %vm11208_vm10, %v3160_v10, %v3162_v24  ;;  %v3165_v52 = vsel %vm11209_vm5, %v3162_v24, %v3164_v62  ;;  %vm11215_vm6 = vmmov %vm11209_vm5 }
 0x2a9   : > { %v9726_v28 = vmax.f32 %v2846_v63, 0.0  ;;  %vm11211_vm1 = vnez %v11210_v45  ;;  %5944 = vmatprep.mubr.msk.bf16.mxu0 %vm11194_vm9, %v5898_v61  ;;  %v9732_v53 = vpack.c.bf16 %v3163_v49, %v3161_v55  ;;  %v3019_v43 = vrot.slane %v2951_v54, 7  ;;  %vm11216_vm10 = vmmov %vm11214_vm3  ;;  %v7667_v45 = vld [vmem:[#allocation7 + $0x1a0] sm:$0xff]  }
 0x2aa   : > { %5899 = vmatmul.mubr.msk.bf16.gmra.mrb[116].mxu1 %vm11211_vm1, %v5898_v61  ;;  %v3015_v32 = vrot.slane %v2949_v19, 7  ;;  %v3166_v12 = vrot.slane %v2949_v19, 1  ;;  %v2950_v13 = vmax.f32 %v2838_v15, 0.0  ;;  %5947 = vmatmul.mubr.msk.bf16.vlgmr.msra.gmra.mrb[176].mxu0 %vm9148_vm0, %v5946_v51  ;;  %v3170_v26 = vrot.slane %v2951_v54, 1 }
 0x2ab   : > { %4132 = vmatprep.mubr.bf16.mxu1 %v9703_v23  ;;  %v3021_v24 = vrot.slane %v9726_v28, 7  ;;  %v3172_v10 = vrot.slane %v9726_v28, 1  ;;  %5950 = vmatprep.mubr.msk.bf16.mxu0 %vm11211_vm1, %v9721_v33  ;;  %v9743_v5 = vpack.c.bf16 %v9726_v28, %v2951_v54  ;;  %vm11217_vm1 = vmmov %vm11214_vm3  ;;  %v7663_v28 = vld [vmem:[#allocation7 + $0x190] sm:$0xff]  }
 0x2ac   : > { %7023 = vmatpush3.bf16.msra.mxu0 %v7657_v14  ;;  %v3017_v2 = vrot.slane %v2950_v13, 7  ;;  %v3168_v58 = vrot.slane %v2950_v13, 1  ;;  %v7208_v9 = vpop.f32.mrb[152].mxu0  ;;  %v9745_v6 = vpack.c.bf16 %v2950_v13, %v2949_v19  ;;  %v3016_v51 = vsel %vm11214_vm3, %v3013_v25, %v3015_v32  ;;  %vm11218_vm9 = vmmov %vm11217_vm1 }
 0x2ad   : > { %11212 = vst [vmem:[#allocation67_spill] sm:$0xff] %v9743_v5  ;;  %7024 = vmatprep.subr.bf16.mxu0 %v7658_v1  ;;  %v2859_v38 = vadd.f32 %v7208_v9, %v9591_v22  ;;  %v2850_v56 = vpop.f32.mrb[153].mxu0  ;;  %v3167_v55 = vsel %vm11215_vm6, %v3164_v62, %v3166_v12  ;;  %v3022_v63 = vsel %vm11216_vm10, %v3019_v43, %v3021_v24  ;;  %v11221_v9 = vld [vmem:[#allocation56_spill] sm:$0xff]  ;;  %vm11222_vm3 = vmmov %vm11209_vm5 }
 0x2ae   : > { %11213 = vst [vmem:[#allocation75_spill] sm:$0xff] %v9745_v6  ;;  %v3173_v54 = vsel %vm11209_vm5, %v3170_v26, %v3172_v10  ;;  %v2851_v35 = vadd.f32 %v2850_v56, %v9579_v59  ;;  %v7209_v61 = vpop.f32.mrb[154].mxu0  ;;  %v3018_v14 = vsel %vm11217_vm1, %v3015_v32, %v3017_v2  ;;  %v9754_v19 = vpack.c.bf16 %v3167_v55, %v3165_v52  ;;  %vm11223_vm1 = vmmov %vm11222_vm3  ;;  %v7664_v32 = vld [vmem:[#allocation7 + $0x1d8] sm:$0xff]  }
 0x2af   : > { %v3020_v25 = vsel %vm11218_vm9, %v3017_v2, %v3019_v43  ;;  %v2955_v15 = vmax.f32 %v2859_v38, 0.0  ;;  %v2862_v49 = vadd.f32 %v7209_v61, %v9594_v34  ;;  %v2853_v22 = vpop.f32.mrb[155].mxu0  ;;  %v9758_v1 = vpack.c.bf16 %v3018_v14, %v3016_v51  ;;  %v11224_v34 = vld [vmem:[#allocation30_spill] sm:$0xff]  ;;  %vm11229_vm6 = vmmov %vm11216_vm10 }
 0x2b0   : > { %v9760_v62 = vpack.c.bf16 %v3022_v63, %v3020_v25  ;;  %7025 = vmatpush3.bf16.msra.mxu0 %v7659_v16  ;;  %v2953_v13 = vmax.f32 %v2851_v35, 0.0  ;;  %v2854_v59 = vadd.f32 %v2853_v22, %v11221_v9  ;;  %v3169_v56 = vsel %vm11222_vm3, %v3166_v12, %v3168_v58  ;;  %v7665_v35 = vld [vmem:[#allocation7 + $0x198] sm:$0xff]   ;;  %v7666_v9 = vld [vmem:[#allocation7 + $0x1e0] sm:$0xff]   ;;  %vm11230_vm10 = vmmov %vm11223_vm1 }
 0x2b1   : > { %11219 = vst [vmem:[#allocation43_spill] sm:$0xff] %v9758_v1  ;;  %v3171_v52 = vsel %vm11223_vm1, %v3168_v58, %v3170_v26  ;;  %7026 = vmatprep.subr.bf16.mxu0 %v7662_v18  ;;  %v9765_v43 = vmax.f32 %v2862_v49, 0.0  ;;  %vm11225_vm9 = vnez %v11224_v34  ;;  %v3027_v51 = vrot.slane %v2955_v15, 7  ;;  %vm11231_vm5 = vmmov %vm11229_vm6 }
 0x2b2   : > { %11220 = vst [vmem:[#allocation60_spill] sm:$0xff] %v9760_v62  ;;  %5902 = vmatmul.mubr.msk.bf16.gmra.mrb[120].mxu1 %vm11225_vm9, %v9721_v33  ;;  %v9770_v2 = vpack.c.bf16 %v3171_v52, %v3169_v56  ;;  %v3023_v16 = vrot.slane %v2953_v13, 7  ;;  %v3174_v38 = vrot.slane %v2953_v13, 1  ;;  %v2954_v55 = vmax.f32 %v2854_v59, 0.0  ;;  %5953 = vmatmul.mubr.msk.bf16.gmra.mrb[180].mxu0 %vm9163_vm7, %v9732_v53  ;;  %vm11232_vm3 = vmmov %vm11223_vm1 }
 0x2b3   : > { %4140 = vmatprep.mubr.bf16.mxu1 %v9745_v6  ;;  %v3178_v26 = vrot.slane %v2955_v15, 1  ;;  %v3029_v58 = vrot.slane %v9765_v43, 7  ;;  %v3180_v18 = vrot.slane %v9765_v43, 1  ;;  %5956 = vmatprep.mubr.msk.bf16.mxu0 %vm11225_vm9, %v9758_v1  ;;  %v9782_v63 = vpack.c.bf16 %v9765_v43, %v2955_v15  ;;  %vm11233_vm1 = vmmov %vm11231_vm5 }
 0x2b4   : > { %7027 = vmatpush3.bf16.msra.mxu0 %v7663_v28  ;;  %v3025_v61 = vrot.slane %v2954_v55, 7  ;;  %v3176_v14 = vrot.slane %v2954_v55, 1  ;;  %v7212_v25 = vpop.f32.mrb[156].mxu0  ;;  %v9784_v49 = vpack.c.bf16 %v2954_v55, %v2953_v13  ;;  %v3024_v22 = vsel %vm11229_vm6, %v3021_v24, %v3023_v16  ;;  %vm11234_vm9 = vmmov %vm11233_vm1 }
 0x2b5   : > { %11227 = vst [vmem:[#allocation18_spill] sm:$0xff] %v9782_v63  ;;  %7028 = vmatprep.subr.bf16.mxu0 %v7664_v32  ;;  %v2875_v59 = vadd.f32 %v7212_v25, %v9615_v46  ;;  %v2866_v56 = vpop.f32.mrb[157].mxu0  ;;  %v3175_v52 = vsel %vm11230_vm10, %v3172_v10, %v3174_v38  ;;  %v3030_v29 = vsel %vm11231_vm5, %v3027_v51, %v3029_v58  ;;  %vm11237_vm6 = vmmov %vm11232_vm3  ;;  %v11321_v12 = vld [vmem:[#allocation75_spill] sm:$0xff] }
 0x2b6   : > { %11228 = vst [vmem:[#allocation29_spill] sm:$0xff] %v9784_v49  ;;  %v3181_v15 = vsel %vm11232_vm3, %v3178_v26, %v3180_v18  ;;  %v2867_v28 = vadd.f32 %v2866_v56, %v9603_v36  ;;  %v7213_v43 = vpop.f32.mrb[158].mxu0  ;;  %v3026_v34 = vsel %vm11233_vm1, %v3023_v16, %v3025_v61  ;;  %v9793_v13 = vpack.c.bf16 %v3175_v52, %v3173_v54  ;;  %vm11238_vm10 = vmmov %vm11232_vm3  ;;  %v7668_v16 = vld [vmem:[#allocation7 + $0x1e8] sm:$0xff]  }
 0x2b7   : > { %v3028_v24 = vsel %vm11234_vm9, %v3025_v61, %v3027_v51  ;;  %v2959_v32 = vmax.f32 %v2875_v59, 0.0  ;;  %v2878_v55 = vadd.f32 %v7213_v43, %v9618_v47  ;;  %v2869_v46 = vpop.f32.mrb[159].mxu0  ;;  %v9797_v25 = vpack.c.bf16 %v3026_v34, %v3024_v22  ;;  %v11239_v47 = vld [vmem:[#allocation37_spill] sm:$0xff]  ;;  %vm11243_vm5 = vmmov %vm11233_vm1 }
 0x2b8   : > { %v9799_v10 = vpack.c.bf16 %v3030_v29, %v3028_v24  ;;  %7029 = vmatpush3.bf16.msra.mxu0 %v7665_v35  ;;  %v2957_v6 = vmax.f32 %v2867_v28, 0.0  ;;  %v2870_v36 = vadd.f32 %v2869_v46, %v9606_v8  ;;  %v3177_v56 = vsel %vm11237_vm6, %v3174_v38, %v3176_v14  ;;  %v7669_v59 = vld [vmem:[#allocation7 + $0x1a8] sm:$0xff]   ;;  %v7671_v46 = vld [vmem:[#allocation7 + $0x1f0] sm:$0xff]   ;;  %vm11244_vm6 = vmmov %vm11232_vm3 }
 0x2b9   : > { %11235 = vst [vmem:[#allocation34_spill] sm:$0xff] %v9797_v25  ;;  %v3179_v54 = vsel %vm11238_vm10, %v3176_v14, %v3178_v26  ;;  %7030 = vmatprep.subr.bf16.mxu0 %v7666_v9  ;;  %v9804_v51 = vmax.f32 %v2878_v55, 0.0  ;;  %vm11240_vm9 = vnez %v11239_v47  ;;  %v3035_v29 = vrot.slane %v2959_v32, 7  ;;  %vm11245_vm10 = vmmov %vm11233_vm1  ;;  %v11323_v8 = vld [vmem:[#allocation25_spill] sm:$0xff] }
 0x2ba   : > { %11236 = vst [vmem:[#allocation32_spill] sm:$0xff] %v9799_v10  ;;  %5905 = vmatmul.mubr.msk.bf16.gmra.mrb[124].mxu1 %vm11240_vm9, %v9758_v1  ;;  %v9809_v34 = vpack.c.bf16 %v3179_v54, %v3177_v56  ;;  %v3031_v35 = vrot.slane %v2957_v6, 7  ;;  %v3182_v61 = vrot.slane %v2957_v6, 1  ;;  %v2958_v22 = vmax.f32 %v2870_v36, 0.0  ;;  %5959 = vmatmul.mubr.msk.bf16.gmra.mrb[184].mxu0 %vm9179_vm2, %v9754_v19  ;;  %v7672_v1 = vld [vmem:[#allocation7 + $0x1b0] sm:$0xff]  }
 0x2bb   : > { %4148 = vmatprep.mubr.bf16.mxu1 %v9743_v5  ;;  %v3186_v38 = vrot.slane %v2959_v32, 1  ;;  %v3037_v26 = vrot.slane %v9804_v51, 7  ;;  %v3188_v14 = vrot.slane %v9804_v51, 1  ;;  %5962 = vmatprep.mubr.msk.bf16.mxu0 %vm11240_vm9, %v9760_v62  ;;  %v9821_v9 = vpack.c.bf16 %v9804_v51, %v2959_v32  ;;  %vm11246_vm9 = vmmov %vm11233_vm1 }
 0x2bc   : > { %7031 = vmatpush3.bf16.msra.mxu0 %v7667_v45  ;;  %v3033_v52 = vrot.slane %v2958_v22, 7  ;;  %v3184_v28 = vrot.slane %v2958_v22, 1  ;;  %v7216_v43 = vpop.f32.mrb[160].mxu0  ;;  %v9823_v24 = vpack.c.bf16 %v2958_v22, %v2957_v6  ;;  %v3032_v55 = vsel %vm11243_vm5, %v3029_v58, %v3031_v35  ;;  %vm11247_vm5 = vmmov %vm11232_vm3 }
 0x2bd   : > { %7032 = vmatprep.subr.bf16.mxu0 %v7668_v16  ;;  %v2891_v36 = vadd.f32 %v7216_v43, %v9639_v44  ;;  %v2882_v56 = vpop.f32.mrb[161].mxu0  ;;  %v3183_v54 = vsel %vm11232_vm3, %v3180_v18, %v3182_v61  ;;  %v3038_v47 = vsel %vm11233_vm1, %v3035_v29, %v3037_v26  ;;  %v3189_v32 = vsel %vm11244_vm6, %v3186_v38, %v3188_v14  ;;  %vm11251_vm6 = vmmov %vm11232_vm3 }
 0x2be   : > { %11242 = vst [vmem:[#allocation38_spill] sm:$0xff] %v9823_v24  ;;  %v2883_v45 = vadd.f32 %v2882_v56, %v9627_v50  ;;  %v7217_v51 = vpop.f32.mrb[162].mxu0  ;;  %v3034_v5 = vsel %vm11245_vm10, %v3031_v35, %v3033_v52  ;;  %v9832_v6 = vpack.c.bf16 %v3183_v54, %v3181_v15  ;;  %v3036_v58 = vsel %vm11246_vm9, %v3033_v52, %v3035_v29  ;;  %v7673_v35 = vld [vmem:[#allocation7 + $0x1f8] sm:$0xff]   ;;  %vm11252_vm10 = vmmov %vm11233_vm1 }
 0x2bf   : > { %v2963_v16 = vmax.f32 %v2891_v36, 0.0  ;;  %v2894_v22 = vadd.f32 %v7217_v51, %v9642_v17  ;;  %v2885_v44 = vpop.f32.mrb[163].mxu0  ;;  %v9836_v43 = vpack.c.bf16 %v3034_v5, %v3032_v55  ;;  %v9838_v18 = vpack.c.bf16 %v3038_v47, %v3036_v58  ;;  %v11248_v17 = vld [vmem:[#allocation28_spill] sm:$0xff]  ;;  %v7674_v36 = vld [vmem:[#allocation7 + $0x1b8] sm:$0xff]  }
 0x2c0   : > { %7033 = vmatpush3.bf16.msra.mxu0 %v7669_v59  ;;  %v2961_v60 = vmax.f32 %v2883_v45, 0.0  ;;  %v2886_v50 = vadd.f32 %v2885_v44, %v9630_v30  ;;  %v3185_v56 = vsel %vm11247_vm5, %v3182_v61, %v3184_v28  ;;  %v3187_v15 = vsel %vm11232_vm3, %v3184_v28, %v3186_v38  ;;  %vm11253_vm5 = vmmov %vm11232_vm3 }
 0x2c1   : > { %7034 = vmatprep.subr.bf16.mxu0 %v7671_v46  ;;  %v9843_v29 = vmax.f32 %v2894_v22, 0.0  ;;  %vm11249_vm9 = vnez %v11248_v17  ;;  %v9848_v5 = vpack.c.bf16 %v3187_v15, %v3185_v56  ;;  %v3043_v47 = vrot.slane %v2963_v16, 7  ;;  %vm11254_vm3 = vmmov %vm11233_vm1 }
 0x2c2   : > { %5908 = vmatmul.mubr.msk.bf16.gmra.mrb[128].mxu1 %vm11249_vm9, %v9760_v62  ;;  %v3039_v59 = vrot.slane %v2961_v60, 7  ;;  %v3190_v52 = vrot.slane %v2961_v60, 1  ;;  %v2962_v55 = vmax.f32 %v2886_v50, 0.0  ;;  %5965 = vmatmul.mubr.msk.bf16.gmra.mrb[188].mxu0 %vm9194_vm12, %v9770_v2  ;;  %v3194_v61 = vrot.slane %v2963_v16, 1 }
 0x2c3   : > { %4156 = vmatprep.mubr.bf16.mxu1 %v9784_v49  ;;  %v3045_v38 = vrot.slane %v9843_v29, 7  ;;  %v3196_v28 = vrot.slane %v9843_v29, 1  ;;  %5968 = vmatprep.mubr.msk.bf16.mxu0 %vm11249_vm9, %v9797_v25  ;;  %v9860_v46 = vpack.c.bf16 %v9843_v29, %v2963_v16  ;;  %vm11255_vm9 = vmmov %vm11233_vm1 }
 0x2c4   : > { %7035 = vmatpush3.bf16.msra.mxu0 %v7672_v1  ;;  %v3041_v54 = vrot.slane %v2962_v55, 7  ;;  %v3192_v45 = vrot.slane %v2962_v55, 1  ;;  %v7220_v51 = vpop.f32.mrb[164].mxu0  ;;  %v9862_v58 = vpack.c.bf16 %v2962_v55, %v2961_v60  ;;  %v3040_v22 = vsel %vm11233_vm1, %v3037_v26, %v3039_v59  ;;  %vm11256_vm1 = vmmov %vm11253_vm5 }
 0x2c5   : > { %7036 = vmatprep.subr.bf16.mxu0 %v7673_v35  ;;  %v2907_v44 = vadd.f32 %v7220_v51, %v9655_v48  ;;  %v2898_v50 = vpop.f32.mrb[165].mxu0  ;;  %v3191_v56 = vsel %vm11251_vm6, %v3188_v14, %v3190_v52  ;;  %v3046_v15 = vsel %vm11252_vm10, %v3043_v47, %v3045_v38  ;;  %v3197_v16 = vsel %vm11253_vm5, %v3194_v61, %v3196_v28  ;;  %vm11257_vm6 = vmmov %vm11256_vm1 }
 0x2c6   : > { %v2899_v1 = vadd.f32 %v2898_v50, %v9647_v0  ;;  %v7221_v29 = vpop.f32.mrb[166].mxu0  ;;  %v3042_v17 = vsel %vm11254_vm3, %v3039_v59, %v3041_v54  ;;  %v9871_v49 = vpack.c.bf16 %v3191_v56, %v3189_v32  ;;  %v3044_v60 = vsel %vm11255_vm9, %v3041_v54, %v3043_v47  ;;  %v11258_v50 = vld [vmem:[#allocation33_spill] sm:$0xff]  ;;  %vm11261_vm10 = vmmov %vm11254_vm3 }
 0x2c7   : > { %v2967_v26 = vmax.f32 %v2907_v44, 0.0  ;;  %v2910_v35 = vadd.f32 %v7221_v29, %v9658_v42  ;;  %v2901_v48 = vpop.f32.mrb[167].mxu0  ;;  %v9875_v55 = vpack.c.bf16 %v3042_v17, %v3040_v22  ;;  %v9877_v14 = vpack.c.bf16 %v3046_v15, %v3044_v60  ;;  %vm11262_vm5 = vmmov %vm11256_vm1 }
 0x2c8   : > { %7037 = vmatpush3.bf16.msra.mxu0 %v7674_v36  ;;  %v2965_v51 = vmax.f32 %v2899_v1, 0.0  ;;  %v2902_v62 = vadd.f32 %v2901_v48, %v9650_v3  ;;  %v3193_v0 = vsel %vm11256_vm1, %v3190_v52, %v3192_v45  ;;  %v3195_v59 = vsel %vm11257_vm6, %v3192_v45, %v3194_v61  ;;  %v11260_v36 = vld [vmem:[#allocation31_spill] sm:$0xff]  ;;  %vm11263_vm6 = vmmov %vm11254_vm3 }
 0x2c9   : > { %v2968_v32 = vmax.f32 %v2910_v35, 0.0  ;;  %vm11259_vm9 = vnez %v11258_v50  ;;  %v9885_v47 = vpack.c.bf16 %v3195_v59, %v3193_v0  ;;  %v3051_v42 = vrot.slane %v2967_v26, 7 }
 0x2ca   : > { %5911 = vmatmul.mubr.msk.bf16.gmra.mrb[132].mxu1 %vm11259_vm9, %v9797_v25  ;;  %v3047_v17 = vrot.slane %v2965_v51, 7  ;;  %v3198_v54 = vrot.slane %v2965_v51, 1  ;;  %v2966_v22 = vmax.f32 %v2902_v62, 0.0  ;;  %5971 = vmatmul.mubr.msk.bf16.gmra.mrb[192].mxu0 %vm11153_vm4, %v9793_v13  ;;  %v3202_v3 = vrot.slane %v2967_v26, 1 }
 0x2cb   : > { %4164 = vmatprep.mubr.bf16.mxu1 %v9782_v63  ;;  %v3053_v52 = vrot.slane %v2968_v32, 7  ;;  %v3204_v61 = vrot.slane %v2968_v32, 1  ;;  %5974 = vmatprep.mubr.msk.bf16.mxu0 %vm11259_vm9, %v9799_v10  ;;  %v9894_v45 = vpack.c.bf16 %v2968_v32, %v2967_v26  ;;  %vm11264_vm9 = vmmov %vm11254_vm3 }
 0x2cc   : > { %v3049_v44 = vrot.slane %v2966_v22, 7  ;;  %v3200_v56 = vrot.slane %v2966_v22, 1  ;;  %v7224_v15 = vpop.f32.mrb[168].mxu0  ;;  %v9896_v1 = vpack.c.bf16 %v2966_v22, %v2965_v51  ;;  %v3048_v62 = vsel %vm11261_vm10, %v3045_v38, %v3047_v17  ;;  %vm11265_vm10 = vmmov %vm11256_vm1 }
 0x2cd   : > { %v2923_v29 = vadd.f32 %v7224_v15, %v9671_v39  ;;  %v2914_v60 = vpop.f32.mrb[169].mxu0  ;;  %v3199_v35 = vsel %vm11262_vm5, %v3196_v28, %v3198_v54  ;;  %v3054_v48 = vsel %vm11254_vm3, %v3051_v42, %v3053_v52  ;;  %v3205_v0 = vsel %vm11256_vm1, %v3202_v3, %v3204_v61  ;;  %vm11266_vm5 = vmmov %vm11256_vm1 }
 0x2ce   : > { %v2915_v59 = vadd.f32 %v2914_v60, %v9663_v11  ;;  %v7225_v26 = vpop.f32.mrb[170].mxu0  ;;  %v3050_v32 = vsel %vm11263_vm6, %v3047_v17, %v3049_v44  ;;  %v9905_v50 = vpack.c.bf16 %v3199_v35, %v3197_v16  ;;  %v3052_v51 = vsel %vm11264_vm9, %v3049_v44, %v3051_v42  ;;  %v11267_v16 = vld [vmem:[#allocation40_spill] sm:$0xff]  ;;  %vm11270_vm9 = vmmov %vm11263_vm6 }
 0x2cf   : > { %v2971_v22 = vmax.f32 %v2923_v29, 0.0  ;;  %v2926_v38 = vadd.f32 %v7225_v26, %v9674_v37  ;;  %v2917_v39 = vpop.f32.mrb[171].mxu0  ;;  %v9909_v15 = vpack.c.bf16 %v3050_v32, %v3048_v62  ;;  %v9911_v28 = vpack.c.bf16 %v3054_v48, %v3052_v51 }
 0x2d0   : > { %v2969_v63 = vmax.f32 %v2915_v59, 0.0  ;;  %v2918_v25 = vadd.f32 %v2917_v39, %v9666_v57  ;;  %v3201_v11 = vsel %vm11265_vm10, %v3198_v54, %v3200_v56  ;;  %v3203_v60 = vsel %vm11266_vm5, %v3200_v56, %v3202_v3  ;;  %vm11271_vm10 = vmmov %vm11256_vm1 }
 0x2d1   : > { %v2972_v17 = vmax.f32 %v2926_v38, 0.0  ;;  %vm11268_vm3 = vnez %v11267_v16  ;;  %v9919_v42 = vpack.c.bf16 %v3203_v60, %v3201_v11  ;;  %v3059_v37 = vrot.slane %v2971_v22, 7  ;;  %vm11272_vm5 = vmmov %vm11263_vm6 }
 0x2d2   : > { %5914 = vmatmul.mubr.msk.bf16.gmra.mrb[136].mxu1 %vm11268_vm3, %v9799_v10  ;;  %v3055_v44 = vrot.slane %v2969_v63, 7  ;;  %v3206_v62 = vrot.slane %v2969_v63, 1  ;;  %v2970_v29 = vmax.f32 %v2918_v25, 0.0  ;;  %5977 = vmatmul.mubr.msk.bf16.gmra.mrb[196].mxu0 %vm11156_vm15, %v9809_v34  ;;  %v3210_v57 = vrot.slane %v2971_v22, 1 }
 0x2d3   : > { %4172 = vmatprep.mubr.bf16.mxu1 %v9823_v24  ;;  %v3061_v54 = vrot.slane %v2972_v17, 7  ;;  %v3212_v3 = vrot.slane %v2972_v17, 1  ;;  %5980 = vmatprep.mubr.msk.bf16.mxu0 %vm11268_vm3, %v9836_v43  ;;  %v9928_v56 = vpack.c.bf16 %v2972_v17, %v2971_v22  ;;  %vm11273_vm3 = vmmov %vm11272_vm5 }
 0x2d4   : > { %v3057_v48 = vrot.slane %v2970_v29, 7  ;;  %v3208_v59 = vrot.slane %v2970_v29, 1  ;;  %v7228_v26 = vpop.f32.mrb[172].mxu0  ;;  %v9930_v32 = vpack.c.bf16 %v2970_v29, %v2969_v63  ;;  %v3056_v25 = vsel %vm11270_vm9, %v3053_v52, %v3055_v44  ;;  %vm11274_vm9 = vmmov %vm11256_vm1 }
 0x2d5   : > { %v2939_v51 = vadd.f32 %v7228_v26, %v9687_v4  ;;  %v2930_v38 = vpop.f32.mrb[173].mxu0  ;;  %v3207_v39 = vsel %vm11256_vm1, %v3204_v61, %v3206_v62  ;;  %v3062_v11 = vsel %vm11263_vm6, %v3059_v37, %v3061_v54  ;;  %v3213_v60 = vsel %vm11271_vm10, %v3210_v57, %v3212_v3  ;;  %vm11280_vm6 = vmmov %vm11272_vm5 }
 0x2d6   : > { %v2931_v16 = vadd.f32 %v2930_v38, %v9679_v31  ;;  %v7229_v22 = vpop.f32.mrb[174].mxu0  ;;  %v3058_v17 = vsel %vm11272_vm5, %v3055_v44, %v3057_v48  ;;  %v9939_v24 = vpack.c.bf16 %v3207_v39, %v3205_v0  ;;  %v3060_v63 = vsel %vm11273_vm3, %v3057_v48, %v3059_v37  ;;  %v11276_v0 = vld [vmem:[#allocation47_spill] sm:$0xff]  ;;  %vm11281_vm10 = vmmov %vm11256_vm1 }
 0x2d7   : > { %v2975_v29 = vmax.f32 %v2939_v51, 0.0  ;;  %v2942_v52 = vadd.f32 %v7229_v22, %v9690_v7  ;;  %v2933_v4 = vpop.f32.mrb[175].mxu0  ;;  %v9943_v26 = vpack.c.bf16 %v3058_v17, %v3056_v25  ;;  %v9945_v61 = vpack.c.bf16 %v3062_v11, %v3060_v63 }
 0x2d8   : > { %v2973_v10 = vmax.f32 %v2931_v16, 0.0  ;;  %v2934_v35 = vadd.f32 %v2933_v4, %v9682_v27  ;;  %v3209_v31 = vsel %vm11274_vm9, %v3206_v62, %v3208_v59  ;;  %v3211_v38 = vsel %vm11256_vm1, %v3208_v59, %v3210_v57  ;;  %v11278_v27 = vld [vmem:[#allocation45_spill] sm:$0xff]  ;;  %vm11282_vm9 = vmmov %vm11256_vm1 }
 0x2d9   : > { %v9950_v44 = vmax.f32 %v2942_v52, 0.0  ;;  %vm11277_vm3 = vnez %v11276_v0  ;;  %v9955_v37 = vpack.c.bf16 %v3211_v38, %v3209_v31  ;;  %v3218_v7 = vrot.slane %v2975_v29, 1  ;;  %vm11283_vm1 = vmmov %vm11272_vm5 }
 0x2da   : > { %5917 = vmatmul.mubr.msk.bf16.gmra.mrb[140].mxu1 %vm11277_vm3, %v9836_v43  ;;  %v3063_v48 = vrot.slane %v2973_v10, 7  ;;  %v3214_v25 = vrot.slane %v2973_v10, 1  ;;  %v2974_v51 = vmax.f32 %v2934_v35, 0.0  ;;  %5983 = vmatmul.mubr.msk.bf16.gmra.mrb[200].mxu0 %vm11159_vm11, %v9832_v6  ;;  %v3299_v16 = vrot.slane %v2975_v29, 7  ;;  %vm11285_vm11 = vmmov %vm11282_vm9 }
 0x2db   : > { %11275 = vst [vmem:[#allocation44_spill] sm:$0xff] %v9950_v44  ;;  %4180 = vmatprep.mubr.bf16.mxu1 %v9821_v9  ;;  %v10877_v62 = vrot.slane %v9950_v44, 7  ;;  %v3354_v57 = vrot.slane %v9950_v44, 1  ;;  %5986 = vmatprep.mubr.msk.bf16.mxu0 %vm11277_vm3, %v9838_v18  ;;  %v9967_v59 = vpack.c.bf16 %v9950_v44, %v2975_v29  ;;  %vm11284_vm3 = vmmov %vm11283_vm1  ;;  %v11288_v44 = vld [vmem:[#allocation52_spill] sm:$0xff] }
 0x2dc   : > { %v3065_v39 = vrot.slane %v2974_v51, 7  ;;  %v3216_v35 = vrot.slane %v2974_v51, 1  ;;  %v9969_v11 = vpack.c.bf16 %v2974_v51, %v2973_v10  ;;  %v3064_v22 = vsel %vm11280_vm6, %v3061_v54, %v3063_v48  ;;  %vm11286_vm6 = vmmov %vm11282_vm9 }
 0x2dd   : > { %11279 = vst [vmem:[#allocation56_spill] sm:$0xff] %v9967_v59  ;;  %v3215_v17 = vsel %vm11281_vm10, %v3212_v3, %v3214_v25  ;;  %v3302_v63 = vsel %vm11272_vm5, %v3299_v16, %v10877_v62  ;;  %v3355_v52 = vsel %vm11282_vm9, %v3218_v7, %v3354_v57  ;;  %vm11287_vm10 = vmmov %vm11286_vm6  ;;  %vm11289_vm5 = vnez %v11288_v44  ;;  %v7675_v59 = vld [vmem:[#allocation7 + $0x208] sm:$0xff]  }
 0x2de   : > { %v3066_v4 = vsel %vm11283_vm1, %v3063_v48, %v3065_v39  ;;  %v9978_v31 = vpack.c.bf16 %v3215_v17, %v3213_v60  ;;  %v3300_v29 = vsel %vm11284_vm3, %v3065_v39, %v3299_v16  ;;  %v3217_v54 = vsel %vm11285_vm11, %v3214_v25, %v3216_v35  ;;  %v11294_v25 = vld [vmem:[#allocation62_spill] sm:$0xff] }
 0x2df   : > { %v9981_v38 = vpack.c.bf16 %v3066_v4, %v3064_v22  ;;  %v9983_v10 = vpack.c.bf16 %v3302_v63, %v3300_v29  ;;  %v3219_v3 = vsel %vm11286_vm6, %v3216_v35, %v3218_v7  ;;  %v3356_v62 = vsel %vm11287_vm10, %v3354_v57, %v11184_v21  ;;  %v11291_v7 = vld [vmem:[#allocation57_spill] sm:$0xff]  ;;  %v11297_v63 = vld [vmem:[#allocation64_spill] sm:$0xff]  ;;  %v11301_v4 = vld [vmem:[#allocation66_spill] sm:$0xff] }
 0x2e0   : > { %v9987_v51 = vpack.c.bf16 %v3219_v3, %v3217_v54  ;;  %v9994_v60 = vpack.c.bf16 %v3356_v62, %v3355_v52  ;;  %vm11292_vm11 = vnez %v11291_v7  ;;  %vm11295_vm3 = vnez %v11294_v25  ;;  %v11299_v52 = vld [vmem:[#allocation63_spill] sm:$0xff]  ;;  %v11303_v29 = vld [vmem:[#allocation65_spill] sm:$0xff]  ;;  %v11307_v3 = vld [vmem:[#allocation68_spill] sm:$0xff] }
 0x2e1   : > { %vm11298_vm9 = vnez %v11297_v63  ;;  %vm11300_vm1 = vnez %v11299_v52  ;;  %vm11302_vm6 = vnez %v11301_v4  ;;  %vm11304_vm10 = vnez %v11303_v29  ;;  %v11305_v54 = vld [vmem:[#allocation69_spill] sm:$0xff] }
 0x2e2   : > { %5920 = vmatmul.mubr.msk.bf16.gmra.mrb[144].mxu1 %vm11289_vm5, %v9838_v18  ;;  %5989 = vmatmul.mubr.msk.bf16.gmra.mrb[204].mxu0 %vm11163_vm14, %v9848_v5 }
 0x2e3   : > { %4188 = vmatprep.mubr.bf16.mxu1 %v9862_v58  ;;  %5992 = vmatprep.mubr.msk.bf16.mxu0 %vm11289_vm5, %v9875_v55 }
 0x2e5   : > { %v6702_v16 = vpop.f32.mrb[112].mxu1 }
 0x2e6   : > { %v6703_v57 = vpop.f32.mrb[113].mxu1 }
 0x2e7   : > { %v10023_v39 = vadd.f32 %v6703_v57, %v6702_v16  ;;  %v6705_v35 = vpop.f32.mrb[114].mxu1  ;;  %v11309_v16 = vld [vmem:[#allocation71_spill] sm:$0xff]  ;;  %v11311_v57 = vld [vmem:[#allocation70_spill] sm:$0xff] }
 0x2e8   : > { %v6706_v22 = vpop.f32.mrb[115].mxu1 }
 0x2e9   : > { %v10025_v17 = vadd.f32 %v6706_v22, %v6705_v35  ;;  %v11313_v35 = vld [vmem:[#allocation73_spill] sm:$0xff]  ;;  %v11315_v22 = vld [vmem:[#allocation72_spill] sm:$0xff] }
 0x2ea   : > { %5923 = vmatmul.mubr.msk.bf16.gmra.mrb[148].mxu1 %vm11292_vm11, %v9875_v55  ;;  %5995 = vmatmul.mubr.msk.bf16.gmra.mrb[208].mxu0 %vm11165_vm8, %v9871_v49 }
 0x2eb   : > { %4196 = vmatprep.mubr.bf16.mxu1 %v9860_v46  ;;  %5998 = vmatprep.mubr.msk.bf16.mxu0 %vm11292_vm11, %v9877_v14  ;;  %vm11310_vm11 = vnez %v11309_v16  ;;  %v11317_v16 = vld [vmem:[#allocation74_spill] sm:$0xff] }
 0x2f2   : > { %5926 = vmatmul.mubr.msk.bf16.gmra.mrb[152].mxu1 %vm11295_vm3, %v9877_v14  ;;  %6001 = vmatmul.mubr.msk.bf16.gmra.mrb[212].mxu0 %vm11167_vm13, %v9885_v47 }
 0x2f3   : > { %4204 = vmatprep.mubr.bf16.mxu1 %v9896_v1  ;;  %6004 = vmatprep.mubr.msk.bf16.mxu0 %vm11295_vm3, %v9909_v15  ;;  %vm11306_vm3 = vnez %v11305_v54 }
 0x2fa   : > { %5929 = vmatmul.mubr.msk.bf16.gmra.mrb[156].mxu1 %vm11298_vm9, %v9909_v15  ;;  %6007 = vmatmul.mubr.msk.bf16.gmra.mrb[216].mxu0 %vm11300_vm1, %v9905_v50 }
 0x2fb   : > { %4212 = vmatprep.mubr.bf16.mxu1 %v9894_v45  ;;  %6010 = vmatprep.mubr.msk.bf16.mxu0 %vm11298_vm9, %v9911_v28  ;;  %vm11308_vm9 = vnez %v11307_v3 }
 0x302   : > { %5932 = vmatmul.mubr.msk.bf16.gmra.mrb[160].mxu1 %vm11302_vm6, %v9911_v28  ;;  %6013 = vmatmul.mubr.msk.bf16.gmra.mrb[220].mxu0 %vm11304_vm10, %v9919_v42 }
 0x303   : > { %4220 = vmatprep.mubr.bf16.mxu1 %v9930_v32  ;;  %6016 = vmatprep.mubr.msk.bf16.mxu0 %vm11302_vm6, %v9943_v26  ;;  %vm11312_vm6 = vnez %v11311_v57 }
 0x30a   : > { %5935 = vmatmul.mubr.msk.bf16.gmra.mrb[164].mxu1 %vm11306_vm3, %v9943_v26  ;;  %6019 = vmatmul.mubr.msk.bf16.gmra.mrb[224].mxu0 %vm11308_vm9, %v9939_v24  ;;  %vm11314_vm9 = vnez %v11313_v35  ;;  %v7677_v35 = vld [vmem:[#allocation7 + $0x218] sm:$0xff]  }
 0x30b   : > { %4228 = vmatprep.mubr.bf16.mxu1 %v9928_v56  ;;  %6022 = vmatprep.mubr.msk.bf16.mxu0 %vm11306_vm3, %v9945_v61  ;;  %vm11316_vm3 = vnez %v11315_v22  ;;  %v11365_v22 = vld [vmem:[#allocation50_spill] sm:$0xff] }
 0x312   : > { %5938 = vmatmul.mubr.msk.bf16.gmra.mrb[168].mxu1 %vm11310_vm11, %v9945_v61  ;;  %6025 = vmatmul.mubr.msk.bf16.gmra.mrb[228].mxu0 %vm11312_vm6, %v9955_v37 }
 0x313   : > { %4236 = vmatprep.mubr.bf16.mxu1 %v9969_v11  ;;  %6028 = vmatprep.mubr.msk.bf16.mxu0 %vm11310_vm11, %v9981_v38  ;;  %vm11318_vm11 = vnez %v11317_v16 }
 0x31a   : > { %5941 = vmatmul.mubr.msk.bf16.gmra.mrb[172].mxu1 %vm11314_vm9, %v9981_v38  ;;  %6031 = vmatmul.mubr.msk.bf16.gmra.mrb[232].mxu0 %vm11316_vm3, %v9978_v31 }
 0x31b   : > { %6040 = vmatprep.mubr.msk.bf16.mxu1 %vm9148_vm0, %v9732_v53  ;;  %6034 = vmatprep.mubr.msk.bf16.mxu0 %vm11314_vm9, %v9983_v10  ;;  %v7676_v53 = vld [vmem:[#allocation7 + $0x210] sm:$0xff]  }
 0x322   : > { %4439 = vmatmul.mubr.bf16.vlgmr.msra.gmra.mrb[176].mxu1 %v9708_v40  ;;  %6037 = vmatmul.mubr.msk.bf16.gmra.mrb[236].mxu0 %vm11318_vm11, %v9987_v51  ;;  %v11319_v40 = vld [vmem:[#allocation20_spill] sm:$0xff] }
 0x323   : > { %6043 = vmatprep.mubr.msk.bf16.mxu1 %vm9163_vm7, %v9754_v19  ;;  %7231 = vmatpush3.bf16.msra.mxu1 %v9698_v20  ;;  %vm11320_vm9 = vnez %v11319_v40  ;;  %v7678_v20 = vld [vmem:[#allocation7 + $0x220] sm:$0xff]   ;;  %v11325_v40 = vld [vmem:[#allocation67_spill] sm:$0xff] }
 0x324   : > { %4599 = vmatprep.mubr.bf16.mxu0 %v9703_v23  ;;  %7232 = vmatprep.subr.bf16.mxu1 %v7675_v59 }
 0x327   : > { %7233 = vmatpush3.bf16.msra.mxu1 %v7675_v59  ;;  %v7679_v59 = vld [vmem:[#allocation7 + $0x228] sm:$0xff]  }
 0x328   : > { %7234 = vmatprep.subr.bf16.mxu1 %v7676_v53 }
 0x32a   : > { %4447 = vmatmul.mubr.bf16.gmra.mrb[180].mxu1 %v9703_v23  ;;  %6088 = vmatmul.mubr.msk.bf16.vlgmr.msra.gmra.mrb[240].mxu0 %vm11320_vm9, %v9721_v33  ;;  %v11322_v23 = vld [vmem:[#allocation43_spill] sm:$0xff]  ;;  %v7680_v33 = vld [vmem:[#allocation7 + $0x230] sm:$0xff]  }
 0x32b   : > { %6046 = vmatprep.mubr.msk.bf16.mxu1 %vm9179_vm2, %v9770_v2  ;;  %4607 = vmatprep.mubr.bf16.mxu0 %v11321_v12  ;;  %vm11324_vm2 = vnez %v11323_v8  ;;  %v11329_v8 = vld [vmem:[#allocation29_spill] sm:$0xff] }
 0x32c   : > { %7235 = vmatpush3.bf16.msra.mxu1 %v7676_v53  ;;  %v11327_v53 = vld [vmem:[#allocation30_spill] sm:$0xff] }
 0x32d   : > { %7236 = vmatprep.subr.bf16.mxu1 %v7677_v35  ;;  %vm11328_vm9 = vnez %v11327_v53  ;;  %v11339_v53 = vld [vmem:[#allocation38_spill] sm:$0xff] }
 0x330   : > { %7237 = vmatpush3.bf16.msra.mxu1 %v7677_v35  ;;  %v7681_v35 = vld [vmem:[#allocation7 + $0x238] sm:$0xff]  }
 0x331   : > { %7238 = vmatprep.subr.bf16.mxu1 %v7678_v20 }
 0x332   : > { %4455 = vmatmul.mubr.bf16.gmra.mrb[184].mxu1 %v11321_v12  ;;  %6091 = vmatmul.mubr.msk.bf16.gmra.mrb[244].mxu0 %vm11324_vm2, %v11322_v23  ;;  %v11326_v12 = vld [vmem:[#allocation60_spill] sm:$0xff]  ;;  %v11331_v23 = vld [vmem:[#allocation34_spill] sm:$0xff] }
 0x333   : > { %6049 = vmatprep.mubr.msk.bf16.mxu1 %vm9194_vm12, %v9793_v13  ;;  %4615 = vmatprep.mubr.bf16.mxu0 %v11325_v40 }
 0x334   : > { %7239 = vmatpush3.bf16.msra.mxu1 %v7678_v20  ;;  %v10112_v20 = vld [vmem:[#allocation8] sm:$0xff]  }
 0x335   : > { %7240 = vmatprep.subr.bf16.mxu1 %v7679_v59 }
 0x338   : > { %7241 = vmatpush3.bf16.msra.mxu1 %v7679_v59 }
 0x339   : > { %7242 = vmatprep.subr.bf16.mxu1 %v7680_v33 }
 0x33a   : > { %4463 = vmatmul.mubr.bf16.gmra.mrb[188].mxu1 %v11325_v40  ;;  %6094 = vmatmul.mubr.msk.bf16.gmra.mrb[248].mxu0 %vm11328_vm9, %v11326_v12  ;;  %v11332_v40 = vld [vmem:[#allocation37_spill] sm:$0xff]  ;;  %v11334_v12 = vld [vmem:[#allocation18_spill] sm:$0xff]  ;;  %vm11335_vm9 = vnez %v11278_v27 }
 0x33b   : > { %6052 = vmatprep.mubr.msk.bf16.mxu1 %vm11153_vm4, %v9809_v34  ;;  %4623 = vmatprep.mubr.bf16.mxu0 %v11329_v8  ;;  %vm11333_vm2 = vnez %v11332_v40 }
 0x33c   : > { %7243 = vmatpush3.bf16.msra.mxu1 %v7680_v33  ;;  %v11336_v33 = vld [vmem:[#allocation32_spill] sm:$0xff] }
 0x33d   : > { %7244 = vmatprep.subr.bf16.mxu1 %v7681_v35 }
 0x340   : > { %7245 = vmatpush3.bf16.msra.mxu1 %v7681_v35  ;;  %v11337_v35 = vld [vmem:[#allocation28_spill] sm:$0xff] }
 0x341   : > { %7278 = vmatprep.subr.bf16.mxu1 %v10112_v20  ;;  %vm11338_vm4 = vnez %v11337_v35 }
 0x342   : > { %4471 = vmatmul.mubr.bf16.gmra.mrb[192].mxu1 %v11329_v8  ;;  %6097 = vmatmul.mubr.msk.bf16.gmra.mrb[252].mxu0 %vm11333_vm2, %v11331_v23  ;;  %v11340_v8 = vld [vmem:[#allocation33_spill] sm:$0xff]  ;;  %v11342_v23 = vld [vmem:[#allocation40_spill] sm:$0xff] }
 0x343   : > { %6055 = vmatprep.mubr.msk.bf16.mxu1 %vm11156_vm15, %v9832_v6  ;;  %4631 = vmatprep.mubr.bf16.mxu0 %v11334_v12  ;;  %vm11341_vm2 = vnez %v11340_v8 }
 0x34a   : > { %4479 = vmatmul.mubr.bf16.gmra.mrb[196].mxu1 %v11334_v12  ;;  %6100 = vmatmul.mubr.msk.bf16.gmra.mrb[0].mxu0 %vm11338_vm4, %v11336_v33  ;;  %vm11343_vm4 = vnez %v11342_v23 }
 0x34b   : > { %6058 = vmatprep.mubr.msk.bf16.mxu1 %vm11335_vm9, %v9848_v5  ;;  %4639 = vmatprep.mubr.bf16.mxu0 %v11339_v53 }
 0x352   : > { %4487 = vmatmul.mubr.bf16.gmra.mrb[200].mxu1 %v11339_v53  ;;  %6103 = vmatmul.mubr.msk.bf16.gmra.mrb[4].mxu0 %vm11341_vm2, %v9836_v43  ;;  %vm11344_vm2 = vnez %v11276_v0 }
 0x353   : > { %6061 = vmatprep.mubr.msk.bf16.mxu1 %vm11163_vm14, %v9871_v49  ;;  %4647 = vmatprep.mubr.bf16.mxu0 %v9821_v9 }
 0x35a   : > { %4495 = vmatmul.mubr.bf16.gmra.mrb[204].mxu1 %v9821_v9  ;;  %6106 = vmatmul.mubr.msk.bf16.gmra.mrb[8].mxu0 %vm11343_vm4, %v9838_v18  ;;  %vm11345_vm4 = vnez %v11291_v7  ;;  %v10182_v9 = vld [vmem:[%s10638_s4] ss:$0 sm:$0xff] }
 0x35b   : > { %6064 = vmatprep.mubr.msk.bf16.mxu1 %vm11165_vm8, %v9885_v47  ;;  %4655 = vmatprep.mubr.bf16.mxu0 %v9862_v58  ;;  %v4122_v7 = vadd.f32 %v10025_v17, %v10182_v9 }
 0x362   : > { %4503 = vmatmul.mubr.bf16.gmra.mrb[208].mxu1 %v9862_v58  ;;  %6109 = vmatmul.mubr.msk.bf16.gmra.mrb[12].mxu0 %vm11344_vm2, %v9875_v55  ;;  %vm11346_vm2 = vnez %v11307_v3 }
 0x363   : > { %6067 = vmatprep.mubr.msk.bf16.mxu1 %vm11167_vm13, %v9905_v50  ;;  %4663 = vmatprep.mubr.bf16.mxu0 %v9860_v46 }
 0x36a   : > { %4511 = vmatmul.mubr.bf16.gmra.mrb[212].mxu1 %v9860_v46  ;;  %6112 = vmatmul.mubr.msk.bf16.gmra.mrb[16].mxu0 %vm11289_vm5, %v9877_v14  ;;  %vm11347_vm5 = vnez %v11294_v25 }
 0x36b   : > { %6070 = vmatprep.mubr.msk.bf16.mxu1 %vm11300_vm1, %v9919_v42  ;;  %4671 = vmatprep.mubr.bf16.mxu0 %v9896_v1 }
 0x372   : > { %4519 = vmatmul.mubr.bf16.gmra.mrb[216].mxu1 %v9896_v1  ;;  %6115 = vmatmul.mubr.msk.bf16.gmra.mrb[20].mxu0 %vm11345_vm4, %v9909_v15  ;;  %vm11348_vm4 = vnez %v11297_v63 }
 0x373   : > { %6073 = vmatprep.mubr.msk.bf16.mxu1 %vm11304_vm10, %v9939_v24  ;;  %4679 = vmatprep.mubr.bf16.mxu0 %v9894_v45 }
 0x37a   : > { %4527 = vmatmul.mubr.bf16.gmra.mrb[220].mxu1 %v9894_v45  ;;  %6118 = vmatmul.mubr.msk.bf16.gmra.mrb[24].mxu0 %vm11347_vm5, %v9911_v28  ;;  %v4119_v45 = vadd.f32 %v10023_v39, %v10182_v9  ;;  %vm11349_vm5 = vnez %v11301_v4 }
 0x37b   : > { %6076 = vmatprep.mubr.msk.bf16.mxu1 %vm11346_vm2, %v9955_v37  ;;  %4687 = vmatprep.mubr.bf16.mxu0 %v9930_v32 }
 0x37d   : > { %v6708_v43 = vpop.f32.mrb[116].mxu1  ;;  %v6814_v46 = vpop.f32.mrb[176].mxu0 }
 0x37e   : > { %v6709_v18 = vpop.f32.mrb[117].mxu1  ;;  %v6815_v14 = vpop.f32.mrb[177].mxu0 }
 0x37f   : > { %v6710_v58 = vadd.f32 %v6709_v18, %v6708_v43  ;;  %v6711_v55 = vpop.f32.mrb[118].mxu1  ;;  %v6816_v1 = vadd.f32 %v6815_v14, %v6814_v46  ;;  %v6817_v44 = vpop.f32.mrb[178].mxu0 }
 0x380   : > { %v6712_v15 = vpop.f32.mrb[119].mxu1  ;;  %v6818_v0 = vpop.f32.mrb[179].mxu0 }
 0x381   : > { %v6713_v28 = vadd.f32 %v6712_v15, %v6711_v55  ;;  %v10188_v25 = vadd.f32 %v6816_v1, %v4119_v45  ;;  %v6819_v40 = vadd.f32 %v6818_v0, %v6817_v44 }
 0x382   : > { %4535 = vmatmul.mubr.bf16.gmra.mrb[224].mxu1 %v9930_v32  ;;  %6121 = vmatmul.mubr.msk.bf16.gmra.mrb[28].mxu0 %vm11348_vm4, %v9943_v26  ;;  %v4127_v32 = vadd.f32 %v6710_v58, %v10182_v9  ;;  %vm11350_vm4 = vnez %v11305_v54 }
 0x383   : > { %6079 = vmatprep.mubr.msk.bf16.mxu1 %vm11312_vm6, %v9978_v31  ;;  %v10197_v39 = vadd.f32 %v6819_v40, %v4122_v7  ;;  %4695 = vmatprep.mubr.bf16.mxu0 %v9928_v56  ;;  %v4130_v63 = vadd.f32 %v6713_v28, %v10182_v9 }
 0x385   : > { %v6714_v12 = vpop.f32.mrb[120].mxu1  ;;  %v6820_v17 = vpop.f32.mrb[180].mxu0 }
 0x386   : > { %v6715_v33 = vpop.f32.mrb[121].mxu1  ;;  %v6821_v8 = vpop.f32.mrb[181].mxu0 }
 0x387   : > { %v6716_v35 = vadd.f32 %v6715_v33, %v6714_v12  ;;  %v6717_v53 = vpop.f32.mrb[122].mxu1  ;;  %v6822_v23 = vadd.f32 %v6821_v8, %v6820_v17  ;;  %v6823_v18 = vpop.f32.mrb[182].mxu0  ;;  %v11351_v8 = vld [vmem:[#allocation56_spill] sm:$0xff] }
 0x388   : > { %v6718_v43 = vpop.f32.mrb[123].mxu1  ;;  %v6824_v55 = vpop.f32.mrb[183].mxu0 }
 0x389   : > { %v6719_v46 = vadd.f32 %v6718_v43, %v6717_v53  ;;  %v10202_v26 = vadd.f32 %v6822_v23, %v4127_v32  ;;  %v6825_v14 = vadd.f32 %v6824_v55, %v6823_v18 }
 0x38a   : > { %4543 = vmatmul.mubr.bf16.gmra.mrb[228].mxu1 %v9928_v56  ;;  %6124 = vmatmul.mubr.msk.bf16.gmra.mrb[32].mxu0 %vm11349_vm5, %v9945_v61  ;;  %v4135_v56 = vadd.f32 %v6716_v35, %v10182_v9 }
 0x38b   : > { %6082 = vmatprep.mubr.msk.bf16.mxu1 %vm11316_vm3, %v9987_v51  ;;  %v10211_v58 = vadd.f32 %v6825_v14, %v4130_v63  ;;  %4703 = vmatprep.mubr.bf16.mxu0 %v9969_v11  ;;  %v4138_v4 = vadd.f32 %v6719_v46, %v10182_v9 }
 0x38d   : > { %v6720_v45 = vpop.f32.mrb[124].mxu1  ;;  %v6826_v15 = vpop.f32.mrb[184].mxu0 }
 0x38e   : > { %v6721_v1 = vpop.f32.mrb[125].mxu1  ;;  %v6827_v0 = vpop.f32.mrb[185].mxu0 }
 0x38f   : > { %v6722_v44 = vadd.f32 %v6721_v1, %v6720_v45  ;;  %v6723_v28 = vpop.f32.mrb[126].mxu1  ;;  %v6828_v7 = vadd.f32 %v6827_v0, %v6826_v15  ;;  %v6829_v12 = vpop.f32.mrb[186].mxu0  ;;  %v11352_v0 = vld [vmem:[#allocation71_spill] sm:$0xff] }
 0x390   : > { %v6724_v40 = vpop.f32.mrb[127].mxu1  ;;  %v6830_v17 = vpop.f32.mrb[187].mxu0  ;;  %vm11353_vm5 = vnez %v11352_v0 }
 0x391   : > { %v6725_v33 = vadd.f32 %v6724_v40, %v6723_v28  ;;  %v10216_v61 = vadd.f32 %v6828_v7, %v4135_v56  ;;  %v6831_v53 = vadd.f32 %v6830_v17, %v6829_v12  ;;  %v11354_v56 = vmov 0.0|0.0   ;;  %v11355_v40 = vld [vmem:[#allocation17_spill] sm:$0xff]  ;;  %v11356_v12 = vld [vmem:[#allocation44_spill] sm:$0xff] }
 0x392   : > { %4551 = vmatmul.mubr.bf16.gmra.mrb[232].mxu1 %v9969_v11  ;;  %6127 = vmatmul.mubr.msk.bf16.gmra.mrb[36].mxu0 %vm11350_vm4, %v9981_v38  ;;  %v4143_v11 = vadd.f32 %v6722_v44, %v10182_v9  ;;  %vm11358_vm4 = vcmask 1040384  }
 0x393   : > { %6085 = vmatprep.mubr.msk.bf16.mxu1 %vm11318_vm11, %v9994_v60  ;;  %v10225_v35 = vadd.f32 %v6831_v53, %v4138_v4  ;;  %4711 = vmatprep.mubr.bf16.mxu0 %v11351_v8  ;;  %v4146_v54 = vadd.f32 %v6725_v33, %v10182_v9  ;;  %v11357_v33 = vrot.slane %v11356_v12, 7 }
 0x395   : > { %v6726_v32 = vpop.f32.mrb[128].mxu1  ;;  %v6832_v43 = vpop.f32.mrb[188].mxu0  ;;  %v3407_v17 = vsel %vm11358_vm4, %v11357_v33, %v11355_v40 }
 0x396   : > { %v6727_v23 = vpop.f32.mrb[129].mxu1  ;;  %v6833_v55 = vpop.f32.mrb[189].mxu0 }
 0x397   : > { %v6728_v18 = vadd.f32 %v6727_v23, %v6726_v32  ;;  %v6729_v46 = vpop.f32.mrb[130].mxu1  ;;  %v6834_v63 = vadd.f32 %v6833_v55, %v6832_v43  ;;  %v6835_v45 = vpop.f32.mrb[190].mxu0 }
 0x398   : > { %v6730_v14 = vpop.f32.mrb[131].mxu1  ;;  %v6836_v15 = vpop.f32.mrb[191].mxu0 }
 0x399   : > { %v6731_v1 = vadd.f32 %v6730_v14, %v6729_v46  ;;  %v10230_v38 = vadd.f32 %v6834_v63, %v4143_v11  ;;  %v6837_v28 = vadd.f32 %v6836_v15, %v6835_v45  ;;  %v6132_v46 = vpack.c.bf16 %v11355_v40, %v3407_v17  ;;  %v7683_v63 = vld [vmem:[#allocation8 + $0x8] sm:$0xff]  }
 0x39a   : > { %4559 = vmatmul.mubr.bf16.gmra.mrb[236].mxu1 %v11351_v8  ;;  %6130 = vmatmul.mubr.msk.bf16.gmra.mrb[40].mxu0 %vm11353_vm5, %v9983_v10  ;;  %v4151_v10 = vadd.f32 %v6728_v18, %v10182_v9  ;;  %v11362_v18 = vld [vmem:[#allocation24_spill] sm:$0xff] }
 0x39b   : > { %7246 = vmatprep.mubr.msk.bf16.mxu1 %vm9148_vm0, %v9754_v19  ;;  %v10239_v44 = vadd.f32 %v6837_v28, %v4146_v54  ;;  %4719 = vmatprep.mubr.bf16.mxu0 %v11354_v56  ;;  %v4154_v14 = vadd.f32 %v6731_v1, %v10182_v9  ;;  %v11360_v28 = vld [vmem:[#allocation73_spill] sm:$0xff]  ;;  %vm11363_vm5 = vnez %v11362_v18  ;;  %v7684_v1 = vld [vmem:[#allocation8 + $0x10] sm:$0xff]  }
 0x39c   : > { %vm11361_vm0 = vnez %v11360_v28 }
 0x39d   : > { %v6732_v7 = vpop.f32.mrb[132].mxu1  ;;  %v6838_v53 = vpop.f32.mrb[192].mxu0 }
 0x39e   : > { %v6733_v4 = vpop.f32.mrb[133].mxu1  ;;  %v6839_v23 = vpop.f32.mrb[193].mxu0 }
 0x39f   : > { %v6734_v8 = vadd.f32 %v6733_v4, %v6732_v7  ;;  %v6735_v32 = vpop.f32.mrb[134].mxu1  ;;  %v6840_v43 = vadd.f32 %v6839_v23, %v6838_v53  ;;  %v6841_v19 = vpop.f32.mrb[194].mxu0 }
 0x3a0   : > { %v6736_v41 = vpop.f32.mrb[135].mxu1  ;;  %v6842_v11 = vpop.f32.mrb[195].mxu0 }
 0x3a1   : > { %v6737_v55 = vadd.f32 %v6736_v41, %v6735_v32  ;;  %v10249_v45 = vadd.f32 %v6840_v43, %v4151_v10  ;;  %v6843_v15 = vadd.f32 %v6842_v11, %v6841_v19  ;;  %v7685_v10 = vld [vmem:[#allocation8 + $0x18] sm:$0xff]  }
 0x3a2   : > { %7247 = vmatmul.mubr.msk.bf16.vlgmr.msra.gmra.mrb[240].mxu1 %vm9163_vm7, %v9770_v2  ;;  %6133 = vmatmul.mubr.msk.bf16.gmra.mrb[44].mxu0 %vm11361_vm0, %v6132_v46  ;;  %v4159_v2 = vadd.f32 %v6734_v8, %v10182_v9  ;;  %vm11364_vm7 = vnez %v11260_v36  ;;  %v7686_v46 = vld [vmem:[#allocation8 + $0x20] sm:$0xff]  }
 0x3a3   : > { %7250 = vmatprep.mubr.msk.bf16.mxu1 %vm11363_vm5, %v9793_v13  ;;  %v10259_v0 = vadd.f32 %v6843_v15, %v4154_v14  ;;  %7279 = vmatpush3.bf16.msra.mxu1 %v10112_v20  ;;  %v4162_v20 = vadd.f32 %v6737_v55, %v10182_v9 }
 0x3a4   : > { %7280 = vmatprep.subr.bf16.mxu1 %v7683_v63 }
 0x3a5   : > { %v6738_v56 = vpop.f32.mrb[136].mxu1  ;;  %v6844_v40 = vpop.f32.mrb[196].mxu0 }
 0x3a6   : > { %v6739_v7 = vpop.f32.mrb[137].mxu1  ;;  %v6845_v17 = vpop.f32.mrb[197].mxu0 }
 0x3a7   : > { %v6740_v12 = vadd.f32 %v6739_v7, %v6738_v56  ;;  %v6741_v33 = vpop.f32.mrb[138].mxu1  ;;  %v6846_v4 = vadd.f32 %v6845_v17, %v6844_v40  ;;  %v6847_v32 = vpop.f32.mrb[198].mxu0  ;;  %7281 = vmatpush3.bf16.msra.mxu1 %v7683_v63 }
 0x3a8   : > { %v6742_v53 = vpop.f32.mrb[139].mxu1  ;;  %v6848_v13 = vpop.f32.mrb[199].mxu0  ;;  %7282 = vmatprep.subr.bf16.mxu1 %v7684_v1 }
 0x3a9   : > { %v6743_v23 = vadd.f32 %v6742_v53, %v6741_v33  ;;  %v10264_v43 = vadd.f32 %v6846_v4, %v4159_v2  ;;  %v6849_v41 = vadd.f32 %v6848_v13, %v6847_v32  ;;  %v4167_v54 = vadd.f32 %v6740_v12, %v10182_v9  ;;  %v7688_v33 = vld [vmem:[#allocation8 + $0x30] sm:$0xff]  }
 0x3aa   : > { %7251 = vmatmul.mubr.msk.bf16.gmra.mrb[244].mxu1 %vm9194_vm12, %v9809_v34 }
 0x3ab   : > { %7254 = vmatprep.mubr.msk.bf16.mxu1 %vm11364_vm7, %v9832_v6  ;;  %v10272_v8 = vadd.f32 %v6849_v41, %v4162_v20  ;;  %7283 = vmatpush3.bf16.msra.mxu1 %v7684_v1  ;;  %v7687_v6 = vld [vmem:[#allocation8 + $0x28] sm:$0xff]   ;;  %v4170_v56 = vadd.f32 %v6743_v23, %v10182_v9 }
 0x3ac   : > { %7284 = vmatprep.subr.bf16.mxu1 %v7685_v10 }
 0x3ad   : > { %v6744_v19 = vpop.f32.mrb[140].mxu1  ;;  %v6850_v63 = vpop.f32.mrb[200].mxu0 }
 0x3ae   : > { %v6745_v11 = vpop.f32.mrb[141].mxu1  ;;  %v6851_v15 = vpop.f32.mrb[201].mxu0 }
 0x3af   : > { %v6746_v55 = vadd.f32 %v6745_v11, %v6744_v19  ;;  %v6747_v14 = vpop.f32.mrb[142].mxu1  ;;  %v6852_v28 = vadd.f32 %v6851_v15, %v6850_v63  ;;  %v6853_v34 = vpop.f32.mrb[202].mxu0  ;;  %7285 = vmatpush3.bf16.msra.mxu1 %v7685_v10 }
 0x3b0   : > { %v6748_v30 = vpop.f32.mrb[143].mxu1  ;;  %v6854_v36 = vpop.f32.mrb[203].mxu0  ;;  %7286 = vmatprep.subr.bf16.mxu1 %v7686_v46 }
 0x3b1   : > { %v6749_v18 = vadd.f32 %v6748_v30, %v6747_v14  ;;  %v10276_v1 = vadd.f32 %v6852_v28, %v4167_v54  ;;  %v6855_v7 = vadd.f32 %v6854_v36, %v6853_v34  ;;  %v4175_v23 = vadd.f32 %v6746_v55, %v10182_v9 }
 0x3b2   : > { %7255 = vmatmul.mubr.msk.bf16.gmra.mrb[248].mxu1 %vm11156_vm15, %v9848_v5 }
 0x3b3   : > { %7258 = vmatprep.mubr.msk.bf16.mxu1 %vm11335_vm9, %v9871_v49  ;;  %v10284_v40 = vadd.f32 %v6855_v7, %v4170_v56  ;;  %7287 = vmatpush3.bf16.msra.mxu1 %v7686_v46  ;;  %v7689_v49 = vld [vmem:[#allocation8 + $0x38] sm:$0xff]   ;;  %v4178_v20 = vadd.f32 %v6749_v18, %v10182_v9 }
 0x3b4   : > { %7288 = vmatprep.subr.bf16.mxu1 %v7687_v6 }
 0x3b5   : > { %v6750_v12 = vpop.f32.mrb[144].mxu1  ;;  %v6856_v2 = vpop.f32.mrb[204].mxu0 }
 0x3b6   : > { %v6751_v17 = vpop.f32.mrb[145].mxu1  ;;  %v6857_v32 = vpop.f32.mrb[205].mxu0 }
 0x3b7   : > { %v6752_v4 = vadd.f32 %v6751_v17, %v6750_v12  ;;  %v6753_v53 = vpop.f32.mrb[146].mxu1  ;;  %v6858_v13 = vadd.f32 %v6857_v32, %v6856_v2  ;;  %v6859_v5 = vpop.f32.mrb[206].mxu0  ;;  %7289 = vmatpush3.bf16.msra.mxu1 %v7687_v6 }
 0x3b8   : > { %v6754_v59 = vpop.f32.mrb[147].mxu1  ;;  %v6860_v27 = vpop.f32.mrb[207].mxu0  ;;  %7290 = vmatprep.subr.bf16.mxu1 %v7688_v33 }
 0x3b9   : > { %v6755_v10 = vadd.f32 %v6754_v59, %v6753_v53  ;;  %v10288_v41 = vadd.f32 %v6858_v13, %v4175_v23  ;;  %v6861_v19 = vadd.f32 %v6860_v27, %v6859_v5  ;;  %v4183_v28 = vadd.f32 %v6752_v4, %v10182_v9 }
 0x3ba   : > { %7259 = vmatmul.mubr.msk.bf16.gmra.mrb[252].mxu1 %vm11163_vm14, %v9885_v47 }
 0x3bb   : > { %7262 = vmatprep.mubr.msk.bf16.mxu1 %vm11165_vm8, %v9905_v50  ;;  %v10296_v46 = vadd.f32 %v6861_v19, %v4178_v20  ;;  %7291 = vmatpush3.bf16.msra.mxu1 %v7688_v33  ;;  %v4186_v50 = vadd.f32 %v6755_v10, %v10182_v9 }
 0x3bc   : > { %7292 = vmatprep.subr.bf16.mxu1 %v7689_v49 }
 0x3bd   : > { %v6756_v11 = vpop.f32.mrb[148].mxu1  ;;  %v6862_v55 = vpop.f32.mrb[208].mxu0 }
 0x3be   : > { %v6757_v63 = vpop.f32.mrb[149].mxu1  ;;  %v6863_v54 = vpop.f32.mrb[209].mxu0 }
 0x3bf   : > { %v6758_v14 = vadd.f32 %v6757_v63, %v6756_v11  ;;  %v6759_v15 = vpop.f32.mrb[150].mxu1  ;;  %v6864_v30 = vadd.f32 %v6863_v54, %v6862_v55  ;;  %v6865_v48 = vpop.f32.mrb[210].mxu0  ;;  %7293 = vmatpush3.bf16.msra.mxu1 %v7689_v49 }
 0x3c0   : > { %v6760_v34 = vpop.f32.mrb[151].mxu1  ;;  %v6866_v18 = vpop.f32.mrb[211].mxu0 }
 0x3c1   : > { %v6761_v47 = vadd.f32 %v6760_v34, %v6759_v15  ;;  %v10300_v21 = vadd.f32 %v6864_v30, %v4183_v28  ;;  %v6867_v36 = vadd.f32 %v6866_v18, %v6865_v48  ;;  %v4191_v4 = vadd.f32 %v6758_v14, %v10182_v9 }
 0x3c2   : > { %7263 = vmatmul.mubr.msk.bf16.gmra.mrb[0].mxu1 %vm11167_vm13, %v9919_v42 }
 0x3c3   : > { %7266 = vmatprep.mubr.msk.bf16.mxu1 %vm11300_vm1, %v9939_v24  ;;  %v10308_v6 = vadd.f32 %v6867_v36, %v4186_v50  ;;  %v4194_v42 = vadd.f32 %v6761_v47, %v10182_v9 }
 0x3c5   : > { %v6762_v56 = vpop.f32.mrb[152].mxu1  ;;  %v6868_v12 = vpop.f32.mrb[212].mxu0 }
 0x3c6   : > { %v6763_v7 = vpop.f32.mrb[153].mxu1  ;;  %v6869_v2 = vpop.f32.mrb[213].mxu0 }
 0x3c7   : > { %v6764_v33 = vadd.f32 %v6763_v7, %v6762_v56  ;;  %v6765_v17 = vpop.f32.mrb[154].mxu1  ;;  %v6870_v53 = vadd.f32 %v6869_v2, %v6868_v12  ;;  %v6871_v23 = vpop.f32.mrb[214].mxu0 }
 0x3c8   : > { %v6766_v32 = vpop.f32.mrb[155].mxu1  ;;  %v6872_v62 = vpop.f32.mrb[215].mxu0 }
 0x3c9   : > { %v6767_v13 = vadd.f32 %v6766_v32, %v6765_v17  ;;  %v10312_v59 = vadd.f32 %v6870_v53, %v4191_v4  ;;  %v6873_v24 = vadd.f32 %v6872_v62, %v6871_v23  ;;  %v4199_v11 = vadd.f32 %v6764_v33, %v10182_v9  ;;  %v11366_v17 = vld [vmem:[#allocation16_spill] sm:$0xff] }
 0x3ca   : > { %7267 = vmatmul.mubr.msk.bf16.gmra.mrb[4].mxu1 %vm11304_vm10, %v9955_v37 }
 0x3cb   : > { %7270 = vmatprep.mubr.msk.bf16.mxu1 %vm11346_vm2, %v9978_v31  ;;  %v10320_v52 = vadd.f32 %v6873_v24, %v4194_v42  ;;  %v4202_v37 = vadd.f32 %v6767_v13, %v10182_v9 }
 0x3cd   : > { %v6768_v5 = vpop.f32.mrb[156].mxu1  ;;  %v6874_v27 = vpop.f32.mrb[216].mxu0 }
 0x3ce   : > { %v6769_v10 = vpop.f32.mrb[157].mxu1  ;;  %v6875_v19 = vpop.f32.mrb[217].mxu0 }
 0x3cf   : > { %v6770_v49 = vadd.f32 %v6769_v10, %v6768_v5  ;;  %v6771_v20 = vpop.f32.mrb[158].mxu1  ;;  %v6876_v63 = vadd.f32 %v6875_v19, %v6874_v27  ;;  %v6877_v14 = vpop.f32.mrb[218].mxu0 }
 0x3d0   : > { %v6772_v55 = vpop.f32.mrb[159].mxu1  ;;  %v6878_v29 = vpop.f32.mrb[219].mxu0 }
 0x3d1   : > { %v6773_v15 = vadd.f32 %v6772_v55, %v6771_v20  ;;  %v10324_v54 = vadd.f32 %v6876_v63, %v4199_v11  ;;  %v6879_v31 = vadd.f32 %v6878_v29, %v6877_v14  ;;  %v4207_v50 = vadd.f32 %v6770_v49, %v10182_v9  ;;  %v11367_v11 = vld [vmem:[#allocation19_spill] sm:$0xff]  ;;  %v11368_v63 = vld [vmem:[#allocation26_spill] sm:$0xff] }
 0x3d2   : > { %7271 = vmatmul.mubr.msk.bf16.gmra.mrb[8].mxu1 %vm11312_vm6, %v9987_v51 }
 0x3d3   : > { %7274 = vmatprep.mubr.msk.bf16.mxu1 %vm11316_vm3, %v9994_v60  ;;  %v10332_v3 = vadd.f32 %v6879_v31, %v4202_v37  ;;  %v4210_v51 = vadd.f32 %v6773_v15, %v10182_v9 }
 0x3d5   : > { %v6774_v28 = vpop.f32.mrb[160].mxu1  ;;  %v6880_v34 = vpop.f32.mrb[220].mxu0 }
 0x3d6   : > { %v6775_v30 = vpop.f32.mrb[161].mxu1  ;;  %v6881_v18 = vpop.f32.mrb[221].mxu0 }
 0x3d7   : > { %v6776_v48 = vadd.f32 %v6775_v30, %v6774_v28  ;;  %v6777_v47 = vpop.f32.mrb[162].mxu1  ;;  %v6882_v36 = vadd.f32 %v6881_v18, %v6880_v34  ;;  %v6883_v7 = vpop.f32.mrb[222].mxu0 }
 0x3d8   : > { %v6778_v56 = vpop.f32.mrb[163].mxu1  ;;  %v6884_v57 = vpop.f32.mrb[223].mxu0 }
 0x3d9   : > { %v6779_v12 = vadd.f32 %v6778_v56, %v6777_v47  ;;  %v10336_v33 = vadd.f32 %v6882_v36, %v4207_v50  ;;  %v6885_v60 = vadd.f32 %v6884_v57, %v6883_v7  ;;  %v4215_v42 = vadd.f32 %v6776_v48, %v10182_v9  ;;  %v11370_v57 = vld [vmem:[#allocation22_spill] sm:$0xff] }
 0x3da   : > { %7275 = vmatmul.mubr.msk.bf16.gmra.mrb[12].mxu1 %vm11318_vm11, %v11365_v22 }
 0x3db   : > { %7294 = vmatprep.mubr.bf16.mxu1 %v11366_v17  ;;  %v10342_v2 = vadd.f32 %v6885_v60, %v4210_v51  ;;  %v4218_v16 = vadd.f32 %v6779_v12, %v10182_v9  ;;  %v11369_v12 = vld [vmem:[#allocation21_spill] sm:$0xff] }
 0x3dd   : > { %v6780_v4 = vpop.f32.mrb[164].mxu1  ;;  %v6886_v32 = vpop.f32.mrb[224].mxu0 }
 0x3de   : > { %v6781_v53 = vpop.f32.mrb[165].mxu1  ;;  %v6887_v62 = vpop.f32.mrb[225].mxu0 }
 0x3df   : > { %v6782_v23 = vadd.f32 %v6781_v53, %v6780_v4  ;;  %v6783_v13 = vpop.f32.mrb[166].mxu1  ;;  %v6888_v24 = vadd.f32 %v6887_v62, %v6886_v32  ;;  %v6889_v10 = vpop.f32.mrb[226].mxu0 }
 0x3e0   : > { %v6784_v5 = vpop.f32.mrb[167].mxu1  ;;  %v6890_v49 = vpop.f32.mrb[227].mxu0 }
 0x3e1   : > { %v6785_v27 = vadd.f32 %v6784_v5, %v6783_v13  ;;  %v10346_v20 = vadd.f32 %v6888_v24, %v4215_v42  ;;  %v6891_v19 = vadd.f32 %v6890_v49, %v6889_v10  ;;  %v4223_v30 = vadd.f32 %v6782_v23, %v10182_v9 }
 0x3e2   : > { %7295 = vmatmul.mubr.bf16.vlgmr.msra.gmra.mrb[240].mxu1 %v11367_v11 }
 0x3e3   : > { %7298 = vmatprep.mubr.bf16.mxu1 %v11368_v63  ;;  %v10350_v55 = vadd.f32 %v6891_v19, %v4218_v16  ;;  %v4226_v36 = vadd.f32 %v6785_v27, %v10182_v9  ;;  %v11371_v16 = vld [vmem:[#allocation23_spill] sm:$0xff] }
 0x3e4   : > { %v11372_v19 = vld [vmem:[#allocation27_spill] sm:$0xff] }
 0x3e5   : > { %v6786_v14 = vpop.f32.mrb[168].mxu1  ;;  %v6892_v29 = vpop.f32.mrb[228].mxu0 }
 0x3e6   : > { %v6787_v15 = vpop.f32.mrb[169].mxu1  ;;  %v6893_v28 = vpop.f32.mrb[229].mxu0 }
 0x3e7   : > { %v6788_v37 = vadd.f32 %v6787_v15, %v6786_v14  ;;  %v6789_v31 = vpop.f32.mrb[170].mxu1  ;;  %v6894_v34 = vadd.f32 %v6893_v28, %v6892_v29  ;;  %v6895_v47 = vpop.f32.mrb[230].mxu0 }
 0x3e8   : > { %v6790_v48 = vpop.f32.mrb[171].mxu1  ;;  %v6896_v50 = vpop.f32.mrb[231].mxu0 }
 0x3e9   : > { %v6791_v18 = vadd.f32 %v6790_v48, %v6789_v31  ;;  %v10354_v56 = vadd.f32 %v6894_v34, %v4223_v30  ;;  %v6897_v7 = vadd.f32 %v6896_v50, %v6895_v47  ;;  %v4231_v23 = vadd.f32 %v6788_v37, %v10182_v9 }
 0x3ea   : > { %7299 = vmatmul.mubr.bf16.gmra.mrb[244].mxu1 %v11369_v12 }
 0x3eb   : > { %7302 = vmatprep.mubr.bf16.mxu1 %v11370_v57  ;;  %v10358_v51 = vadd.f32 %v6897_v7, %v4226_v36  ;;  %v4234_v10 = vadd.f32 %v6791_v18, %v10182_v9  ;;  %v11373_v57 = vld [vmem:[#allocation35_spill] sm:$0xff] }
 0x3ed   : > { %v6792_v60 = vpop.f32.mrb[172].mxu1  ;;  %v6898_v17 = vpop.f32.mrb[232].mxu0 }
 0x3ee   : > { %v6793_v22 = vpop.f32.mrb[173].mxu1  ;;  %v6899_v32 = vpop.f32.mrb[233].mxu0 }
 0x3ef   : > { %v6794_v4 = vadd.f32 %v6793_v22, %v6792_v60  ;;  %v6795_v53 = vpop.f32.mrb[174].mxu1  ;;  %v6900_v13 = vadd.f32 %v6899_v32, %v6898_v17  ;;  %v6901_v42 = vpop.f32.mrb[234].mxu0  ;;  %v11374_v22 = vld [vmem:[#allocation41_spill] sm:$0xff] }
 0x3f0   : > { %v6796_v62 = vpop.f32.mrb[175].mxu1  ;;  %v6902_v5 = vpop.f32.mrb[235].mxu0 }
 0x3f1   : > { %v6797_v24 = vadd.f32 %v6796_v62, %v6795_v53  ;;  %v10362_v27 = vadd.f32 %v6900_v13, %v4231_v23  ;;  %v6903_v49 = vadd.f32 %v6902_v5, %v6901_v42  ;;  %v4239_v28 = vadd.f32 %v6794_v4, %v10182_v9 }
 0x3f2   : > { %7303 = vmatmul.mubr.bf16.gmra.mrb[248].mxu1 %v11371_v16  ;;  %v11375_v16 = vld [vmem:[#allocation46_spill] sm:$0xff] }
 0x3f3   : > { %7306 = vmatprep.mubr.bf16.mxu1 %v11372_v19  ;;  %v10366_v11 = vadd.f32 %v6903_v49, %v4234_v10  ;;  %v4242_v36 = vadd.f32 %v6797_v24, %v10182_v9 }
 0x3f5   : > { %v6926_v63 = vpop.f32.mrb[176].mxu1  ;;  %v6904_v14 = vpop.f32.mrb[236].mxu0 }
 0x3f6   : > { %v6927_v15 = vpop.f32.mrb[177].mxu1  ;;  %v6905_v37 = vpop.f32.mrb[237].mxu0 }
 0x3f7   : > { %v6928_v29 = vadd.f32 %v6927_v15, %v6926_v63  ;;  %v6929_v31 = vpop.f32.mrb[178].mxu1  ;;  %v6906_v30 = vadd.f32 %v6905_v37, %v6904_v14  ;;  %v6907_v34 = vpop.f32.mrb[238].mxu0  ;;  %v11376_v63 = vld [vmem:[#allocation48_spill] sm:$0xff] }
 0x3f8   : > { %v6930_v48 = vpop.f32.mrb[179].mxu1  ;;  %v6908_v50 = vpop.f32.mrb[239].mxu0 }
 0x3f9   : > { %v4441_v47 = vadd.f32 %v6928_v29, %v10188_v25  ;;  %v6931_v18 = vadd.f32 %v6930_v48, %v6929_v31  ;;  %v10371_v7 = vadd.f32 %v6906_v30, %v4239_v28  ;;  %v6909_v12 = vadd.f32 %v6908_v50, %v6907_v34 }
 0x3fa   : > { %7307 = vmatmul.mubr.bf16.gmra.mrb[252].mxu1 %v11373_v57 }
 0x3fb   : > { %v4444_v60 = vadd.f32 %v6931_v18, %v10197_v39  ;;  %7310 = vmatprep.mubr.bf16.mxu1 %v11374_v22  ;;  %v10376_v17 = vadd.f32 %v6909_v12, %v4242_v36  ;;  %v11377_v12 = vld [vmem:[#allocation49_spill] sm:$0xff] }
 0x3fd   : > { %v6932_v4 = vpop.f32.mrb[180].mxu1  ;;  %v7038_v32 = vpop.f32.mrb[240].mxu0 }
 0x3fe   : > { %v6933_v53 = vpop.f32.mrb[181].mxu1  ;;  %v7039_v13 = vpop.f32.mrb[241].mxu0 }
 0x3ff   : > { %v6934_v23 = vadd.f32 %v6933_v53, %v6932_v4  ;;  %v6935_v25 = vpop.f32.mrb[182].mxu1  ;;  %v7040_v62 = vadd.f32 %v7039_v13, %v7038_v32  ;;  %v7041_v9 = vpop.f32.mrb[242].mxu0 }
 0x400   : > { %v6936_v42 = vpop.f32.mrb[183].mxu1  ;;  %v7042_v10 = vpop.f32.mrb[243].mxu0 }
 0x401   : > { %v4449_v24 = vadd.f32 %v6934_v23, %v10202_v26  ;;  %v6937_v5 = vadd.f32 %v6936_v42, %v6935_v25  ;;  %v7043_v49 = vadd.f32 %v7042_v10, %v7041_v9  ;;  %v10380_v39 = vadd.f32 %v7040_v62, %v4441_v47 }
 0x402   : > { %7311 = vmatmul.mubr.bf16.gmra.mrb[0].mxu1 %v11375_v16 }
 0x403   : > { %v4452_v19 = vadd.f32 %v6937_v5, %v10211_v58  ;;  %7314 = vmatprep.mubr.bf16.mxu1 %v11376_v63  ;;  %v10384_v14 = vadd.f32 %v7043_v49, %v4444_v60  ;;  %v11378_v60 = vld [vmem:[#allocation53_spill] sm:$0xff]  ;;  %v11379_v49 = vld [vmem:[#allocation54_spill] sm:$0xff] }
 0x405   : > { %v6938_v15 = vpop.f32.mrb[184].mxu1  ;;  %v7044_v37 = vpop.f32.mrb[244].mxu0 }
 0x406   : > { %v6939_v29 = vpop.f32.mrb[185].mxu1  ;;  %v7045_v30 = vpop.f32.mrb[245].mxu0 }
 0x407   : > { %v6940_v31 = vadd.f32 %v6939_v29, %v6938_v15  ;;  %v6941_v28 = vpop.f32.mrb[186].mxu1  ;;  %v7046_v26 = vadd.f32 %v7045_v30, %v7044_v37  ;;  %v7047_v48 = vpop.f32.mrb[246].mxu0 }
 0x408   : > { %v6942_v34 = vpop.f32.mrb[187].mxu1  ;;  %v7048_v47 = vpop.f32.mrb[247].mxu0 }
 0x409   : > { %v4457_v18 = vadd.f32 %v6940_v31, %v10216_v61  ;;  %v6943_v50 = vadd.f32 %v6942_v34, %v6941_v28  ;;  %v7049_v36 = vadd.f32 %v7048_v47, %v7047_v48  ;;  %v10388_v58 = vadd.f32 %v7046_v26, %v4449_v24 }
 0x40a   : > { %7315 = vmatmul.mubr.bf16.gmra.mrb[4].mxu1 %v11377_v12 }
 0x40b   : > { %v4460_v57 = vadd.f32 %v6943_v50, %v10225_v35  ;;  %7318 = vmatprep.mubr.bf16.mxu1 %v11378_v60  ;;  %v10392_v22 = vadd.f32 %v7049_v36, %v4452_v19  ;;  %v11380_v19 = vld [vmem:[#allocation58_spill] sm:$0xff]  ;;  %v11381_v36 = vld [vmem:[#allocation59_spill] sm:$0xff] }
 0x40d   : > { %v6944_v4 = vpop.f32.mrb[188].mxu1  ;;  %v7050_v32 = vpop.f32.mrb[248].mxu0 }
 0x40e   : > { %v6945_v53 = vpop.f32.mrb[189].mxu1  ;;  %v7051_v13 = vpop.f32.mrb[249].mxu0 }
 0x40f   : > { %v6946_v23 = vadd.f32 %v6945_v53, %v6944_v4  ;;  %v6947_v25 = vpop.f32.mrb[190].mxu1  ;;  %v7052_v61 = vadd.f32 %v7051_v13, %v7050_v32  ;;  %v7053_v42 = vpop.f32.mrb[250].mxu0 }
 0x410   : > { %v6948_v62 = vpop.f32.mrb[191].mxu1  ;;  %v7054_v24 = vpop.f32.mrb[251].mxu0 }
 0x411   : > { %v4465_v9 = vadd.f32 %v6946_v23, %v10230_v38  ;;  %v6949_v5 = vadd.f32 %v6948_v62, %v6947_v25  ;;  %v10395_v10 = vadd.f32 %v7052_v61, %v4457_v18  ;;  %v7055_v35 = vadd.f32 %v7054_v24, %v7053_v42 }
 0x412   : > { %7319 = vmatmul.mubr.bf16.gmra.mrb[8].mxu1 %v11379_v49 }
 0x413   : > { %v4468_v16 = vadd.f32 %v6949_v5, %v10239_v44  ;;  %7322 = vmatprep.mubr.bf16.mxu1 %v11380_v19  ;;  %v10400_v63 = vadd.f32 %v7055_v35, %v4460_v57 }
 0x415   : > { %v6950_v15 = vpop.f32.mrb[192].mxu1  ;;  %v7056_v37 = vpop.f32.mrb[252].mxu0 }
 0x416   : > { %v6951_v29 = vpop.f32.mrb[193].mxu1  ;;  %v7057_v30 = vpop.f32.mrb[253].mxu0 }
 0x417   : > { %v6952_v31 = vadd.f32 %v6951_v29, %v6950_v15  ;;  %v6953_v28 = vpop.f32.mrb[194].mxu1  ;;  %v7058_v38 = vadd.f32 %v7057_v30, %v7056_v37  ;;  %v7059_v34 = vpop.f32.mrb[254].mxu0 }
 0x418   : > { %v6954_v26 = vpop.f32.mrb[195].mxu1  ;;  %v7060_v50 = vpop.f32.mrb[255].mxu0 }
 0x419   : > { %v4473_v48 = vadd.f32 %v6952_v31, %v10249_v45  ;;  %v6955_v18 = vadd.f32 %v6954_v26, %v6953_v28  ;;  %v10403_v47 = vadd.f32 %v7058_v38, %v4465_v9  ;;  %v7061_v44 = vadd.f32 %v7060_v50, %v7059_v34 }
 0x41a   : > { %7323 = vmatmul.mubr.bf16.gmra.mrb[12].mxu1 %v11381_v36 }
 0x41b   : > { %v4476_v12 = vadd.f32 %v6955_v18, %v10259_v0  ;;  %v10407_v57 = vadd.f32 %v7061_v44, %v4468_v16 }
 0x41d   : > { %v6956_v60 = vpop.f32.mrb[196].mxu1  ;;  %v7062_v53 = vpop.f32.mrb[0].mxu0 }
 0x41e   : > { %v6957_v4 = vpop.f32.mrb[197].mxu1  ;;  %v7063_v25 = vpop.f32.mrb[1].mxu0 }
 0x41f   : > { %v6958_v32 = vadd.f32 %v6957_v4, %v6956_v60  ;;  %v6959_v23 = vpop.f32.mrb[198].mxu1  ;;  %v7064_v13 = vadd.f32 %v7063_v25, %v7062_v53  ;;  %v7065_v45 = vpop.f32.mrb[2].mxu0 }
 0x420   : > { %v6960_v61 = vpop.f32.mrb[199].mxu1  ;;  %v7066_v9 = vpop.f32.mrb[3].mxu0 }
 0x421   : > { %v4481_v62 = vadd.f32 %v6958_v32, %v10264_v43  ;;  %v6961_v42 = vadd.f32 %v6960_v61, %v6959_v23  ;;  %v10410_v5 = vadd.f32 %v7064_v13, %v4473_v48  ;;  %v7067_v24 = vadd.f32 %v7066_v9, %v7065_v45 }
 0x423   : > { %v4484_v0 = vadd.f32 %v6961_v42, %v10272_v8  ;;  %v10413_v35 = vadd.f32 %v7067_v24, %v4476_v12 }
 0x425   : > { %v6962_v49 = vpop.f32.mrb[200].mxu1  ;;  %v7068_v19 = vpop.f32.mrb[4].mxu0 }
 0x426   : > { %v6963_v16 = vpop.f32.mrb[201].mxu1  ;;  %v7069_v37 = vpop.f32.mrb[5].mxu0 }
 0x427   : > { %v6964_v15 = vadd.f32 %v6963_v16, %v6962_v49  ;;  %v6965_v29 = vpop.f32.mrb[202].mxu1  ;;  %v7070_v31 = vadd.f32 %v7069_v37, %v7068_v19  ;;  %v7071_v30 = vpop.f32.mrb[6].mxu0 }
 0x428   : > { %v6966_v28 = vpop.f32.mrb[203].mxu1  ;;  %v7072_v26 = vpop.f32.mrb[7].mxu0 }
 0x429   : > { %v4489_v43 = vadd.f32 %v6964_v15, %v10276_v1  ;;  %v6967_v38 = vadd.f32 %v6966_v28, %v6965_v29  ;;  %v10416_v34 = vadd.f32 %v7070_v31, %v4481_v62  ;;  %v7073_v48 = vadd.f32 %v7072_v26, %v7071_v30 }
 0x42b   : > { %v4492_v8 = vadd.f32 %v6967_v38, %v10284_v40  ;;  %v10419_v18 = vadd.f32 %v7073_v48, %v4484_v0 }
 0x42d   : > { %v6968_v50 = vpop.f32.mrb[204].mxu1  ;;  %v7074_v36 = vpop.f32.mrb[8].mxu0 }
 0x42e   : > { %v6969_v44 = vpop.f32.mrb[205].mxu1  ;;  %v7075_v4 = vpop.f32.mrb[9].mxu0 }
 0x42f   : > { %v6970_v12 = vadd.f32 %v6969_v44, %v6968_v50  ;;  %v6971_v60 = vpop.f32.mrb[206].mxu1  ;;  %v7076_v53 = vadd.f32 %v7075_v4, %v7074_v36  ;;  %v7077_v23 = vpop.f32.mrb[10].mxu0 }
 0x430   : > { %v6972_v32 = vpop.f32.mrb[207].mxu1  ;;  %v7078_v13 = vpop.f32.mrb[11].mxu0 }
 0x431   : > { %v4497_v1 = vadd.f32 %v6970_v12, %v10288_v41  ;;  %v6973_v25 = vadd.f32 %v6972_v32, %v6971_v60  ;;  %v10422_v61 = vadd.f32 %v7076_v53, %v4489_v43  ;;  %v7079_v45 = vadd.f32 %v7078_v13, %v7077_v23 }
 0x433   : > { %v4500_v40 = vadd.f32 %v6973_v25, %v10296_v46  ;;  %v10425_v62 = vadd.f32 %v7079_v45, %v4492_v8 }
 0x435   : > { %v6974_v42 = vpop.f32.mrb[208].mxu1  ;;  %v7080_v24 = vpop.f32.mrb[12].mxu0 }
 0x436   : > { %v6975_v9 = vpop.f32.mrb[209].mxu1  ;;  %v7081_v16 = vpop.f32.mrb[13].mxu0 }
 0x437   : > { %v6976_v0 = vadd.f32 %v6975_v9, %v6974_v42  ;;  %v6977_v49 = vpop.f32.mrb[210].mxu1  ;;  %v7082_v19 = vadd.f32 %v7081_v16, %v7080_v24  ;;  %v7083_v29 = vpop.f32.mrb[14].mxu0 }
 0x438   : > { %v6978_v15 = vpop.f32.mrb[211].mxu1  ;;  %v7084_v31 = vpop.f32.mrb[15].mxu0 }
 0x439   : > { %v4505_v41 = vadd.f32 %v6976_v0, %v10300_v21  ;;  %v6979_v37 = vadd.f32 %v6978_v15, %v6977_v49  ;;  %v10428_v28 = vadd.f32 %v7082_v19, %v4497_v1  ;;  %v7085_v30 = vadd.f32 %v7084_v31, %v7083_v29 }
 0x43b   : > { %v4508_v46 = vadd.f32 %v6979_v37, %v10308_v6  ;;  %v10431_v43 = vadd.f32 %v7085_v30, %v4500_v40 }
 0x43d   : > { %v6980_v38 = vpop.f32.mrb[212].mxu1  ;;  %v7086_v48 = vpop.f32.mrb[16].mxu0 }
 0x43e   : > { %v6981_v26 = vpop.f32.mrb[213].mxu1  ;;  %v7087_v44 = vpop.f32.mrb[17].mxu0 }
 0x43f   : > { %v6982_v8 = vadd.f32 %v6981_v26, %v6980_v38  ;;  %v6983_v50 = vpop.f32.mrb[214].mxu1  ;;  %v7088_v36 = vadd.f32 %v7087_v44, %v7086_v48  ;;  %v7089_v60 = vpop.f32.mrb[18].mxu0 }
 0x440   : > { %v6984_v12 = vpop.f32.mrb[215].mxu1  ;;  %v7090_v53 = vpop.f32.mrb[19].mxu0 }
 0x441   : > { %v4513_v21 = vadd.f32 %v6982_v8, %v10312_v59  ;;  %v6985_v4 = vadd.f32 %v6984_v12, %v6983_v50  ;;  %v10434_v32 = vadd.f32 %v7088_v36, %v4505_v41  ;;  %v7091_v23 = vadd.f32 %v7090_v53, %v7089_v60 }
 0x443   : > { %v4516_v6 = vadd.f32 %v6985_v4, %v10320_v52  ;;  %v10437_v1 = vadd.f32 %v7091_v23, %v4508_v46 }
 0x445   : > { %v6986_v25 = vpop.f32.mrb[216].mxu1  ;;  %v7092_v45 = vpop.f32.mrb[20].mxu0 }
 0x446   : > { %v6987_v13 = vpop.f32.mrb[217].mxu1  ;;  %v7093_v9 = vpop.f32.mrb[21].mxu0 }
 0x447   : > { %v6988_v40 = vadd.f32 %v6987_v13, %v6986_v25  ;;  %v6989_v42 = vpop.f32.mrb[218].mxu1  ;;  %v7094_v24 = vadd.f32 %v7093_v9, %v7092_v45  ;;  %v7095_v49 = vpop.f32.mrb[22].mxu0 }
 0x448   : > { %v6990_v0 = vpop.f32.mrb[219].mxu1  ;;  %v7096_v19 = vpop.f32.mrb[23].mxu0 }
 0x449   : > { %v4521_v59 = vadd.f32 %v6988_v40, %v10324_v54  ;;  %v6991_v16 = vadd.f32 %v6990_v0, %v6989_v42  ;;  %v10440_v15 = vadd.f32 %v7094_v24, %v4513_v21  ;;  %v7097_v29 = vadd.f32 %v7096_v19, %v7095_v49 }
 0x44b   : > { %v4524_v52 = vadd.f32 %v6991_v16, %v10332_v3  ;;  %v10443_v41 = vadd.f32 %v7097_v29, %v4516_v6 }
 0x44d   : > { %v6992_v37 = vpop.f32.mrb[220].mxu1  ;;  %v7098_v30 = vpop.f32.mrb[24].mxu0 }
 0x44e   : > { %v6993_v31 = vpop.f32.mrb[221].mxu1  ;;  %v7099_v26 = vpop.f32.mrb[25].mxu0 }
 0x44f   : > { %v6994_v46 = vadd.f32 %v6993_v31, %v6992_v37  ;;  %v6995_v38 = vpop.f32.mrb[222].mxu1  ;;  %v7100_v48 = vadd.f32 %v7099_v26, %v7098_v30  ;;  %v7101_v50 = vpop.f32.mrb[26].mxu0 }
 0x450   : > { %v6996_v8 = vpop.f32.mrb[223].mxu1  ;;  %v7102_v36 = vpop.f32.mrb[27].mxu0 }
 0x451   : > { %v4529_v54 = vadd.f32 %v6994_v46, %v10336_v33  ;;  %v6997_v44 = vadd.f32 %v6996_v8, %v6995_v38  ;;  %v10446_v12 = vadd.f32 %v7100_v48, %v4521_v59  ;;  %v7103_v60 = vadd.f32 %v7102_v36, %v7101_v50 }
 0x453   : > { %v4532_v3 = vadd.f32 %v6997_v44, %v10342_v2  ;;  %v10449_v21 = vadd.f32 %v7103_v60, %v4524_v52 }
 0x455   : > { %v6998_v4 = vpop.f32.mrb[224].mxu1  ;;  %v7104_v23 = vpop.f32.mrb[28].mxu0 }
 0x456   : > { %v6999_v53 = vpop.f32.mrb[225].mxu1  ;;  %v7105_v13 = vpop.f32.mrb[29].mxu0 }
 0x457   : > { %v7000_v6 = vadd.f32 %v6999_v53, %v6998_v4  ;;  %v7001_v25 = vpop.f32.mrb[226].mxu1  ;;  %v7106_v45 = vadd.f32 %v7105_v13, %v7104_v23  ;;  %v7107_v42 = vpop.f32.mrb[30].mxu0 }
 0x458   : > { %v7002_v40 = vpop.f32.mrb[227].mxu1  ;;  %v7108_v24 = vpop.f32.mrb[31].mxu0 }
 0x459   : > { %v4537_v33 = vadd.f32 %v7000_v6, %v10346_v20  ;;  %v7003_v9 = vadd.f32 %v7002_v40, %v7001_v25  ;;  %v10452_v0 = vadd.f32 %v7106_v45, %v4529_v54  ;;  %v7109_v49 = vadd.f32 %v7108_v24, %v7107_v42 }
 0x45b   : > { %v4540_v2 = vadd.f32 %v7003_v9, %v10350_v55  ;;  %v10455_v59 = vadd.f32 %v7109_v49, %v4532_v3 }
 0x45d   : > { %v7004_v16 = vpop.f32.mrb[228].mxu1  ;;  %v7110_v29 = vpop.f32.mrb[32].mxu0 }
 0x45e   : > { %v7005_v19 = vpop.f32.mrb[229].mxu1  ;;  %v7111_v31 = vpop.f32.mrb[33].mxu0 }
 0x45f   : > { %v7006_v52 = vadd.f32 %v7005_v19, %v7004_v16  ;;  %v7007_v37 = vpop.f32.mrb[230].mxu1  ;;  %v7112_v30 = vadd.f32 %v7111_v31, %v7110_v29  ;;  %v7113_v38 = vpop.f32.mrb[34].mxu0 }
 0x460   : > { %v7008_v46 = vpop.f32.mrb[231].mxu1  ;;  %v7114_v48 = vpop.f32.mrb[35].mxu0 }
 0x461   : > { %v4545_v20 = vadd.f32 %v7006_v52, %v10354_v56  ;;  %v7009_v26 = vadd.f32 %v7008_v46, %v7007_v37  ;;  %v10458_v8 = vadd.f32 %v7112_v30, %v4537_v33  ;;  %v7115_v50 = vadd.f32 %v7114_v48, %v7113_v38 }
 0x463   : > { %v4548_v55 = vadd.f32 %v7009_v26, %v10358_v51  ;;  %v10461_v54 = vadd.f32 %v7115_v50, %v4540_v2 }
 0x465   : > { %v7010_v44 = vpop.f32.mrb[232].mxu1  ;;  %v7116_v60 = vpop.f32.mrb[36].mxu0 }
 0x466   : > { %v7011_v36 = vpop.f32.mrb[233].mxu1  ;;  %v7117_v53 = vpop.f32.mrb[37].mxu0 }
 0x467   : > { %v7012_v3 = vadd.f32 %v7011_v36, %v7010_v44  ;;  %v7013_v4 = vpop.f32.mrb[234].mxu1  ;;  %v7118_v23 = vadd.f32 %v7117_v53, %v7116_v60  ;;  %v7119_v25 = vpop.f32.mrb[38].mxu0 }
 0x468   : > { %v7014_v6 = vpop.f32.mrb[235].mxu1  ;;  %v7120_v45 = vpop.f32.mrb[39].mxu0 }
 0x469   : > { %v4553_v56 = vadd.f32 %v7012_v3, %v10362_v27  ;;  %v7015_v13 = vadd.f32 %v7014_v6, %v7013_v4  ;;  %v10464_v40 = vadd.f32 %v7118_v23, %v4545_v20  ;;  %v7121_v42 = vadd.f32 %v7120_v45, %v7119_v25 }
 0x46b   : > { %v4556_v51 = vadd.f32 %v7015_v13, %v10366_v11  ;;  %v10467_v33 = vadd.f32 %v7121_v42, %v4548_v55 }
 0x46d   : > { %v7016_v9 = vpop.f32.mrb[236].mxu1  ;;  %v7122_v49 = vpop.f32.mrb[40].mxu0 }
 0x46e   : > { %v7017_v24 = vpop.f32.mrb[237].mxu1  ;;  %v7123_v19 = vpop.f32.mrb[41].mxu0 }
 0x46f   : > { %v7018_v2 = vadd.f32 %v7017_v24, %v7016_v9  ;;  %v7019_v16 = vpop.f32.mrb[238].mxu1  ;;  %v7124_v29 = vadd.f32 %v7123_v19, %v7122_v49  ;;  %v7125_v37 = vpop.f32.mrb[42].mxu0 }
 0x470   : > { %v7020_v52 = vpop.f32.mrb[239].mxu1  ;;  %v7126_v30 = vpop.f32.mrb[43].mxu0 }
 0x471   : > { %v4561_v27 = vadd.f32 %v7018_v2, %v10371_v7  ;;  %v7021_v31 = vadd.f32 %v7020_v52, %v7019_v16  ;;  %v10470_v46 = vadd.f32 %v7124_v29, %v4553_v56  ;;  %v7127_v38 = vadd.f32 %v7126_v30, %v7125_v37  ;;  %v10482_v7 = vld [vmem:[%s10640_s6] ss:$0 sm:$0xff] }
 0x472   : > { %v7346_v23 = vadd.f32 %v10482_v7, %v10392_v22  ;;  %v7348_v56 = vadd.f32 %v10482_v7, %v10384_v14  ;;  %v7352_v22 = vadd.f32 %v10482_v7, %v10395_v10  ;;  %v7354_v29 = vadd.f32 %v10482_v7, %v10407_v57 }
 0x473   : > { %v4564_v11 = vadd.f32 %v7021_v31, %v10376_v17  ;;  %v10473_v20 = vadd.f32 %v7127_v38, %v4556_v51 }
 0x475   : > { %v7128_v26 = vpop.f32.mrb[44].mxu0 }
 0x476   : > { %v7129_v48 = vpop.f32.mrb[45].mxu0 }
 0x477   : > { %v7130_v50 = vadd.f32 %v7129_v48, %v7128_v26  ;;  %v7131_v55 = vpop.f32.mrb[46].mxu0  ;;  %v7358_v48 = vadd.f32 %v10482_v7, %v10416_v34 }
 0x478   : > { %v7132_v44 = vpop.f32.mrb[47].mxu0 }
 0x479   : > { %v10475_v36 = vadd.f32 %v7130_v50, %v4561_v27  ;;  %v7133_v60 = vadd.f32 %v7132_v44, %v7131_v55  ;;  %v7362_v44 = vadd.f32 %v10482_v7, %v10419_v18 }
 0x47b   : > { %v10477_v3 = vadd.f32 %v7133_v60, %v4564_v11 }
 0x4b5   : > { %v7296_v4 = vpop.f32.mrb[240].mxu1 }
 0x4b6   : > { %v7342_v17 = vadd.f32 %v7296_v4, %v10388_v58  ;;  %v5090_v53 = vpop.f32.mrb[241].mxu1 }
 0x4b7   : > { %v7344_v6 = vadd.f32 %v5090_v53, %v10380_v39  ;;  %v7297_v25 = vpop.f32.mrb[242].mxu1  ;;  %v7350_v39 = vadd.f32 %v10482_v7, %v10403_v47  ;;  %v7356_v47 = vadd.f32 %v10482_v7, %v10400_v63  ;;  %v7360_v63 = vadd.f32 %v10482_v7, %v10410_v5 }
 0x4b8   : > { %v7343_v13 = vadd.f32 %v7342_v17, %v10482_v7  ;;  %v7347_v45 = vadd.f32 %v7346_v23, %v7297_v25  ;;  %v5093_v42 = vpop.f32.mrb[243].mxu1  ;;  %v7364_v17 = vadd.f32 %v10482_v7, %v10413_v35  ;;  %v7368_v35 = vadd.f32 %v10482_v7, %v10422_v61 }
 0x4b9   : > { %v7345_v51 = vadd.f32 %v7344_v6, %v10482_v7  ;;  %v7349_v9 = vadd.f32 %v7348_v56, %v5093_v42 }
 0x4ba   : > { %v5251_v24 = vmax.f32 %v7343_v13, 0.0  ;;  %v5252_v49 = vmax.f32 %v7347_v45, 0.0  ;;  %v7366_v13 = vadd.f32 %v10482_v7, %v10428_v28 }
 0x4bb   : > { %v5249_v58 = vmax.f32 %v7345_v51, 0.0  ;;  %v5250_v2 = vmax.f32 %v7349_v9, 0.0  ;;  %v7370_v51 = vadd.f32 %v10482_v7, %v10431_v43 }
 0x4bc   : > { %5283 = vst [vmem:[%s10493_s12 + $0x10] sm:$0xff] %v5251_v24  ;;  %5284 = vst [vmem:[%s10493_s12 + $0x18] sm:$0xff] %v5252_v49  ;;  %v7372_v49 = vadd.f32 %v10482_v7, %v10425_v62  ;;  %v7376_v62 = vadd.f32 %v10482_v7, %v10434_v32 }
 0x4bd   : > { %5281 = vst [vmem:[%s10493_s12] sm:$0xff] %v5249_v58  ;;  %5282 = vst [vmem:[%s10493_s12 + $0x8] sm:$0xff] %v5250_v2  ;;  %v7300_v14 = vpop.f32.mrb[244].mxu1 }
 0x4be   : > { %v7351_v16 = vadd.f32 %v7350_v39, %v7300_v14  ;;  %v5106_v19 = vpop.f32.mrb[245].mxu1 }
 0x4bf   : > { %v7353_v52 = vadd.f32 %v7352_v22, %v5106_v19  ;;  %v7301_v37 = vpop.f32.mrb[246].mxu1 }
 0x4c0   : > { %v5255_v27 = vmax.f32 %v7351_v16, 0.0  ;;  %v7355_v31 = vadd.f32 %v7354_v29, %v7301_v37  ;;  %v5109_v30 = vpop.f32.mrb[247].mxu1  ;;  %v7374_v16 = vadd.f32 %v10482_v7, %v10440_v15 }
 0x4c1   : > { %v5253_v38 = vmax.f32 %v7353_v52, 0.0  ;;  %v7357_v11 = vadd.f32 %v7356_v47, %v5109_v30  ;;  %v7378_v52 = vadd.f32 %v10482_v7, %v10443_v41 }
 0x4c2   : > { %5287 = vst [vmem:[%s10493_s12 + $0x30] sm:$0xff] %v5255_v27  ;;  %v5256_v26 = vmax.f32 %v7355_v31, 0.0  ;;  %v7380_v27 = vadd.f32 %v10482_v7, %v10437_v1  ;;  %v7384_v1 = vadd.f32 %v10482_v7, %v10446_v12 }
 0x4c3   : > { %5285 = vst [vmem:[%s10493_s12 + $0x20] sm:$0xff] %v5253_v38  ;;  %v5254_v10 = vmax.f32 %v7357_v11, 0.0 }
 0x4c4   : > { %5288 = vst [vmem:[%s10493_s12 + $0x38] sm:$0xff] %v5256_v26 }
 0x4c5   : > { %5286 = vst [vmem:[%s10493_s12 + $0x28] sm:$0xff] %v5254_v10  ;;  %v7304_v57 = vpop.f32.mrb[248].mxu1  ;;  %v7382_v10 = vadd.f32 %v10482_v7, %v10452_v0 }
 0x4c6   : > { %v7359_v50 = vadd.f32 %v7358_v48, %v7304_v57  ;;  %v5122_v55 = vpop.f32.mrb[249].mxu1 }
 0x4c7   : > { %v7361_v60 = vadd.f32 %v7360_v63, %v5122_v55  ;;  %v7305_v4 = vpop.f32.mrb[250].mxu1  ;;  %v7386_v63 = vadd.f32 %v10482_v7, %v10455_v59 }
 0x4c8   : > { %v5259_v53 = vmax.f32 %v7359_v50, 0.0  ;;  %v7363_v34 = vadd.f32 %v7362_v44, %v7305_v4  ;;  %v5125_v23 = vpop.f32.mrb[251].mxu1  ;;  %v7388_v44 = vadd.f32 %v10482_v7, %v10449_v21  ;;  %v7392_v21 = vadd.f32 %v10482_v7, %v10458_v8 }
 0x4c9   : > { %v5257_v6 = vmax.f32 %v7361_v60, 0.0  ;;  %v7365_v25 = vadd.f32 %v7364_v17, %v5125_v23  ;;  %v7390_v23 = vadd.f32 %v10482_v7, %v10464_v40 }
 0x4ca   : > { %5291 = vst [vmem:[%s10493_s12 + $0x50] sm:$0xff] %v5259_v53  ;;  %v5260_v56 = vmax.f32 %v7363_v34, 0.0 }
 0x4cb   : > { %5289 = vst [vmem:[%s10493_s12 + $0x40] sm:$0xff] %v5257_v6  ;;  %v5258_v5 = vmax.f32 %v7365_v25, 0.0 }
 0x4cc   : > { %5292 = vst [vmem:[%s10493_s12 + $0x58] sm:$0xff] %v5260_v56  ;;  %v7394_v56 = vadd.f32 %v10482_v7, %v10467_v33  ;;  %v7398_v33 = vadd.f32 %v10482_v7, %v10475_v36 }
 0x4cd   : > { %5290 = vst [vmem:[%s10493_s12 + $0x48] sm:$0xff] %v5258_v5  ;;  %v7308_v18 = vpop.f32.mrb[252].mxu1 }
 0x4ce   : > { %v7367_v45 = vadd.f32 %v7366_v13, %v7308_v18  ;;  %v5138_v42 = vpop.f32.mrb[253].mxu1  ;;  %v7396_v18 = vadd.f32 %v10482_v7, %v10461_v54  ;;  %v7400_v54 = vadd.f32 %v10482_v7, %v10470_v46 }
 0x4cf   : > { %v7369_v9 = vadd.f32 %v7368_v35, %v5138_v42  ;;  %v7309_v24 = vpop.f32.mrb[254].mxu1 }
 0x4d0   : > { %v5263_v58 = vmax.f32 %v7367_v45, 0.0  ;;  %v7371_v28 = vadd.f32 %v7370_v51, %v7309_v24  ;;  %v5141_v2 = vpop.f32.mrb[255].mxu1 }
 0x4d1   : > { %v5261_v39 = vmax.f32 %v7369_v9, 0.0  ;;  %v7373_v14 = vadd.f32 %v7372_v49, %v5141_v2 }
 0x4d2   : > { %5295 = vst [vmem:[%s10493_s12 + $0x70] sm:$0xff] %v5263_v58  ;;  %v5264_v22 = vmax.f32 %v7371_v28, 0.0  ;;  %v7402_v28 = vadd.f32 %v10482_v7, %v10477_v3 }
 0x4d3   : > { %5293 = vst [vmem:[%s10493_s12 + $0x60] sm:$0xff] %v5261_v39  ;;  %v5262_v61 = vmax.f32 %v7373_v14, 0.0  ;;  %v7404_v14 = vadd.f32 %v10482_v7, %v10473_v20 }
 0x4d4   : > { %5296 = vst [vmem:[%s10493_s12 + $0x78] sm:$0xff] %v5264_v22 }
 0x4d5   : > { %5294 = vst [vmem:[%s10493_s12 + $0x68] sm:$0xff] %v5262_v61  ;;  %v7312_v43 = vpop.f32.mrb[0].mxu1 }
 0x4d6   : > { %v7375_v19 = vadd.f32 %v7374_v16, %v7312_v43  ;;  %v5154_v29 = vpop.f32.mrb[1].mxu1 }
 0x4d7   : > { %v7377_v37 = vadd.f32 %v7376_v62, %v5154_v29  ;;  %v7313_v47 = vpop.f32.mrb[2].mxu1 }
 0x4d8   : > { %v5267_v31 = vmax.f32 %v7375_v19, 0.0  ;;  %v7379_v15 = vadd.f32 %v7378_v52, %v7313_v47  ;;  %v5157_v30 = vpop.f32.mrb[3].mxu1 }
 0x4d9   : > { %v5265_v38 = vmax.f32 %v7377_v37, 0.0  ;;  %v7381_v11 = vadd.f32 %v7380_v27, %v5157_v30 }
 0x4da   : > { %5299 = vst [vmem:[%s10493_s12 + $0x90] sm:$0xff] %v5267_v31  ;;  %v5268_v26 = vmax.f32 %v7379_v15, 0.0 }
 0x4db   : > { %5297 = vst [vmem:[%s10493_s12 + $0x80] sm:$0xff] %v5265_v38  ;;  %v5266_v32 = vmax.f32 %v7381_v11, 0.0 }
 0x4dc   : > { %5300 = vst [vmem:[%s10493_s12 + $0x98] sm:$0xff] %v5268_v26 }
 0x4dd   : > { %5298 = vst [vmem:[%s10493_s12 + $0x88] sm:$0xff] %v5266_v32  ;;  %v7316_v41 = vpop.f32.mrb[4].mxu1 }
 0x4de   : > { %v7383_v48 = vadd.f32 %v7382_v10, %v7316_v41  ;;  %v5170_v57 = vpop.f32.mrb[5].mxu1 }
 0x4df   : > { %v7385_v50 = vadd.f32 %v7384_v1, %v5170_v57  ;;  %v7317_v55 = vpop.f32.mrb[6].mxu1 }
 0x4e0   : > { %v5271_v60 = vmax.f32 %v7383_v48, 0.0  ;;  %v7387_v0 = vadd.f32 %v7386_v63, %v7317_v55  ;;  %v5173_v4 = vpop.f32.mrb[7].mxu1 }
 0x4e1   : > { %v5269_v17 = vmax.f32 %v7385_v50, 0.0  ;;  %v7389_v53 = vadd.f32 %v7388_v44, %v5173_v4 }
 0x4e2   : > { %5303 = vst [vmem:[%s10493_s12 + $0xb0] sm:$0xff] %v5271_v60  ;;  %v5272_v34 = vmax.f32 %v7387_v0, 0.0 }
 0x4e3   : > { %5301 = vst [vmem:[%s10493_s12 + $0xa0] sm:$0xff] %v5269_v17  ;;  %v5270_v12 = vmax.f32 %v7389_v53, 0.0 }
 0x4e4   : > { %5304 = vst [vmem:[%s10493_s12 + $0xb8] sm:$0xff] %v5272_v34 }
 0x4e5   : > { %5302 = vst [vmem:[%s10493_s12 + $0xa8] sm:$0xff] %v5270_v12  ;;  %v7320_v59 = vpop.f32.mrb[8].mxu1 }
 0x4e6   : > { %v7391_v6 = vadd.f32 %v7390_v23, %v7320_v59  ;;  %v5186_v25 = vpop.f32.mrb[9].mxu1 }
 0x4e7   : > { %v7393_v5 = vadd.f32 %v7392_v21, %v5186_v25  ;;  %v7321_v13 = vpop.f32.mrb[10].mxu1 }
 0x4e8   : > { %v5275_v35 = vmax.f32 %v7391_v6, 0.0  ;;  %v7395_v40 = vadd.f32 %v7394_v56, %v7321_v13  ;;  %v5189_v45 = vpop.f32.mrb[11].mxu1 }
 0x4e9   : > { %v5273_v42 = vmax.f32 %v7393_v5, 0.0  ;;  %v7397_v51 = vadd.f32 %v7396_v18, %v5189_v45 }
 0x4ea   : > { %5307 = vst [vmem:[%s10493_s12 + $0xd0] sm:$0xff] %v5275_v35  ;;  %v5276_v8 = vmax.f32 %v7395_v40, 0.0 }
 0x4eb   : > { %5305 = vst [vmem:[%s10493_s12 + $0xc0] sm:$0xff] %v5273_v42  ;;  %v5274_v9 = vmax.f32 %v7397_v51, 0.0 }
 0x4ec   : > { %5308 = vst [vmem:[%s10493_s12 + $0xd8] sm:$0xff] %v5276_v8 }
 0x4ed   : > { %5306 = vst [vmem:[%s10493_s12 + $0xc8] sm:$0xff] %v5274_v9  ;;  %v7324_v24 = vpop.f32.mrb[12].mxu1 }
 0x4ee   : > { %v7399_v49 = vadd.f32 %v7398_v33, %v7324_v24  ;;  %v5202_v58 = vpop.f32.mrb[13].mxu1 }
 0x4ef   : > { %v7401_v2 = vadd.f32 %v7400_v54, %v5202_v58  ;;  %v7325_v39 = vpop.f32.mrb[14].mxu1 }
 0x4f0   : > { %v5279_v36 = vmax.f32 %v7399_v49, 0.0  ;;  %v7403_v22 = vadd.f32 %v7402_v28, %v7325_v39  ;;  %v5205_v46 = vpop.f32.mrb[15].mxu1 }
 0x4f1   : > { %v5277_v61 = vmax.f32 %v7401_v2, 0.0  ;;  %v7405_v16 = vadd.f32 %v7404_v14, %v5205_v46 }
 0x4f2   : > { %5311 = vst [vmem:[%s10493_s12 + $0xf0] sm:$0xff] %v5279_v36  ;;  %v5280_v43 = vmax.f32 %v7403_v22, 0.0 }
 0x4f3   : > { %5309 = vst [vmem:[%s10493_s12 + $0xe0] sm:$0xff] %v5277_v61  ;;  %v5278_v20 = vmax.f32 %v7405_v16, 0.0 }
 0x4f4   : > { %5312 = vst [vmem:[%s10493_s12 + $0xf8] sm:$0xff] %v5280_v43 }
 0x4f5   : > { %5310 = vst [vmem:[%s10493_s12 + $0xe8] sm:$0xff] %v5278_v20 }
 0x4f6   : > { %7833 = shalt.err (!%p7830_p4)
}
 0x4f7   : > { %s7834_s15 = scalar_lea.hbm %s10585_s11, 4096  ;;  %s7838_s8 = scalar_lea.hbm %s10641_s7, 8192 }
 0x4f8   : > { %p7835_p9 = scmp.ne.s32.totalorder %s10585_s11, %s7834_s15  ;;  %p7839_p8 = scmp.lt.u32.totalorder %s10585_s11, %s10641_s7 }
 0x4f9   : > { %p7840_p13 = scmp.lt.u32.totalorder %s7838_s8, %s7834_s15  ;;  %p7842_p10 = scmp.lt.u32.totalorder %s7834_s15, %s10585_s11 }
 0x4fa   : > { %p7836_p0 = pnand %p7835_p9, %p8102_p5 }
 0x4fb   : > { %p7841_p6 = por %p7840_p13, %p7839_p8 }
 0x4fc   : > { %p7837_p11 = pneg %p7836_p0 }
 0x4fd   : > { %p7843_p3 = por %p7842_p10, %p7841_p6 }
 0x4ff   : > { %p7844_p7 = pnand %p7843_p3, %p7837_p11 }
 0x501   : > { %7847 = shalt.err (!%p7844_p7)
}
 0x502   : > { %s7906_s29 = smov 128   ;;  %s7907_s23 = smov 8  }
 0x503   : > { %7452 = dma.vmem_to_hbm [thread:$0]  (%p8102_p5), %s10587_s16, 4096, %s10585_s11, %s5314_s28, %s7906_s29, %s7906_s29, %s7907_s23  }
 0x504 PF: > { %s11382_s20 = sld [smem:[#allocation15_spill]]  ;;  %s5342_s30 = sand.u32 1, %s7882_s24  }
 0x505   : > { %p11384_p1 = scmp.ge.s32.totalorder %s7894_s27, 2  ;;  %s5343_s9 = scalar_lea.sflag [#allocation4], %s5342_s30 }
 0x50a   : > { %p11383_p12 = scmp.ne.s32.totalorder %s11382_s20, 0 }
 0x50c   : > { %p7469_p2 = pnand %p11384_p1, %p11383_p12 }
 0x50e   : > { %7877 = dma.done.wait (!%p7469_p2), %s5343_s9, 4096  }
 0x50f   : > { %7879 = vsyncadd (!%p7469_p2), %s5343_s9, 4294963200  ;;  %p22_p4 = scmp.ge.s32.totalorder %s8088_s22, 4   ;;  %s11385_s24 = smov %s7886_s25 }
 0x510   : > { %s11386_s25 = smov %s7890_s26  ;;  %s11387_s26 = smov %s8098_s18 }
 0x511   : > { %s11388_s27 = smov %s8088_s22  ;;  %24 = sbr.rel (!%p22_p4) target bundleno = 7 (0x7), region = 105 }
 0x518   :  { %5348 = vsyncpa [#allocation3], 1 }
 0x519   :  { %5350 = vsyncpa [#allocation3 + $0x1], 1 }
 0x51a   :  { %5351 = vsyncpa [#allocation6], 1 }
 0x51b   :  { %5352 = vsyncpa [#allocation9], 1 }
 0x51c   :  { %5353 = vsyncpa [#allocation4], 1 }
 0x51d   :  { %5355 = vsyncpa [#allocation4 + $0x1], 1 }

</bundles_post_ra>
